<compile_context>
chip_gen: v5e
topology: v5e:2x2
jax: 0.10.0
libtpu: 0.0.40
codegen_flags: <defaults>
</compile_context>

<pallas_src>
import functools

import jax
import jax.numpy as jnp
from jax.experimental import pallas as pl
from jax.experimental.pallas import tpu as pltpu

H1 = 1024
H2 = 512
BN_EPS = 1e-5


def _round_up(n, m):
    return ((n + m - 1) // m) * m


def _cdiv(a, b):
    return -(-a // b)


# ---------------------------------------------------------------------------
# Kernel
# ---------------------------------------------------------------------------
def _adaptive_mlp_kernel(
    x_ref,            # (TB, input_dim)   f32 (cast to bf16 in-kernel)
    w1_ref, b1_ref,   # (input_dim, 1024) bf16, (1, 1024) f32   (BN folded in)
    w2_ref, b2_ref,   # (1024, 512)       bf16, (1, 512)  f32   (BN folded in)
    w3_ref, b3_ref,   # (512, n_pad)      bf16, (1, n_pad) f32
    out_ref,          # (TB, n_pad)       bf16
):
    # In-kernel f32 -> bf16 cast of the input tile (VPU work, hidden under
    # the layer-1 matmul; avoids a separate wrapper-side cast pass over HBM).
    x = x_ref[...].astype(jnp.bfloat16)

    # Layer 1: (Linear + folded BN) -> ReLU   (Dropout = identity in eval)
    h = jnp.dot(x, w1_ref[...], preferred_element_type=jnp.float32) + b1_ref[...]
    h = jnp.maximum(h, 0.0)

    # Layer 2: (Linear + folded BN) -> ReLU   (Dropout = identity in eval)
    h = jnp.dot(h.astype(jnp.bfloat16), w2_ref[...],
                preferred_element_type=jnp.float32) + b2_ref[...]
    h = jnp.maximum(h, 0.0)

    # Output layer: Linear(512, num_classes), padded to lane-dense n_pad.
    out = jnp.dot(h.astype(jnp.bfloat16), w3_ref[...],
                  preferred_element_type=jnp.float32) + b3_ref[...]
    out_ref[...] = out.astype(out_ref.dtype)


# ---------------------------------------------------------------------------
# Parameter preparation: fold BN, pad output dim, cast to bf16 (done once)
# ---------------------------------------------------------------------------
def prepare_params(params):
    (w1, b1, g1, be1, rm1, rv1,
     w2, b2, g2, be2, rm2, rv2,
     w3, b3) = params

    # Fold BatchNorm1d (running stats, eval) into the preceding Linear.
    s1 = g1 / jnp.sqrt(rv1 + BN_EPS)
    t1 = be1 - rm1 * s1
    s2 = g2 / jnp.sqrt(rv2 + BN_EPS)
    t2 = be2 - rm2 * s2

    w1f = (w1 * s1[None, :]).astype(jnp.float32)
    b1f = (b1 * s1 + t1).astype(jnp.float32)
    w2f = (w2 * s2[None, :]).astype(jnp.float32)
    b2f = (b2 * s2 + t2).astype(jnp.float32)

    # Pad the output feature dim to a multiple of 128 (lane-dense stores).
    num_classes = w3.shape[1]
    n_pad = _round_up(max(num_classes, 128), 128)
    w3p = jnp.zeros((w3.shape[0], n_pad), jnp.float32).at[:, :num_classes].set(w3)
    b3p = jnp.zeros((n_pad,), jnp.float32).at[:num_classes].set(b3)

    row = lambda v: v.reshape(1, -1)
    return {
        "w1": w1f.astype(jnp.bfloat16), "b1": row(b1f),
        "w2": w2f.astype(jnp.bfloat16), "b2": row(b2f),
        "w3": w3p.astype(jnp.bfloat16), "b3": row(b3p),
        "num_classes": num_classes,
        "n_pad": n_pad,
        "input_dim": w1.shape[0],
    }


# ---------------------------------------------------------------------------
# Tile planning (static; shapes are concrete at trace time)
# ---------------------------------------------------------------------------
def _tile_plan(B, tb):
    """Returns (TB, b_pad, n_steps).

    - Balances tiles so the padded tail stays small (no full garbage tile).
    - Forces >= 2 grid steps when B > 16 so v7x megacore can shard the batch.
    - TB is a multiple of 16 (bf16 sublane packing of the output tile).
    """
    n_tiles = max(1, _cdiv(B, tb))
    if n_tiles == 1 and B > 16:
        n_tiles = 2
    TB = _round_up(_cdiv(B, n_tiles), 16)
    n_steps = _cdiv(B, TB)
    b_pad = n_steps * TB
    return TB, b_pad, n_steps


# ---------------------------------------------------------------------------
# Forward wrapper
# ---------------------------------------------------------------------------
@functools.partial(
    jax.jit,
    static_argnames=("num_classes", "n_pad", "input_dim", "tb",
                     "single_buffer_weights"),
)
def _forward_impl(x, w1, b1, w2, b2, w3, b3, *, num_classes, n_pad, input_dim,
                  tb, single_buffer_weights):
    B = x.shape[0]
    TB, b_pad, n_steps = _tile_plan(B, tb)

    xp = x if b_pad == B else jnp.pad(x, ((0, b_pad - B), (0, 0)))

    const = lambda i: (0, 0)   # weights/biases resident across the grid
    if single_buffer_weights and hasattr(pl, "Buffered"):
        # Constant-index operands are DMA'd once; request a single VMEM buffer
        # instead of the default double buffer.
        resident = lambda shape: pl.BlockSpec(shape, const,
                                              pipeline_mode=pl.Buffered(1))
    else:
        resident = lambda shape: pl.BlockSpec(shape, const)

    out = pl.pallas_call(
        _adaptive_mlp_kernel,
        out_shape=jax.ShapeDtypeStruct((b_pad, n_pad), jnp.bfloat16),
        grid=(n_steps,),
        in_specs=[
            pl.BlockSpec((TB, input_dim), lambda i: (i, 0)),   # x tile (f32)
            resident((input_dim, H1)),                         # w1
            resident((1, H1)),                                 # b1
            resident((H1, H2)),                                # w2
            resident((1, H2)),                                 # b2
            resident((H2, n_pad)),                             # w3
            resident((1, n_pad)),                              # b3
        ],
        out_specs=pl.BlockSpec((TB, n_pad), lambda i: (i, 0)),
        compiler_params=pltpu.CompilerParams(
            dimension_semantics=("parallel",),
            vmem_limit_bytes=48 * 1024 * 1024,
        ),
    )(xp, w1, b1, w2, b2, w3, b3)

    # Slice off padded rows / classes; upcast to f32 (tiny, fuses downstream).
    return out[:B, :num_classes].astype(jnp.float32)


def adaptive_mlp_forward(x, packed, tb=1024):
    """x: (B, input_dim) float32. Returns (B, num_classes) float32."""
    args = (x,
            packed["w1"], packed["b1"],
            packed["w2"], packed["b2"],
            packed["w3"], packed["b3"])
    kwargs = dict(num_classes=packed["num_classes"],
                  n_pad=packed["n_pad"],
                  input_dim=packed["input_dim"],
                  tb=tb)
    try:
        return _forward_impl(*args, **kwargs, single_buffer_weights=True)
    except Exception:
        # Fallback if this Pallas build does not support Buffered(1) on the
        # main pallas_call pipeline.
        return _forward_impl(*args, **kwargs, single_buffer_weights=False)


# ---------------------------------------------------------------------------
# Init + references
# ---------------------------------------------------------------------------
def init_params(key, input_dim, num_classes):
    k1, k2, k3 = jax.random.split(key, 3)

    def linear_init(k, fan_in, fan_out):
        bound = 1.0 / jnp.sqrt(fan_in)
        kw, kb = jax.random.split(k)
        w = jax.random.uniform(kw, (fan_in, fan_out), jnp.float32, -bound, bound)
        b = jax.random.uniform(kb, (fan_out,), jnp.float32, -bound, bound)
        return w, b

    w1, b1 = linear_init(k1, input_dim, H1)
    w2, b2 = linear_init(k2, H1, H2)
    w3, b3 = linear_init(k3, H2, num_classes)

    g1, be1 = jnp.ones((H1,), jnp.float32), jnp.zeros((H1,), jnp.float32)
    rm1, rv1 = jnp.zeros((H1,), jnp.float32), jnp.ones((H1,), jnp.float32)
    g2, be2 = jnp.ones((H2,), jnp.float32), jnp.zeros((H2,), jnp.float32)
    rm2, rv2 = jnp.zeros((H2,), jnp.float32), jnp.ones((H2,), jnp.float32)

    return (w1, b1, g1, be1, rm1, rv1,
            w2, b2, g2, be2, rm2, rv2,
            w3, b3)


def _reference_f32(x, params):
    """Pure f32 reference matching the PyTorch module in eval mode."""
    (w1, b1, g1, be1, rm1, rv1,
     w2, b2, g2, be2, rm2, rv2,
     w3, b3) = params
    h = x @ w1 + b1
    h = (h - rm1) / jnp.sqrt(rv1 + BN_EPS) * g1 + be1
    h = jnp.maximum(h, 0.0)
    h = h @ w2 + b2
    h = (h - rm2) / jnp.sqrt(rv2 + BN_EPS) * g2 + be2
    h = jnp.maximum(h, 0.0)
    return h @ w3 + b3


def _reference_bf16(x, packed):
    """Reference using the same bf16-quantized operands / output as the kernel."""
    f32 = jnp.float32
    up = lambda a: a.astype(f32)
    h = up(x.astype(jnp.bfloat16)) @ up(packed["w1"]) + packed["b1"][0]
    h = jnp.maximum(h, 0.0)
    h = up(h.astype(jnp.bfloat16)) @ up(packed["w2"]) + packed["b2"][0]
    h = jnp.maximum(h, 0.0)
    out = up(h.astype(jnp.bfloat16)) @ up(packed["w3"]) + packed["b3"][0]
    out = out.astype(jnp.bfloat16).astype(f32)      # kernel stores bf16 logits
    return out[:, :packed["num_classes"]]


# ---------------------------------------------------------------------------
if __name__ == "__main__":
    key = jax.random.PRNGKey(0)
    kx, kx2, kx3, kp = jax.random.split(key, 4)

    input_dim = 64
    num_classes = 10

    params = init_params(kp, input_dim, num_classes)
    packed = prepare_params(params)

    # Test 1: small batch (single grid step, TB rounded to 16).
    batch = 16
    x = jax.random.normal(kx, (batch, input_dim), jnp.float32)
    out = jax.block_until_ready(adaptive_mlp_forward(x, packed))
    assert out.shape == (batch, num_classes)
    ref_bf16 = _reference_bf16(x, packed)
    assert jnp.allclose(out, ref_bf16, atol=2e-2, rtol=2e-2), \
        float(jnp.max(jnp.abs(out - ref_bf16)))
    ref_f32 = _reference_f32(x, params)
    assert jnp.allclose(out, ref_f32, atol=1.5e-1, rtol=1.5e-1), \
        float(jnp.max(jnp.abs(out - ref_f32)))

    # Test 2: B > 16 -> tile planner splits into 2 balanced grid steps.
    batch2 = 384
    x2 = jax.random.normal(kx2, (batch2, input_dim), jnp.float32)
    out2 = jax.block_until_ready(adaptive_mlp_forward(x2, packed))
    assert out2.shape == (batch2, num_classes)
    ref2 = _reference_bf16(x2, packed)
    assert jnp.allclose(out2, ref2, atol=2e-2, rtol=2e-2), \
        float(jnp.max(jnp.abs(out2 - ref2)))

    # Test 3: awkward batch (exercises balanced last tile + row padding/slice).
    batch3 = 257
    x3 = jax.random.normal(kx3, (batch3, input_dim), jnp.float32)
    out3 = jax.block_until_ready(adaptive_mlp_forward(x3, packed))
    assert out3.shape == (batch3, num_classes)
    ref3 = _reference_bf16(x3, packed)
    assert jnp.allclose(out3, ref3, atol=2e-2, rtol=2e-2), \
        float(jnp.max(jnp.abs(out3 - ref3)))

    print("KERNEL_OK")
</pallas_src>

<mosaic_0001>
module attributes {stable_mosaic.version = 11 : i64} {
  func.func @_adaptive_mlp_kernel(%arg0: i32, %arg1: memref<16x64xf32, #tpu.memory_space<vmem>>, %arg2: memref<64x1024xbf16, #tpu.memory_space<vmem>>, %arg3: memref<1x1024xf32, #tpu.memory_space<vmem>>, %arg4: memref<1024x512xbf16, #tpu.memory_space<vmem>>, %arg5: memref<1x512xf32, #tpu.memory_space<vmem>>, %arg6: memref<512x128xbf16, #tpu.memory_space<vmem>>, %arg7: memref<1x128xf32, #tpu.memory_space<vmem>>, %arg8: memref<16x128xbf16, #tpu.memory_space<vmem>>) attributes {dimension_semantics = [#tpu.dimension_semantics<parallel>], iteration_bounds = array<i64: 1>, scalar_prefetch = 0 : i64, scratch_operands = 0 : i64, tpu.core_type = #tpu.core_type<tc>, window_params = [{transform_indices = @transform_0, window_bounds = array<i64: 16, 64>}, {pipeline_mode = #tpu.pipeline_mode<synchronous>, transform_indices = @transform_1, window_bounds = array<i64: 64, 1024>}, {pipeline_mode = #tpu.pipeline_mode<synchronous>, transform_indices = @transform_2, window_bounds = array<i64: 1, 1024>}, {pipeline_mode = #tpu.pipeline_mode<synchronous>, transform_indices = @transform_3, window_bounds = array<i64: 1024, 512>}, {pipeline_mode = #tpu.pipeline_mode<synchronous>, transform_indices = @transform_4, window_bounds = array<i64: 1, 512>}, {pipeline_mode = #tpu.pipeline_mode<synchronous>, transform_indices = @transform_5, window_bounds = array<i64: 512, 128>}, {pipeline_mode = #tpu.pipeline_mode<synchronous>, transform_indices = @transform_6, window_bounds = array<i64: 1, 128>}, {transform_indices = @transform_7, window_bounds = array<i64: 16, 128>}]} {
    %c0 = arith.constant 0 : index
    %c0_0 = arith.constant 0 : index
    %0 = vector.load %arg1[%c0, %c0_0] : memref<16x64xf32, #tpu.memory_space<vmem>>, vector<16x64xf32>
    %1 = arith.truncf %0 : vector<16x64xf32> to vector<16x64xbf16>
    %c0_1 = arith.constant 0 : index
    %c0_2 = arith.constant 0 : index
    %2 = vector.load %arg2[%c0_1, %c0_2] : memref<64x1024xbf16, #tpu.memory_space<vmem>>, vector<64x1024xbf16>
    %cst = arith.constant dense<0.000000e+00> : vector<16x1024xf32>
    %3 = tpu.matmul %1, %2, %cst {dimension_numbers = #tpu.dot_dimension_numbers<[1], [0], [0], [1], [0, 0, 1, 1], [], []>} : vector<16x64xbf16>, vector<64x1024xbf16>, vector<16x1024xf32> -> vector<16x1024xf32>
    %c0_3 = arith.constant 0 : index
    %c0_4 = arith.constant 0 : index
    %4 = vector.load %arg3[%c0_3, %c0_4] : memref<1x1024xf32, #tpu.memory_space<vmem>>, vector<1x1024xf32>
    %5 = vector.broadcast %4 : vector<1x1024xf32> to vector<16x1024xf32>
    %6 = arith.addf %3, %5 : vector<16x1024xf32>
    %cst_5 = arith.constant 0.000000e+00 : f32
    %7 = vector.broadcast %cst_5 : f32 to vector<16x1024xf32>
    %8 = arith.maximumf %6, %7 : vector<16x1024xf32>
    %9 = arith.truncf %8 : vector<16x1024xf32> to vector<16x1024xbf16>
    %c0_6 = arith.constant 0 : index
    %c0_7 = arith.constant 0 : index
    %10 = vector.load %arg4[%c0_6, %c0_7] : memref<1024x512xbf16, #tpu.memory_space<vmem>>, vector<1024x512xbf16>
    %cst_8 = arith.constant dense<0.000000e+00> : vector<16x512xf32>
    %11 = tpu.matmul %9, %10, %cst_8 {dimension_numbers = #tpu.dot_dimension_numbers<[1], [0], [0], [1], [0, 0, 1, 1], [], []>} : vector<16x1024xbf16>, vector<1024x512xbf16>, vector<16x512xf32> -> vector<16x512xf32>
    %c0_9 = arith.constant 0 : index
    %c0_10 = arith.constant 0 : index
    %12 = vector.load %arg5[%c0_9, %c0_10] : memref<1x512xf32, #tpu.memory_space<vmem>>, vector<1x512xf32>
    %13 = vector.broadcast %12 : vector<1x512xf32> to vector<16x512xf32>
    %14 = arith.addf %11, %13 : vector<16x512xf32>
    %cst_11 = arith.constant 0.000000e+00 : f32
    %15 = vector.broadcast %cst_11 : f32 to vector<16x512xf32>
    %16 = arith.maximumf %14, %15 : vector<16x512xf32>
    %17 = arith.truncf %16 : vector<16x512xf32> to vector<16x512xbf16>
    %c0_12 = arith.constant 0 : index
    %c0_13 = arith.constant 0 : index
    %18 = vector.load %arg6[%c0_12, %c0_13] : memref<512x128xbf16, #tpu.memory_space<vmem>>, vector<512x128xbf16>
    %cst_14 = arith.constant dense<0.000000e+00> : vector<16x128xf32>
    %19 = tpu.matmul %17, %18, %cst_14 {dimension_numbers = #tpu.dot_dimension_numbers<[1], [0], [0], [1], [0, 0, 1, 1], [], []>} : vector<16x512xbf16>, vector<512x128xbf16>, vector<16x128xf32> -> vector<16x128xf32>
    %c0_15 = arith.constant 0 : index
    %c0_16 = arith.constant 0 : index
    %20 = vector.load %arg7[%c0_15, %c0_16] : memref<1x128xf32, #tpu.memory_space<vmem>>, vector<1x128xf32>
    %21 = vector.broadcast %20 : vector<1x128xf32> to vector<16x128xf32>
    %22 = arith.addf %19, %21 : vector<16x128xf32>
    %23 = arith.truncf %22 : vector<16x128xf32> to vector<16x128xbf16>
    %c0_17 = arith.constant 0 : index
    %c0_18 = arith.constant 0 : index
    %24 = vector.load %arg8[%c0_17, %c0_18] : memref<16x128xbf16, #tpu.memory_space<vmem>>, vector<16x128xbf16>
    tpu.vector_store %arg8[%c0_17, %c0_18], %23 {strides = array<i32>} : memref<16x128xbf16, #tpu.memory_space<vmem>>, vector<16x128xbf16>,
    return
  }
  func.func @transform_0(%arg0: i32) -> (i32, i32) {
    %c0_i32 = arith.constant 0 : i32
    %c0_i32_0 = arith.constant 0 : i32
    return %arg0, %c0_i32 : i32, i32
  }
  func.func @transform_1(%arg0: i32) -> (i32, i32) {
    %c0_i32 = arith.constant 0 : i32
    %c0_i32_0 = arith.constant 0 : i32
    %c0_i32_1 = arith.constant 0 : i32
    return %c0_i32, %c0_i32_0 : i32, i32
  }
  func.func @transform_2(%arg0: i32) -> (i32, i32) {
    %c0_i32 = arith.constant 0 : i32
    %c0_i32_0 = arith.constant 0 : i32
    %c0_i32_1 = arith.constant 0 : i32
    return %c0_i32, %c0_i32_0 : i32, i32
  }
  func.func @transform_3(%arg0: i32) -> (i32, i32) {
    %c0_i32 = arith.constant 0 : i32
    %c0_i32_0 = arith.constant 0 : i32
    %c0_i32_1 = arith.constant 0 : i32
    return %c0_i32, %c0_i32_0 : i32, i32
  }
  func.func @transform_4(%arg0: i32) -> (i32, i32) {
    %c0_i32 = arith.constant 0 : i32
    %c0_i32_0 = arith.constant 0 : i32
    %c0_i32_1 = arith.constant 0 : i32
    return %c0_i32, %c0_i32_0 : i32, i32
  }
  func.func @transform_5(%arg0: i32) -> (i32, i32) {
    %c0_i32 = arith.constant 0 : i32
    %c0_i32_0 = arith.constant 0 : i32
    %c0_i32_1 = arith.constant 0 : i32
    return %c0_i32, %c0_i32_0 : i32, i32
  }
  func.func @transform_6(%arg0: i32) -> (i32, i32) {
    %c0_i32 = arith.constant 0 : i32
    %c0_i32_0 = arith.constant 0 : i32
    %c0_i32_1 = arith.constant 0 : i32
    return %c0_i32, %c0_i32_0 : i32, i32
  }
  func.func @transform_7(%arg0: i32) -> (i32, i32) {
    %c0_i32 = arith.constant 0 : i32
    %c0_i32_0 = arith.constant 0 : i32
    return %arg0, %c0_i32 : i32, i32
  }
}

module attributes {stable_mosaic.version = 11 : i64} {
  func.func @_adaptive_mlp_kernel(%arg0: i32, %arg1: memref<16x64xf32, #tpu.memory_space<vmem>>, %arg2: memref<64x1024xbf16, #tpu.memory_space<vmem>>, %arg3: memref<1x1024xf32, #tpu.memory_space<vmem>>, %arg4: memref<1024x512xbf16, #tpu.memory_space<vmem>>, %arg5: memref<1x512xf32, #tpu.memory_space<vmem>>, %arg6: memref<512x128xbf16, #tpu.memory_space<vmem>>, %arg7: memref<1x128xf32, #tpu.memory_space<vmem>>, %arg8: memref<16x128xbf16, #tpu.memory_space<vmem>>) attributes {dimension_semantics = [#tpu.dimension_semantics<parallel>], iteration_bounds = array<i64: 1>, scalar_prefetch = 0 : i64, scratch_operands = 0 : i64, tpu.core_type = #tpu.core_type<tc>, window_params = [{transform_indices = @transform_0, window_bounds = array<i64: 16, 64>}, {pipeline_mode = #tpu.pipeline_mode<synchronous>, transform_indices = @transform_1, window_bounds = array<i64: 64, 1024>}, {pipeline_mode = #tpu.pipeline_mode<synchronous>, transform_indices = @transform_2, window_bounds = array<i64: 1, 1024>}, {pipeline_mode = #tpu.pipeline_mode<synchronous>, transform_indices = @transform_3, window_bounds = array<i64: 1024, 512>}, {pipeline_mode = #tpu.pipeline_mode<synchronous>, transform_indices = @transform_4, window_bounds = array<i64: 1, 512>}, {pipeline_mode = #tpu.pipeline_mode<synchronous>, transform_indices = @transform_5, window_bounds = array<i64: 512, 128>}, {pipeline_mode = #tpu.pipeline_mode<synchronous>, transform_indices = @transform_6, window_bounds = array<i64: 1, 128>}, {transform_indices = @transform_7, window_bounds = array<i64: 16, 128>}]} {
    %c0 = arith.constant 0 : index
    %c0_0 = arith.constant 0 : index
    %0 = vector.load %arg1[%c0, %c0_0] : memref<16x64xf32, #tpu.memory_space<vmem>>, vector<16x64xf32>
    %1 = arith.truncf %0 : vector<16x64xf32> to vector<16x64xbf16>
    %c0_1 = arith.constant 0 : index
    %c0_2 = arith.constant 0 : index
    %2 = vector.load %arg2[%c0_1, %c0_2] : memref<64x1024xbf16, #tpu.memory_space<vmem>>, vector<64x1024xbf16>
    %cst = arith.constant dense<0.000000e+00> : vector<16x1024xf32>
    %3 = tpu.matmul %1, %2, %cst {dimension_numbers = #tpu.dot_dimension_numbers<[1], [0], [0], [1], [0, 0, 1, 1], [], []>} : vector<16x64xbf16>, vector<64x1024xbf16>, vector<16x1024xf32> -> vector<16x1024xf32>
    %c0_3 = arith.constant 0 : index
    %c0_4 = arith.constant 0 : index
    %4 = vector.load %arg3[%c0_3, %c0_4] : memref<1x1024xf32, #tpu.memory_space<vmem>>, vector<1x1024xf32>
    %5 = vector.broadcast %4 : vector<1x1024xf32> to vector<16x1024xf32>
    %6 = arith.addf %3, %5 : vector<16x1024xf32>
    %cst_5 = arith.constant 0.000000e+00 : f32
    %7 = vector.broadcast %cst_5 : f32 to vector<16x1024xf32>
    %8 = arith.maximumf %6, %7 : vector<16x1024xf32>
    %9 = arith.truncf %8 : vector<16x1024xf32> to vector<16x1024xbf16>
    %c0_6 = arith.constant 0 : index
    %c0_7 = arith.constant 0 : index
    %10 = vector.load %arg4[%c0_6, %c0_7] : memref<1024x512xbf16, #tpu.memory_space<vmem>>, vector<1024x512xbf16>
    %cst_8 = arith.constant dense<0.000000e+00> : vector<16x512xf32>
    %11 = tpu.matmul %9, %10, %cst_8 {dimension_numbers = #tpu.dot_dimension_numbers<[1], [0], [0], [1], [0, 0, 1, 1], [], []>} : vector<16x1024xbf16>, vector<1024x512xbf16>, vector<16x512xf32> -> vector<16x512xf32>
    %c0_9 = arith.constant 0 : index
    %c0_10 = arith.constant 0 : index
    %12 = vector.load %arg5[%c0_9, %c0_10] : memref<1x512xf32, #tpu.memory_space<vmem>>, vector<1x512xf32>
    %13 = vector.broadcast %12 : vector<1x512xf32> to vector<16x512xf32>
    %14 = arith.addf %11, %13 : vector<16x512xf32>
    %cst_11 = arith.constant 0.000000e+00 : f32
    %15 = vector.broadcast %cst_11 : f32 to vector<16x512xf32>
    %16 = arith.maximumf %14, %15 : vector<16x512xf32>
    %17 = arith.truncf %16 : vector<16x512xf32> to vector<16x512xbf16>
    %c0_12 = arith.constant 0 : index
    %c0_13 = arith.constant 0 : index
    %18 = vector.load %arg6[%c0_12, %c0_13] : memref<512x128xbf16, #tpu.memory_space<vmem>>, vector<512x128xbf16>
    %cst_14 = arith.constant dense<0.000000e+00> : vector<16x128xf32>
    %19 = tpu.matmul %17, %18, %cst_14 {dimension_numbers = #tpu.dot_dimension_numbers<[1], [0], [0], [1], [0, 0, 1, 1], [], []>} : vector<16x512xbf16>, vector<512x128xbf16>, vector<16x128xf32> -> vector<16x128xf32>
    %c0_15 = arith.constant 0 : index
    %c0_16 = arith.constant 0 : index
    %20 = vector.load %arg7[%c0_15, %c0_16] : memref<1x128xf32, #tpu.memory_space<vmem>>, vector<1x128xf32>
    %21 = vector.broadcast %20 : vector<1x128xf32> to vector<16x128xf32>
    %22 = arith.addf %19, %21 : vector<16x128xf32>
    %23 = arith.truncf %22 : vector<16x128xf32> to vector<16x128xbf16>
    %c0_17 = arith.constant 0 : index
    %c0_18 = arith.constant 0 : index
    %24 = vector.load %arg8[%c0_17, %c0_18] : memref<16x128xbf16, #tpu.memory_space<vmem>>, vector<16x128xbf16>
    tpu.vector_store %arg8[%c0_17, %c0_18], %23 {strides = array<i32>} : memref<16x128xbf16, #tpu.memory_space<vmem>>, vector<16x128xbf16>,
    return
  }
  func.func @transform_0(%arg0: i32) -> (i32, i32) {
    %c0_i32 = arith.constant 0 : i32
    %c0_i32_0 = arith.constant 0 : i32
    return %arg0, %c0_i32 : i32, i32
  }
  func.func @transform_1(%arg0: i32) -> (i32, i32) {
    %c0_i32 = arith.constant 0 : i32
    %c0_i32_0 = arith.constant 0 : i32
    %c0_i32_1 = arith.constant 0 : i32
    return %c0_i32, %c0_i32_0 : i32, i32
  }
  func.func @transform_2(%arg0: i32) -> (i32, i32) {
    %c0_i32 = arith.constant 0 : i32
    %c0_i32_0 = arith.constant 0 : i32
    %c0_i32_1 = arith.constant 0 : i32
    return %c0_i32, %c0_i32_0 : i32, i32
  }
  func.func @transform_3(%arg0: i32) -> (i32, i32) {
    %c0_i32 = arith.constant 0 : i32
    %c0_i32_0 = arith.constant 0 : i32
    %c0_i32_1 = arith.constant 0 : i32
    return %c0_i32, %c0_i32_0 : i32, i32
  }
  func.func @transform_4(%arg0: i32) -> (i32, i32) {
    %c0_i32 = arith.constant 0 : i32
    %c0_i32_0 = arith.constant 0 : i32
    %c0_i32_1 = arith.constant 0 : i32
    return %c0_i32, %c0_i32_0 : i32, i32
  }
  func.func @transform_5(%arg0: i32) -> (i32, i32) {
    %c0_i32 = arith.constant 0 : i32
    %c0_i32_0 = arith.constant 0 : i32
    %c0_i32_1 = arith.constant 0 : i32
    return %c0_i32, %c0_i32_0 : i32, i32
  }
  func.func @transform_6(%arg0: i32) -> (i32, i32) {
    %c0_i32 = arith.constant 0 : i32
    %c0_i32_0 = arith.constant 0 : i32
    %c0_i32_1 = arith.constant 0 : i32
    return %c0_i32, %c0_i32_0 : i32, i32
  }
  func.func @transform_7(%arg0: i32) -> (i32, i32) {
    %c0_i32 = arith.constant 0 : i32
    %c0_i32_0 = arith.constant 0 : i32
    return %arg0, %c0_i32 : i32, i32
  }
}

</mosaic_0001>

<bundles_post_ra>
// kernel: _forward_impl.1
= control target key start
LH: loop header
LB: loop body
LE: loop exit
PB: predicated region body
PF: predicated region fallthrough
CT: control target
= control target key end

     0   :  { %12 = vsyncpa [#allocation3], 0  ;;  %s4792_s0 = inlined_call_operand.hbm [shape: f32[16,64], index: 0, kind: input, shape index: {}]   ;;  %s4793_s1 = inlined_call_operand.hbm [shape: bf16[64,1024], index: 1, kind: input, shape index: {}]   ;;  %s4794_s2 = inlined_call_operand.hbm [shape: f32[1,1024], index: 2, kind: input, shape index: {}]   ;;  %s4795_s3 = inlined_call_operand.hbm [shape: bf16[1024,512], index: 3, kind: input, shape index: {}]   ;;  %s4796_s4 = inlined_call_operand.hbm [shape: f32[1,512], index: 4, kind: input, shape index: {}]   ;;  %s4797_s5 = inlined_call_operand.hbm [shape: bf16[512,128], index: 5, kind: input, shape index: {}]   ;;  %s4798_s6 = inlined_call_operand.vmem [shape: f32[1,128], index: 6, kind: input, shape index: {}]   ;;  %s4799_s7 = inlined_call_operand.vmem [shape: bf16[16,128], index: 7, kind: output, shape index: {}]  }
   0x1   :  { %13 = vsyncpa [#allocation5], 0 }
   0x2   :  { %14 = vsyncpa [#allocation8], 0  ;;  %s33_s26 = sshll.u32 %s4793_s1, 4  ;;  %s34_s26 = int_to_ptr.hbm [resolvable:$true] %s33_s26 }
   0x3   :  { %15 = vsyncpa [#allocation11], 0  ;;  %s4584_s27 = smov [#allocation4]   ;;  %s57_s8 = sshll.u32 %s4795_s3, 4  ;;  %s58_s8 = int_to_ptr.hbm [resolvable:$true] %s57_s8 }
   0x4   :  { %s35_s28 = sshll.u32 %s4584_s27, 4  ;;  %s4585_s9 = smov 512   ;;  %s36_s28 = int_to_ptr.vmem [resolvable:$true] %s35_s28 }
   0x5   :  { %s4586_s10 = smov 32   ;;  %s4587_s11 = smov [#allocation7]  }
   0x6   :  { %41 = dma.hbm_to_vmem [thread:$0]  %s34_s26, 4096, %s36_s28, [#allocation5], %s4585_s9, %s4585_s9, %s4586_s10  }
   0x7   :  { %s59_s12 = sshll.u32 %s4587_s11, 4  ;;  %s4588_s13 = smov 256   ;;  %s60_s12 = int_to_ptr.vmem [resolvable:$true] %s59_s12 }
   0x8   :  { %s4589_s14 = smov 16   ;;  %s20_s16 = sshll.u32 %s4792_s0, 4  ;;  %s21_s16 = int_to_ptr.hbm [resolvable:$true] %s20_s16 }
   0x9   :  { %65 = dma.hbm_to_vmem [thread:$0]  %s58_s8, 32768, %s60_s12, [#allocation8], %s4588_s13, %s4588_s13, %s4589_s14  }
   0xa   :  { %s4590_s17 = smov [#allocation2]   ;;  %s47_s20 = sshll.u32 %s4794_s2, 4  ;;  %s48_s20 = int_to_ptr.hbm [resolvable:$true] %s47_s20 }
   0xb   :  { %s22_s18 = sshll.u32 %s4590_s17, 4  ;;  %s4591_s21 = smov 128   ;;  %s23_s18 = int_to_ptr.vmem [resolvable:$true] %s22_s18 }
   0xc   :  { %s4592_s22 = smov 8   ;;  %s4593_s23 = smov [#allocation6]  }
   0xd   :  { %28 = dma.hbm_to_vmem [thread:$0]  %s21_s16, 256, %s23_s18, [#allocation3], %s4591_s21, %s4591_s21, %s4592_s22  }
   0xe   :  { %s49_s24 = sshll.u32 %s4593_s23, 4  ;;  %s71_s27 = sshll.u32 %s4796_s4, 4  ;;  %s50_s24 = int_to_ptr.vmem [resolvable:$true] %s49_s24  ;;  %s72_s27 = int_to_ptr.hbm [resolvable:$true] %s71_s27 }
   0xf   :  { %52 = dma.hbm_to_vmem [thread:$0]  %s48_s20, 128, %s50_s24, [#allocation5]  }
  0x10   :  { %s81_s29 = sshll.u32 %s4797_s5, 4  ;;  %s4594_s30 = smov [#allocation9]   ;;  %s82_s29 = int_to_ptr.hbm [resolvable:$true] %s81_s29 }
  0x11   :  { %s73_s8 = sshll.u32 %s4594_s30, 4  ;;  %s4595_s2 = smov [#allocation10]   ;;  %s74_s8 = int_to_ptr.vmem [resolvable:$true] %s73_s8 }
  0x12   :  { %76 = dma.hbm_to_vmem [thread:$0]  %s72_s27, 64, %s74_s8, [#allocation8]  }
  0x13   :  { %s83_s9 = sshll.u32 %s4595_s2, 4  ;;  %s4596_s10 = smov 64   ;;  %s84_s9 = int_to_ptr.vmem [resolvable:$true] %s83_s9 }
  0x14   :  { %s4597_s11 = smov 4  }
  0x15   :  { %89 = dma.hbm_to_vmem [thread:$0]  %s82_s29, 4096, %s84_s9, [#allocation11], %s4596_s10, %s4596_s10, %s4597_s11  }
  0x16   :  { %4576 = dma.done.wait [#allocation3], 256  }
  0x17   :  { %4577 = vsyncadd [#allocation3], 4294967040 }
  0x18   :  { %4578 = dma.done.wait [#allocation5], 4224  }
  0x19   :  { %4579 = vsyncadd [#allocation5], 4294963072 }
  0x1a   :  { %4580 = dma.done.wait [#allocation8], 32832  }
  0x1b   :  { %4581 = vsyncadd [#allocation8], 4294934464 }
  0x1c   :  { %4582 = dma.done.wait [#allocation11], 4096  }
  0x1d   :  { %4583 = vsyncadd [#allocation11], 4294963200  ;;  %v2902_v0 = vld [vmem:[#allocation4 + $0xc0] sm:$0xf]  ;;  %v4116_v2 = vld [vmem:[#allocation4 + $0xc4] sm:$0xf] }
  0x1e   :  { %v4120_v1 = vld [vmem:[#allocation4 + $0xdc] sm:$0xf0]  ;;  %v2904_v4 = vld [vmem:[#allocation4 + $0xe0] sm:$0xf0]  ;;  %v2910_v5 = vld [vmem:[#allocation4 + $0xc8] sm:$0xf] }
  0x1f   :  { %v2903_v3 = vor.u32 %v4120_v1, %v2902_v0  ;;  %v4121_v6 = vld [vmem:[#allocation4 + $0xe4] sm:$0xf0]  ;;  %v2907_v7 = vor.u32 %v4116_v2, %v2904_v4  ;;  %v4117_v9 = vld [vmem:[#allocation4 + $0xcc] sm:$0xf]  ;;  %v2870_v11 = vld [vmem:[#allocation4 + $0x80] sm:$0xf] }
  0x20   :  { %v2911_v8 = vor.u32 %v4121_v6, %v2910_v5  ;;  %v2912_v10 = vld [vmem:[#allocation4 + $0xe8] sm:$0xf0]  ;;  %v4112_v13 = vld [vmem:[#allocation4 + $0x9c] sm:$0xf0]  ;;  %v4108_v14 = vld [vmem:[#allocation4 + $0x84] sm:$0xf] }
  0x21   :  { %338 = vmatpush.bf16.msra.mxu0 %v2903_v3  ;;  %v2915_v12 = vor.u32 %v4117_v9, %v2912_v10  ;;  %v2872_v15 = vld [vmem:[#allocation4 + $0xa0] sm:$0xf0]  ;;  %352 = vmatpush.bf16.msra.mxu1 %v2907_v7  ;;  %v2871_v16 = vor.u32 %v4112_v13, %v2870_v11  ;;  %v2878_v18 = vld [vmem:[#allocation4 + $0x88] sm:$0xf]  ;;  %v4109_v20 = vld [vmem:[#allocation4 + $0x8c] sm:$0xf] }
  0x22   :  { %366 = vmatpush.bf16.msra.mxu2 %v2911_v8  ;;  %v2875_v17 = vor.u32 %v4108_v14, %v2872_v15  ;;  %v4113_v19 = vld [vmem:[#allocation4 + $0xa4] sm:$0xf0]  ;;  %v2880_v22 = vld [vmem:[#allocation4 + $0xa8] sm:$0xf0]  ;;  %v2838_v23 = vld [vmem:[#allocation4 + $0x40] sm:$0xf] }
  0x23   :  { %380 = vmatpush.bf16.msra.mxu3 %v2915_v12  ;;  %v2879_v21 = vor.u32 %v4113_v19, %v2878_v18  ;;  %v4104_v24 = vld [vmem:[#allocation4 + $0x5c] sm:$0xf0]  ;;  %v2883_v25 = vor.u32 %v4109_v20, %v2880_v22  ;;  %v4100_v26 = vld [vmem:[#allocation4 + $0x44] sm:$0xf]  ;;  %v2846_v28 = vld [vmem:[#allocation4 + $0x48] sm:$0xf] }
  0x24   :  { %v2840_v27 = vld [vmem:[#allocation4 + $0x60] sm:$0xf0]  ;;  %v2839_v29 = vor.u32 %v4104_v24, %v2838_v23  ;;  %v4105_v30 = vld [vmem:[#allocation4 + $0x64] sm:$0xf0]  ;;  %v4101_v31 = vld [vmem:[#allocation4 + $0x4c] sm:$0xf] }
  0x25   :  { %339 = vmatpush.bf16.msra.mxu0 %v2871_v16  ;;  %v2848_v32 = vld [vmem:[#allocation4 + $0x68] sm:$0xf0]  ;;  %353 = vmatpush.bf16.msra.mxu1 %v2875_v17  ;;  %v2843_v33 = vor.u32 %v4100_v26, %v2840_v27  ;;  %v2847_v34 = vor.u32 %v4105_v30, %v2846_v28  ;;  %v2806_v35 = vld [vmem:[#allocation4] sm:$0xf]  ;;  %v4092_v37 = vld [vmem:[#allocation4 + $0x4] sm:$0xf] }
  0x26   :  { %367 = vmatpush.bf16.msra.mxu2 %v2879_v21  ;;  %v4096_v36 = vld [vmem:[#allocation4 + $0x1c] sm:$0xf0]  ;;  %v2851_v38 = vor.u32 %v4101_v31, %v2848_v32  ;;  %v2808_v39 = vld [vmem:[#allocation4 + $0x20] sm:$0xf0]  ;;  %v2814_v40 = vld [vmem:[#allocation4 + $0x8] sm:$0xf] }
  0x27   :  { %381 = vmatpush.bf16.msra.mxu3 %v2883_v25  ;;  %v4097_v41 = vld [vmem:[#allocation4 + $0x24] sm:$0xf0]  ;;  %v4093_v42 = vld [vmem:[#allocation4 + $0xc] sm:$0xf]  ;;  %v117_v44 = vld [vmem:[#allocation2] sm:$0xff]  ;;  %v2807_v45 = vor.u32 %v4096_v36, %v2806_v35  ;;  %v2811_v49 = vor.u32 %v4092_v37, %v2808_v39  ;;  %vm330_vm0 = vcmask 523264  }
  0x28   :  { %v2816_v43 = vld [vmem:[#allocation4 + $0x28] sm:$0xf0]  ;;  %v118_v46 = vld [vmem:[#allocation2 + $0x8] sm:$0xff]  ;;  %v2918_v47 = vld [vmem:[#allocation4 + $0xd0] sm:$0xf]  ;;  %v2815_v50 = vor.u32 %v4097_v41, %v2814_v40 }
  0x29   :  { %340 = vmatpush.bf16.msra.mxu0 %v2839_v29  ;;  %v4122_v48 = vld [vmem:[#allocation4 + $0xec] sm:$0xf0]  ;;  %354 = vmatpush.bf16.msra.mxu1 %v2843_v33  ;;  %v4118_v51 = vld [vmem:[#allocation4 + $0xd4] sm:$0xf]  ;;  %v2819_v53 = vor.u32 %v4093_v42, %v2816_v43  ;;  %v2926_v55 = vld [vmem:[#allocation4 + $0xd8] sm:$0xf]  ;;  %v4656_v58 = vpack.c.bf16 %v118_v46, %v117_v44 }
  0x2a   :  { %368 = vmatpush.bf16.msra.mxu2 %v2847_v34  ;;  %v2920_v52 = vld [vmem:[#allocation4 + $0xf0] sm:$0xf0]  ;;  %v2919_v54 = vor.u32 %v4122_v48, %v2918_v47  ;;  %v4123_v56 = vld [vmem:[#allocation4 + $0xf4] sm:$0xf0]  ;;  %v4119_v57 = vld [vmem:[#allocation4 + $0xdc] sm:$0xf] }
  0x2b   :  { %382 = vmatpush.bf16.msra.mxu3 %v2851_v38  ;;  %v2923_v59 = vor.u32 %v4118_v51, %v2920_v52  ;;  %v2928_v60 = vld [vmem:[#allocation4 + $0xf8] sm:$0xf0]  ;;  %v2886_v61 = vld [vmem:[#allocation4 + $0x90] sm:$0xf]  ;;  %v4110_v63 = vld [vmem:[#allocation4 + $0x94] sm:$0xf]  ;;  %v2927_v1 = vor.u32 %v4123_v56, %v2926_v55 }
  0x2c   :  { %v4114_v62 = vld [vmem:[#allocation4 + $0xac] sm:$0xf0]  ;;  %v2888_v0 = vld [vmem:[#allocation4 + $0xb0] sm:$0xf0]  ;;  %v2931_v2 = vor.u32 %v4119_v57, %v2928_v60  ;;  %v2894_v4 = vld [vmem:[#allocation4 + $0x98] sm:$0xf] }
  0x2d   :  { %341 = vmatpush.bf16.msra.mxu0 %v2807_v45  ;;  %355 = vmatpush.bf16.msra.mxu1 %v2811_v49  ;;  %v2887_v3 = vor.u32 %v4114_v62, %v2886_v61  ;;  %v4115_v5 = vld [vmem:[#allocation4 + $0xb4] sm:$0xf0]  ;;  %v4111_v6 = vld [vmem:[#allocation4 + $0x9c] sm:$0xf]  ;;  %v2891_v7 = vor.u32 %v4110_v63, %v2888_v0  ;;  %v2854_v9 = vld [vmem:[#allocation4 + $0x50] sm:$0xf] }
  0x2e   :  { %369 = vmatpush.bf16.msra.mxu2 %v2815_v50  ;;  %v2896_v8 = vld [vmem:[#allocation4 + $0xb8] sm:$0xf0]  ;;  %v4106_v10 = vld [vmem:[#allocation4 + $0x6c] sm:$0xf0]  ;;  %v4102_v11 = vld [vmem:[#allocation4 + $0x54] sm:$0xf]  ;;  %v2895_v13 = vor.u32 %v4115_v5, %v2894_v4 }
  0x2f   :  { %383 = vmatpush.bf16.msra.mxu3 %v2819_v53  ;;  %v2856_v12 = vld [vmem:[#allocation4 + $0x70] sm:$0xf0]  ;;  %v2862_v14 = vld [vmem:[#allocation4 + $0x58] sm:$0xf]  ;;  %v2899_v15 = vor.u32 %v4111_v6, %v2896_v8  ;;  %v2855_v16 = vor.u32 %v4106_v10, %v2854_v9  ;;  %v4103_v18 = vld [vmem:[#allocation4 + $0x5c] sm:$0xf] }
  0x30   :  { %2932 = vmatmul.msk.bf16.vlgmr.msra.gmra.mxu0 %vm330_vm0, %v4656_v58  ;;  %2933 = vmatmul.msk.bf16.vlgmr.msra.gmra.mxu1 %vm330_vm0, %v4656_v58  ;;  %v4107_v17 = vld [vmem:[#allocation4 + $0x74] sm:$0xf0]  ;;  %v2864_v19 = vld [vmem:[#allocation4 + $0x78] sm:$0xf0]  ;;  %v2859_v20 = vor.u32 %v4102_v11, %v2856_v12  ;;  %v2822_v21 = vld [vmem:[#allocation4 + $0x10] sm:$0xf] }
  0x31   :  { %394 = vmatpush.bf16.msrb.mxu0 %v2919_v54  ;;  %408 = vmatpush.bf16.msrb.mxu1 %v2923_v59  ;;  %v4098_v22 = vld [vmem:[#allocation4 + $0x2c] sm:$0xf0]  ;;  %v4094_v23 = vld [vmem:[#allocation4 + $0x14] sm:$0xf]  ;;  %v3054_v25 = vld [vmem:[#allocation7 + $0xe0] sm:$0xf]  ;;  %v2863_v27 = vor.u32 %v4107_v17, %v2862_v14  ;;  %v2867_v30 = vor.u32 %v4103_v18, %v2864_v19 }
  0x32   :  { %2934 = vmatmul.msk.bf16.vlgmr.msra.gmra.mxu2 %vm330_vm0, %v4656_v58  ;;  %2935 = vmatmul.msk.bf16.vlgmr.msra.gmra.mxu3 %vm330_vm0, %v4656_v58  ;;  %v2824_v24 = vld [vmem:[#allocation4 + $0x30] sm:$0xf0]  ;;  %v4154_v26 = vld [vmem:[#allocation7 + $0xec] sm:$0xf0]  ;;  %v3182_v28 = vld [vmem:[#allocation7 + $0x1e0] sm:$0xf]  ;;  %v2823_v31 = vor.u32 %v4098_v22, %v2822_v21 }
  0x33   :  { %422 = vmatpush.bf16.msrb.mxu2 %v2927_v1  ;;  %436 = vmatpush.bf16.msrb.mxu3 %v2931_v2  ;;  %v4186_v29 = vld [vmem:[#allocation7 + $0x1ec] sm:$0xf0]  ;;  %v4095_v34 = vld [vmem:[#allocation4 + $0x1c] sm:$0xf]  ;;  %v2827_v35 = vor.u32 %v4094_v23, %v2824_v24  ;;  %v3055_v37 = vor.u32 %v4154_v26, %v3054_v25  ;;  %v3310_v38 = vld [vmem:[#allocation7 + $0x2e0] sm:$0xf] }
  0x34   :  { %v2830_v32 = vld [vmem:[#allocation4 + $0x18] sm:$0xf]  ;;  %v2832_v36 = vld [vmem:[#allocation4 + $0x38] sm:$0xf0]  ;;  %v3183_v40 = vor.u32 %v4186_v29, %v3182_v28  ;;  %v3438_v41 = vld [vmem:[#allocation7 + $0x3e0] sm:$0xf] }
  0x35   :  { %395 = vmatpush.bf16.msrb.mxu0 %v2887_v3  ;;  %409 = vmatpush.bf16.msrb.mxu1 %v2891_v7  ;;  %v4099_v33 = vld [vmem:[#allocation4 + $0x34] sm:$0xf0]  ;;  %v2835_v44 = vor.u32 %v4095_v34, %v2832_v36  ;;  %v3038_v45 = vld [vmem:[#allocation7 + $0xc0] sm:$0xf] }
  0x36   :  { %v4218_v39 = vld [vmem:[#allocation7 + $0x2ec] sm:$0xf0]  ;;  %v2831_v43 = vor.u32 %v4099_v33, %v2830_v32  ;;  %v3166_v47 = vld [vmem:[#allocation7 + $0x1c0] sm:$0xf] }
  0x37   :  { %423 = vmatpush.bf16.msrb.mxu2 %v2895_v13  ;;  %437 = vmatpush.bf16.msrb.mxu3 %v2899_v15  ;;  %v4250_v42 = vld [vmem:[#allocation7 + $0x3ec] sm:$0xf0]  ;;  %v3311_v48 = vor.u32 %v4218_v39, %v3310_v38  ;;  %v3294_v51 = vld [vmem:[#allocation7 + $0x2c0] sm:$0xf] }
  0x38   :  { %v4150_v46 = vld [vmem:[#allocation7 + $0xcc] sm:$0xf0]  ;;  %v3439_v50 = vor.u32 %v4250_v42, %v3438_v41  ;;  %v3422_v53 = vld [vmem:[#allocation7 + $0x3c0] sm:$0xf] }
  0x39   :  { %396 = vmatpush.bf16.msrb.mxu0 %v2855_v16  ;;  %410 = vmatpush.bf16.msrb.mxu1 %v2859_v20  ;;  %v4182_v49 = vld [vmem:[#allocation7 + $0x1cc] sm:$0xf0]  ;;  %v3039_v55 = vor.u32 %v4150_v46, %v3038_v45  ;;  %v3022_v57 = vld [vmem:[#allocation7 + $0xa0] sm:$0xf] }
  0x3a   :  { %v4214_v52 = vld [vmem:[#allocation7 + $0x2cc] sm:$0xf0]  ;;  %v3167_v56 = vor.u32 %v4182_v49, %v3166_v47  ;;  %v3150_v60 = vld [vmem:[#allocation7 + $0x1a0] sm:$0xf] }
  0x3b   :  { %424 = vmatpush.bf16.msrb.mxu2 %v2863_v27  ;;  %438 = vmatpush.bf16.msrb.mxu3 %v2867_v30  ;;  %v4246_v54 = vld [vmem:[#allocation7 + $0x3cc] sm:$0xf0]  ;;  %v3295_v61 = vor.u32 %v4214_v52, %v3294_v51  ;;  %v3278_v0 = vld [vmem:[#allocation7 + $0x2a0] sm:$0xf] }
  0x3c   :  { %v4146_v59 = vld [vmem:[#allocation7 + $0xac] sm:$0xf0]  ;;  %v3423_v63 = vor.u32 %v4246_v54, %v3422_v53  ;;  %v3406_v2 = vld [vmem:[#allocation7 + $0x3a0] sm:$0xf] }
  0x3d   :  { %397 = vmatpush.bf16.msrb.mxu0 %v2823_v31  ;;  %411 = vmatpush.bf16.msrb.mxu1 %v2827_v35  ;;  %v4178_v62 = vld [vmem:[#allocation7 + $0x1ac] sm:$0xf0]  ;;  %v3023_v4 = vor.u32 %v4146_v59, %v3022_v57  ;;  %v3006_v6 = vld [vmem:[#allocation7 + $0x80] sm:$0xf] }
  0x3e   :  { %v4210_v1 = vld [vmem:[#allocation7 + $0x2ac] sm:$0xf0]  ;;  %v3151_v5 = vor.u32 %v4178_v62, %v3150_v60  ;;  %v3134_v8 = vld [vmem:[#allocation7 + $0x180] sm:$0xf] }
  0x3f   :  { %425 = vmatpush.bf16.msrb.mxu2 %v2831_v43  ;;  %439 = vmatpush.bf16.msrb.mxu3 %v2835_v44  ;;  %v4242_v3 = vld [vmem:[#allocation7 + $0x3ac] sm:$0xf0]  ;;  %v3279_v9 = vor.u32 %v4210_v1, %v3278_v0  ;;  %v3262_v12 = vld [vmem:[#allocation7 + $0x280] sm:$0xf] }
  0x40   :  { %2936 = vmatmul.msk.bf16.vlgmr.msrb.gmra.mxu0 %vm330_vm0, %v4656_v58  ;;  %2937 = vmatmul.msk.bf16.vlgmr.msrb.gmra.mxu1 %vm330_vm0, %v4656_v58  ;;  %v4142_v7 = vld [vmem:[#allocation7 + $0x8c] sm:$0xf0]  ;;  %v3407_v11 = vor.u32 %v4242_v3, %v3406_v2  ;;  %v3390_v14 = vld [vmem:[#allocation7 + $0x380] sm:$0xf] }
  0x41   :  { %2016 = vmatpush.bf16.msra.mxu0 %v3055_v37  ;;  %2030 = vmatpush.bf16.msra.mxu1 %v3183_v40  ;;  %v4174_v10 = vld [vmem:[#allocation7 + $0x18c] sm:$0xf0]  ;;  %v3007_v16 = vor.u32 %v4142_v7, %v3006_v6  ;;  %v2990_v17 = vld [vmem:[#allocation7 + $0x60] sm:$0xf] }
  0x42   :  { %2938 = vmatmul.msk.bf16.vlgmr.msrb.gmra.mxu2 %vm330_vm0, %v4656_v58  ;;  %2939 = vmatmul.msk.bf16.vlgmr.msrb.gmra.mxu3 %vm330_vm0, %v4656_v58  ;;  %v4206_v13 = vld [vmem:[#allocation7 + $0x28c] sm:$0xf0]  ;;  %v3135_v58 = vor.u32 %v4174_v10, %v3134_v8  ;;  %v3118_v19 = vld [vmem:[#allocation7 + $0x160] sm:$0xf] }
  0x43   :  { %2044 = vmatpush.bf16.msra.mxu2 %v3311_v48  ;;  %2058 = vmatpush.bf16.msra.mxu3 %v3439_v50  ;;  %v4238_v15 = vld [vmem:[#allocation7 + $0x38c] sm:$0xf0]  ;;  %v3263_v20 = vor.u32 %v4206_v13, %v3262_v12  ;;  %v3246_v23 = vld [vmem:[#allocation7 + $0x260] sm:$0xf] }
  0x44   :  { %v4138_v18 = vld [vmem:[#allocation7 + $0x6c] sm:$0xf0]  ;;  %v3391_v22 = vor.u32 %v4238_v15, %v3390_v14  ;;  %v3374_v25 = vld [vmem:[#allocation7 + $0x360] sm:$0xf] }
  0x45   :  { %2017 = vmatpush.bf16.msra.mxu0 %v3039_v55  ;;  %2031 = vmatpush.bf16.msra.mxu1 %v3167_v56  ;;  %v4170_v21 = vld [vmem:[#allocation7 + $0x16c] sm:$0xf0]  ;;  %v2991_v27 = vor.u32 %v4138_v18, %v2990_v17  ;;  %v2974_v29 = vld [vmem:[#allocation7 + $0x40] sm:$0xf] }
  0x46   :  { %v4202_v24 = vld [vmem:[#allocation7 + $0x26c] sm:$0xf0]  ;;  %v3119_v28 = vor.u32 %v4170_v21, %v3118_v19  ;;  %v3102_v31 = vld [vmem:[#allocation7 + $0x140] sm:$0xf] }
  0x47   :  { %2045 = vmatpush.bf16.msra.mxu2 %v3295_v61  ;;  %2059 = vmatpush.bf16.msra.mxu3 %v3423_v63  ;;  %v4234_v26 = vld [vmem:[#allocation7 + $0x36c] sm:$0xf0]  ;;  %v3247_v32 = vor.u32 %v4202_v24, %v3246_v23  ;;  %v3230_v35 = vld [vmem:[#allocation7 + $0x240] sm:$0xf] }
  0x48   :  { %v4134_v30 = vld [vmem:[#allocation7 + $0x4c] sm:$0xf0]  ;;  %v3375_v34 = vor.u32 %v4234_v26, %v3374_v25  ;;  %v3358_v37 = vld [vmem:[#allocation7 + $0x340] sm:$0xf] }
  0x49   :  { %2018 = vmatpush.bf16.msra.mxu0 %v3023_v4  ;;  %2032 = vmatpush.bf16.msra.mxu1 %v3151_v5  ;;  %v4166_v33 = vld [vmem:[#allocation7 + $0x14c] sm:$0xf0]  ;;  %v2975_v39 = vor.u32 %v4134_v30, %v2974_v29  ;;  %v2958_v41 = vld [vmem:[#allocation7 + $0x20] sm:$0xf] }
  0x4a   :  { %v4198_v36 = vld [vmem:[#allocation7 + $0x24c] sm:$0xf0]  ;;  %v3103_v40 = vor.u32 %v4166_v33, %v3102_v31  ;;  %v3086_v43 = vld [vmem:[#allocation7 + $0x120] sm:$0xf] }
  0x4b   :  { %2046 = vmatpush.bf16.msra.mxu2 %v3279_v9  ;;  %2060 = vmatpush.bf16.msra.mxu3 %v3407_v11  ;;  %v4230_v38 = vld [vmem:[#allocation7 + $0x34c] sm:$0xf0]  ;;  %v3231_v44 = vor.u32 %v4198_v36, %v3230_v35  ;;  %v3214_v47 = vld [vmem:[#allocation7 + $0x220] sm:$0xf] }
  0x4c   :  { %v4130_v42 = vld [vmem:[#allocation7 + $0x2c] sm:$0xf0]  ;;  %v3359_v46 = vor.u32 %v4230_v38, %v3358_v37  ;;  %v3342_v49 = vld [vmem:[#allocation7 + $0x320] sm:$0xf] }
  0x4d   :  { %2019 = vmatpush.bf16.msra.mxu0 %v3007_v16  ;;  %2033 = vmatpush.bf16.msra.mxu1 %v3135_v58  ;;  %v4162_v45 = vld [vmem:[#allocation7 + $0x12c] sm:$0xf0]  ;;  %v2959_v51 = vor.u32 %v4130_v42, %v2958_v41  ;;  %v2942_v52 = vld [vmem:[#allocation7] sm:$0xf] }
  0x4e   :  { %v4194_v48 = vld [vmem:[#allocation7 + $0x22c] sm:$0xf0]  ;;  %v3087_v54 = vor.u32 %v4162_v45, %v3086_v43  ;;  %v3070_v55 = vld [vmem:[#allocation7 + $0x100] sm:$0xf] }
  0x4f   :  { %2047 = vmatpush.bf16.msra.mxu2 %v3263_v20  ;;  %2061 = vmatpush.bf16.msra.mxu3 %v3391_v22  ;;  %v4226_v50 = vld [vmem:[#allocation7 + $0x32c] sm:$0xf0]  ;;  %v3566_v57 = vld [vmem:[#allocation7 + $0x4e0] sm:$0xf]  ;;  %v3215_v59 = vor.u32 %v4194_v48, %v3214_v47 }
  0x50   :  { %v4126_v53 = vld [vmem:[#allocation7 + $0xc] sm:$0xf0]  ;;  %v3694_v61 = vld [vmem:[#allocation7 + $0x5e0] sm:$0xf]  ;;  %v3343_v63 = vor.u32 %v4226_v50, %v3342_v49 }
  0x51   :  { %2020 = vmatpush.bf16.msra.mxu0 %v2991_v27  ;;  %2034 = vmatpush.bf16.msra.mxu1 %v3119_v28  ;;  %v4158_v56 = vld [vmem:[#allocation7 + $0x10c] sm:$0xf0]  ;;  %v3198_v0 = vld [vmem:[#allocation7 + $0x200] sm:$0xf]  ;;  %v2943_v3 = vor.u32 %v4126_v53, %v2942_v52 }
  0x52   :  { %v4282_v60 = vld [vmem:[#allocation7 + $0x4ec] sm:$0xf0]  ;;  %v3326_v2 = vld [vmem:[#allocation7 + $0x300] sm:$0xf]  ;;  %v3071_v7 = vor.u32 %v4158_v56, %v3070_v55 }
  0x53   :  { %2048 = vmatpush.bf16.msra.mxu2 %v3247_v32  ;;  %2062 = vmatpush.bf16.msra.mxu3 %v3375_v34  ;;  %v4314_v62 = vld [vmem:[#allocation7 + $0x5ec] sm:$0xf0]  ;;  %v3822_v5 = vld [vmem:[#allocation7 + $0x6e0] sm:$0xf]  ;;  %v3567_v8 = vor.u32 %v4282_v60, %v3566_v57 }
  0x54   :  { %v4190_v1 = vld [vmem:[#allocation7 + $0x20c] sm:$0xf0]  ;;  %v3950_v9 = vld [vmem:[#allocation7 + $0x7e0] sm:$0xf]  ;;  %v3695_v11 = vor.u32 %v4314_v62, %v3694_v61 }
  0x55   :  { %2021 = vmatpush.bf16.msra.mxu0 %v2975_v39  ;;  %2035 = vmatpush.bf16.msra.mxu1 %v3103_v40  ;;  %v4222_v4 = vld [vmem:[#allocation7 + $0x30c] sm:$0xf0]  ;;  %v3550_v12 = vld [vmem:[#allocation7 + $0x4c0] sm:$0xf]  ;;  %v3199_v14 = vor.u32 %v4190_v1, %v3198_v0 }
  0x56   :  { %v4346_v6 = vld [vmem:[#allocation7 + $0x6ec] sm:$0xf0]  ;;  %v3678_v15 = vld [vmem:[#allocation7 + $0x5c0] sm:$0xf]  ;;  %v3327_v58 = vor.u32 %v4222_v4, %v3326_v2 }
  0x57   :  { %2049 = vmatpush.bf16.msra.mxu2 %v3231_v44  ;;  %2063 = vmatpush.bf16.msra.mxu3 %v3359_v46  ;;  %v4378_v10 = vld [vmem:[#allocation7 + $0x7ec] sm:$0xf0]  ;;  %v3823_v17 = vor.u32 %v4346_v6, %v3822_v5  ;;  %v3806_v19 = vld [vmem:[#allocation7 + $0x6c0] sm:$0xf] }
  0x58   :  { %v4278_v13 = vld [vmem:[#allocation7 + $0x4cc] sm:$0xf0]  ;;  %v3951_v18 = vor.u32 %v4378_v10, %v3950_v9  ;;  %v3934_v22 = vld [vmem:[#allocation7 + $0x7c0] sm:$0xf] }
  0x59   :  { %2022 = vmatpush.bf16.msra.mxu0 %v2959_v51  ;;  %2036 = vmatpush.bf16.msra.mxu1 %v3087_v54  ;;  %v4310_v16 = vld [vmem:[#allocation7 + $0x5cc] sm:$0xf0]  ;;  %v3551_v21 = vor.u32 %v4278_v13, %v3550_v12  ;;  %v3534_v25 = vld [vmem:[#allocation7 + $0x4a0] sm:$0xf] }
  0x5a   :  { %v4342_v20 = vld [vmem:[#allocation7 + $0x6cc] sm:$0xf0]  ;;  %v3679_v24 = vor.u32 %v4310_v16, %v3678_v15  ;;  %v3662_v27 = vld [vmem:[#allocation7 + $0x5a0] sm:$0xf] }
  0x5b   :  { %2050 = vmatpush.bf16.msra.mxu2 %v3215_v59  ;;  %2064 = vmatpush.bf16.msra.mxu3 %v3343_v63  ;;  %v4374_v23 = vld [vmem:[#allocation7 + $0x7cc] sm:$0xf0]  ;;  %v3807_v29 = vor.u32 %v4342_v20, %v3806_v19  ;;  %v3518_v33 = vld [vmem:[#allocation7 + $0x480] sm:$0xf] }
  0x5c   :  { %v4274_v26 = vld [vmem:[#allocation7 + $0x4ac] sm:$0xf0]  ;;  %v3935_v30 = vor.u32 %v4374_v23, %v3934_v22  ;;  %v3646_v35 = vld [vmem:[#allocation7 + $0x580] sm:$0xf] }
  0x5d   :  { %2023 = vmatpush.bf16.msra.mxu0 %v2943_v3  ;;  %2037 = vmatpush.bf16.msra.mxu1 %v3071_v7  ;;  %v4306_v28 = vld [vmem:[#allocation7 + $0x5ac] sm:$0xf0]  ;;  %v3535_v31 = vor.u32 %v4274_v26, %v3534_v25  ;;  %v3790_v39 = vld [vmem:[#allocation7 + $0x6a0] sm:$0xf] }
  0x5e   :  { %v3663_v32 = vor.u32 %v4306_v28, %v3662_v27  ;;  %v4270_v34 = vld [vmem:[#allocation7 + $0x48c] sm:$0xf0]  ;;  %v3918_v41 = vld [vmem:[#allocation7 + $0x7a0] sm:$0xf] }
  0x5f   :  { %2051 = vmatpush.bf16.msra.mxu2 %v3199_v14  ;;  %2065 = vmatpush.bf16.msra.mxu3 %v3327_v58  ;;  %v4302_v36 = vld [vmem:[#allocation7 + $0x58c] sm:$0xf0]  ;;  %v3519_v37 = vor.u32 %v4270_v34, %v3518_v33  ;;  %v3502_v45 = vld [vmem:[#allocation7 + $0x460] sm:$0xf] }
  0x60   :  { %v3647_v38 = vor.u32 %v4302_v36, %v3646_v35  ;;  %v4338_v40 = vld [vmem:[#allocation7 + $0x6ac] sm:$0xf0]  ;;  %v3630_v47 = vld [vmem:[#allocation7 + $0x560] sm:$0xf]  ;;  %v4674_v35 = vld [vmem:[#allocation6] sm:$0xff] }
  0x61   :  { %2072 = vmatpush.bf16.msrb.mxu0 %v3567_v8  ;;  %2086 = vmatpush.bf16.msrb.mxu1 %v3695_v11  ;;  %v3791_v42 = vor.u32 %v4338_v40, %v3790_v39  ;;  %v4370_v43 = vld [vmem:[#allocation7 + $0x7ac] sm:$0xf0]  ;;  %v3774_v51 = vld [vmem:[#allocation7 + $0x680] sm:$0xf]  ;;  %v155_v39 = vperm.slane %v4674_v35, 1 }
  0x62   :  { %v3919_v44 = vor.u32 %v4370_v43, %v3918_v41  ;;  %v4266_v46 = vld [vmem:[#allocation7 + $0x46c] sm:$0xf0]  ;;  %v3902_v54 = vld [vmem:[#allocation7 + $0x780] sm:$0xf] }
  0x63   :  { %2100 = vmatpush.bf16.msrb.mxu2 %v3823_v17  ;;  %2114 = vmatpush.bf16.msrb.mxu3 %v3951_v18  ;;  %v3503_v48 = vor.u32 %v4266_v46, %v3502_v45  ;;  %v4298_v49 = vld [vmem:[#allocation7 + $0x56c] sm:$0xf0]  ;;  %v3486_v57 = vld [vmem:[#allocation7 + $0x440] sm:$0xf] }
  0x64   :  { %v3631_v50 = vor.u32 %v4298_v49, %v3630_v47  ;;  %v4334_v52 = vld [vmem:[#allocation7 + $0x68c] sm:$0xf0]  ;;  %v3614_v60 = vld [vmem:[#allocation7 + $0x540] sm:$0xf]  ;;  %v3056_v49 = vld [vmem:[#allocation7 + $0xf0] sm:$0xf0] }
  0x65   :  { %2073 = vmatpush.bf16.msrb.mxu0 %v3551_v21  ;;  %2087 = vmatpush.bf16.msrb.mxu1 %v3679_v24  ;;  %v3775_v53 = vor.u32 %v4334_v52, %v3774_v51  ;;  %v4366_v55 = vld [vmem:[#allocation7 + $0x78c] sm:$0xf0]  ;;  %v3758_v0 = vld [vmem:[#allocation7 + $0x660] sm:$0xf]  ;;  %v156_v51 = vperm.slane %v4674_v35, 2 }
  0x66   :  { %v3903_v56 = vor.u32 %v4366_v55, %v3902_v54  ;;  %v4262_v59 = vld [vmem:[#allocation7 + $0x44c] sm:$0xf0]  ;;  %v3886_v2 = vld [vmem:[#allocation7 + $0x760] sm:$0xf]  ;;  %v3184_v54 = vld [vmem:[#allocation7 + $0x1f0] sm:$0xf0] }
  0x67   :  { %2101 = vmatpush.bf16.msrb.mxu2 %v3807_v29  ;;  %2115 = vmatpush.bf16.msrb.mxu3 %v3935_v30  ;;  %v3487_v61 = vor.u32 %v4262_v59, %v3486_v57  ;;  %v4294_v62 = vld [vmem:[#allocation7 + $0x54c] sm:$0xf0]  ;;  %v3470_v6 = vld [vmem:[#allocation7 + $0x420] sm:$0xf]  ;;  %v157_v55 = vperm.slane %v4674_v35, 3 }
  0x68   :  { %v3615_v63 = vor.u32 %v4294_v62, %v3614_v60  ;;  %v4330_v1 = vld [vmem:[#allocation7 + $0x66c] sm:$0xf0]  ;;  %v3598_v9 = vld [vmem:[#allocation7 + $0x520] sm:$0xf]  ;;  %v4148_v62 = vld [vmem:[#allocation7 + $0xc4] sm:$0xf] }
  0x69   :  { %2074 = vmatpush.bf16.msrb.mxu0 %v3535_v31  ;;  %2088 = vmatpush.bf16.msrb.mxu1 %v3663_v32  ;;  %v3759_v3 = vor.u32 %v4330_v1, %v3758_v0  ;;  %v4362_v4 = vld [vmem:[#allocation7 + $0x76c] sm:$0xf0]  ;;  %v3742_v12 = vld [vmem:[#allocation7 + $0x640] sm:$0xf] }
  0x6a   :  { %v3887_v5 = vor.u32 %v4362_v4, %v3886_v2  ;;  %v4258_v7 = vld [vmem:[#allocation7 + $0x42c] sm:$0xf0]  ;;  %v3870_v14 = vld [vmem:[#allocation7 + $0x740] sm:$0xf]  ;;  %v4180_v2 = vld [vmem:[#allocation7 + $0x1c4] sm:$0xf] }
  0x6b   :  { %2102 = vmatpush.bf16.msrb.mxu2 %v3791_v42  ;;  %2116 = vmatpush.bf16.msrb.mxu3 %v3919_v44  ;;  %v3471_v8 = vor.u32 %v4258_v7, %v3470_v6  ;;  %v4290_v10 = vld [vmem:[#allocation7 + $0x52c] sm:$0xf0]  ;;  %v3454_v17 = vld [vmem:[#allocation7 + $0x400] sm:$0xf]  ;;  %v4216_v6 = vld [vmem:[#allocation7 + $0x2e4] sm:$0xf] }
  0x6c   :  { %v3599_v11 = vor.u32 %v4290_v10, %v3598_v9  ;;  %v4326_v13 = vld [vmem:[#allocation7 + $0x64c] sm:$0xf0]  ;;  %v3582_v19 = vld [vmem:[#allocation7 + $0x500] sm:$0xf]  ;;  %v158_v9 = vperm.slane %v4674_v35, 4 }
  0x6d   :  { %2075 = vmatpush.bf16.msrb.mxu0 %v3519_v37  ;;  %2089 = vmatpush.bf16.msrb.mxu1 %v3647_v38  ;;  %v3743_v15 = vor.u32 %v4326_v13, %v3742_v12  ;;  %v4358_v16 = vld [vmem:[#allocation7 + $0x74c] sm:$0xf0]  ;;  %v3726_v23 = vld [vmem:[#allocation7 + $0x620] sm:$0xf]  ;;  %v154_v37 = vperm.slane %v4674_v35, 0 }
  0x6e   :  { %v3871_v58 = vor.u32 %v4358_v16, %v3870_v14  ;;  %v4254_v18 = vld [vmem:[#allocation7 + $0x40c] sm:$0xf0]  ;;  %v3854_v25 = vld [vmem:[#allocation7 + $0x720] sm:$0xf]  ;;  %v3312_v13 = vld [vmem:[#allocation7 + $0x2f0] sm:$0xf0] }
  0x6f   :  { %2103 = vmatpush.bf16.msrb.mxu2 %v3775_v53  ;;  %2117 = vmatpush.bf16.msrb.mxu3 %v3903_v56  ;;  %v3455_v20 = vor.u32 %v4254_v18, %v3454_v17  ;;  %v4286_v21 = vld [vmem:[#allocation7 + $0x50c] sm:$0xf0]  ;;  %v3710_v29 = vld [vmem:[#allocation7 + $0x600] sm:$0xf]  ;;  %v4184_v53 = vld [vmem:[#allocation7 + $0x1e4] sm:$0xf] }
  0x70   :  { %v3583_v22 = vor.u32 %v4286_v21, %v3582_v19  ;;  %v4322_v24 = vld [vmem:[#allocation7 + $0x62c] sm:$0xf0]  ;;  %v3838_v32 = vld [vmem:[#allocation7 + $0x700] sm:$0xf]  ;;  %v4248_v14 = vld [vmem:[#allocation7 + $0x3e4] sm:$0xf] }
  0x71   :  { %2076 = vmatpush.bf16.msrb.mxu0 %v3503_v48  ;;  %2090 = vmatpush.bf16.msrb.mxu1 %v3631_v50  ;;  %v4354_v26 = vld [vmem:[#allocation7 + $0x72c] sm:$0xf0]  ;;  %v3727_v27 = vor.u32 %v4322_v24, %v3726_v23  ;;  %v4152_v48 = vld [vmem:[#allocation7 + $0xe4] sm:$0xf]  ;;  %v3440_v17 = vld [vmem:[#allocation7 + $0x3f0] sm:$0xf0] }
  0x72   :  { %v3855_v28 = vor.u32 %v4354_v26, %v3854_v25  ;;  %v4318_v30 = vld [vmem:[#allocation7 + $0x60c] sm:$0xf0]  ;;  %v3059_v59 = vor.u32 %v4152_v48, %v3056_v49  ;;  %v4144_v18 = vld [vmem:[#allocation7 + $0xa4] sm:$0xf]  ;;  %v3024_v19 = vld [vmem:[#allocation7 + $0xb0] sm:$0xf0]  ;;  %v3315_v26 = vor.u32 %v4216_v6, %v3312_v13 }
  0x73   :  { %2104 = vmatpush.bf16.msrb.mxu2 %v3759_v3  ;;  %2118 = vmatpush.bf16.msrb.mxu3 %v3887_v5  ;;  %v3711_v31 = vor.u32 %v4318_v30, %v3710_v29  ;;  %v4350_v33 = vld [vmem:[#allocation7 + $0x70c] sm:$0xf0]  ;;  %v3168_v3 = vld [vmem:[#allocation7 + $0x1d0] sm:$0xf0]  ;;  %v3027_v29 = vor.u32 %v4144_v18, %v3024_v19  ;;  %v4212_v30 = vld [vmem:[#allocation7 + $0x2c4] sm:$0xf] }
  0x74   :  { %v3839_v34 = vor.u32 %v4350_v33, %v3838_v32  ;;  %v3152_v23 = vld [vmem:[#allocation7 + $0x1b0] sm:$0xf0]  ;;  %v4244_v32 = vld [vmem:[#allocation7 + $0x3c4] sm:$0xf] }
  0x75   :  { %2077 = vmatpush.bf16.msrb.mxu0 %v3487_v61  ;;  %2091 = vmatpush.bf16.msrb.mxu1 %v3615_v63  ;;  %v3187_v61 = vor.u32 %v4184_v53, %v3184_v54  ;;  %v3040_v63 = vld [vmem:[#allocation7 + $0xd0] sm:$0xf0]  ;;  %v4164_v18 = vld [vmem:[#allocation7 + $0x144] sm:$0xf] }
  0x76   :  { %v3043_v12 = vor.u32 %v4148_v62, %v3040_v63  ;;  %v3408_v53 = vld [vmem:[#allocation7 + $0x3b0] sm:$0xf0] }
  0x77   :  { %2105 = vmatpush.bf16.msrb.mxu2 %v3743_v15  ;;  %2119 = vmatpush.bf16.msrb.mxu3 %v3871_v58  ;;  %v3171_v58 = vor.u32 %v4180_v2, %v3168_v3  ;;  %v2992_v62 = vld [vmem:[#allocation7 + $0x70] sm:$0xf0]  ;;  %v4168_v2 = vld [vmem:[#allocation7 + $0x164] sm:$0xf] }
  0x78   :  { %v3120_v3 = vld [vmem:[#allocation7 + $0x170] sm:$0xf0] }
  0x79   :  { %2078 = vmatpush.bf16.msrb.mxu0 %v3471_v8  ;;  %2092 = vmatpush.bf16.msrb.mxu1 %v3599_v11  ;;  %v159_v11 = vperm.slane %v4674_v35, 5  ;;  %v3104_v19 = vld [vmem:[#allocation7 + $0x150] sm:$0xf0] }
  0x7b   :  { %2106 = vmatpush.bf16.msrb.mxu2 %v3727_v27  ;;  %2120 = vmatpush.bf16.msrb.mxu3 %v3855_v28  ;;  %v3443_v28 = vor.u32 %v4248_v14, %v3440_v17  ;;  %v3123_v14 = vor.u32 %v4168_v2, %v3120_v3  ;;  %v2976_v17 = vld [vmem:[#allocation7 + $0x50] sm:$0xf0]  ;;  %v4192_v2 = vld [vmem:[#allocation7 + $0x224] sm:$0xf] }
  0x7c   :  { %v3216_v3 = vld [vmem:[#allocation7 + $0x230] sm:$0xf0] }
  0x7d   :  { %2079 = vmatpush.bf16.msrb.mxu0 %v3455_v20  ;;  %2093 = vmatpush.bf16.msrb.mxu1 %v3583_v22  ;;  %v4176_v22 = vld [vmem:[#allocation7 + $0x1a4] sm:$0xf] }
  0x7f   :  { %2107 = vmatpush.bf16.msrb.mxu2 %v3711_v31  ;;  %2121 = vmatpush.bf16.msrb.mxu3 %v3839_v34  ;;  %v3296_v31 = vld [vmem:[#allocation7 + $0x2d0] sm:$0xf0] }
  0xad   :  { %v343_v36 = vpop.f32.mrf.mxu0  ;;  %v357_v38 = vpop.f32.mrf.mxu1 }
  0xae   :  { %v344_v40 = vadd.f32 %v343_v36, %v154_v37  ;;  %v358_v41 = vadd.f32 %v357_v38, %v155_v39  ;;  %v3155_v36 = vor.u32 %v4176_v22, %v3152_v23  ;;  %v4140_v38 = vld [vmem:[#allocation7 + $0x84] sm:$0xf]  ;;  %v3248_v23 = vld [vmem:[#allocation7 + $0x270] sm:$0xf0] }
  0xaf   :  { %v4200_v22 = vld [vmem:[#allocation7 + $0x264] sm:$0xf] }
  0xb0   :  { %v446_v45 = vmax.f32 %v344_v40, 0.0  ;;  %v447_v50 = vmax.f32 %v358_v41, 0.0  ;;  %v4172_v41 = vld [vmem:[#allocation7 + $0x184] sm:$0xf] }
  0xb5   :  { %v371_v42 = vpop.f32.mrf.mxu2  ;;  %v385_v43 = vpop.f32.mrf.mxu3 }
  0xb6   :  { %v345_v44 = vpop.f32.mrf.mxu0  ;;  %v359_v47 = vpop.f32.mrf.mxu1  ;;  %v372_v0 = vadd.f32 %v371_v42, %v156_v51  ;;  %v386_v4 = vadd.f32 %v385_v43, %v157_v55  ;;  %v3136_v42 = vld [vmem:[#allocation7 + $0x190] sm:$0xf0]  ;;  %v160_v43 = vperm.slane %v4674_v35, 6 }
  0xb7   :  { %v346_v46 = vadd.f32 %v345_v44, %v154_v37  ;;  %v360_v52 = vadd.f32 %v359_v47, %v155_v39  ;;  %v3424_v37 = vld [vmem:[#allocation7 + $0x3d0] sm:$0xf0] }
  0xb8   :  { %v448_v20 = vmax.f32 %v372_v0, 0.0  ;;  %v449_v24 = vmax.f32 %v386_v4, 0.0  ;;  %v3008_v39 = vld [vmem:[#allocation7 + $0x90] sm:$0xf0]  ;;  %v3427_v49 = vor.u32 %v4244_v32, %v3424_v37  ;;  %v4128_v37 = vld [vmem:[#allocation7 + $0x24] sm:$0xf] }
  0xb9   :  { %v454_v56 = vmax.f32 %v346_v46, 0.0  ;;  %v455_v57 = vmax.f32 %v360_v52, 0.0  ;;  %v4208_v46 = vld [vmem:[#allocation7 + $0x2a4] sm:$0xf] }
  0xba   :  { %v4240_v52 = vld [vmem:[#allocation7 + $0x3a4] sm:$0xf] }
  0xbb   :  { %v4680_v60 = vpack.c.bf16 %v454_v56, %v446_v45  ;;  %v4682_v1 = vpack.c.bf16 %v455_v57, %v447_v50  ;;  %v3299_v45 = vor.u32 %v4212_v30, %v3296_v31  ;;  %v3011_v50 = vor.u32 %v4140_v38, %v3008_v39  ;;  %v3376_v30 = vld [vmem:[#allocation7 + $0x370] sm:$0xf0] }
  0xbc   :  { %v2960_v38 = vld [vmem:[#allocation7 + $0x30] sm:$0xf0] }
  0xbd   :  { %v373_v5 = vpop.f32.mrf.mxu2  ;;  %2024 = vmatmul.bf16.vlgmr.msra.gmra.mxu0 %v4680_v60  ;;  %v387_v8 = vpop.f32.mrf.mxu3  ;;  %2038 = vmatmul.bf16.vlgmr.msra.gmra.mxu1 %v4682_v1 }
  0xbe   :  { %v374_v7 = vadd.f32 %v373_v5, %v156_v51  ;;  %2128 = vmatpush.bf16.msra.mxu0 %v3059_v59  ;;  %v399_v10 = vpop.f32.mrf.mxu0  ;;  %v388_v15 = vadd.f32 %v387_v8, %v157_v55  ;;  %2142 = vmatpush.bf16.msra.mxu1 %v3187_v61  ;;  %v413_v16 = vpop.f32.mrf.mxu1  ;;  %v3280_v51 = vld [vmem:[#allocation7 + $0x2b0] sm:$0xf0]  ;;  %v161_v55 = vperm.slane %v4674_v35, 7  ;;  %v3139_v59 = vor.u32 %v4172_v41, %v3136_v42  ;;  %v4136_v61 = vld [vmem:[#allocation7 + $0x64] sm:$0xf] }
  0xbf   :  { %v400_v34 = vadd.f32 %v399_v10, %v158_v9  ;;  %v414_v40 = vadd.f32 %v413_v16, %v159_v11  ;;  %v3283_v5 = vor.u32 %v4208_v46, %v3280_v51  ;;  %v3411_v8 = vor.u32 %v4240_v52, %v3408_v53  ;;  %v4204_v10 = vld [vmem:[#allocation7 + $0x284] sm:$0xf]  ;;  %v3264_v35 = vld [vmem:[#allocation7 + $0x290] sm:$0xf0] }
  0xc0   :  { %v456_v21 = vmax.f32 %v374_v7, 0.0  ;;  %v457_v25 = vmax.f32 %v388_v15, 0.0  ;;  %v2995_v13 = vor.u32 %v4136_v61, %v2992_v62  ;;  %v4236_v15 = vld [vmem:[#allocation7 + $0x384] sm:$0xf]  ;;  %v3088_v41 = vld [vmem:[#allocation7 + $0x130] sm:$0xf0] }
  0xc1   :  { %v450_v54 = vmax.f32 %v400_v34, 0.0  ;;  %v451_v63 = vmax.f32 %v414_v40, 0.0  ;;  %v4132_v16 = vld [vmem:[#allocation7 + $0x44] sm:$0xf]  ;;  %v3360_v52 = vld [vmem:[#allocation7 + $0x350] sm:$0xf0] }
  0xc2   :  { %v4688_v27 = vpack.c.bf16 %v456_v21, %v448_v20  ;;  %2129 = vmatpush.bf16.msra.mxu0 %v3043_v12  ;;  %v4690_v33 = vpack.c.bf16 %v457_v25, %v449_v24  ;;  %2143 = vmatpush.bf16.msra.mxu1 %v3171_v58  ;;  %v3267_v21 = vor.u32 %v4204_v10, %v3264_v35  ;;  %v4160_v40 = vld [vmem:[#allocation7 + $0x124] sm:$0xf]  ;;  %v3568_v61 = vld [vmem:[#allocation7 + $0x4f0] sm:$0xf0] }
  0xc3   :  { %v2979_v34 = vor.u32 %v4132_v16, %v2976_v17  ;;  %v4196_v46 = vld [vmem:[#allocation7 + $0x244] sm:$0xf]  ;;  %v3091_v51 = vor.u32 %v4160_v40, %v3088_v41  ;;  %v3200_v17 = vld [vmem:[#allocation7 + $0x210] sm:$0xf0] }
  0xc4   :  { %2052 = vmatmul.bf16.vlgmr.msra.gmra.mxu2 %v4688_v27  ;;  %2066 = vmatmul.bf16.vlgmr.msra.gmra.mxu3 %v4690_v33  ;;  %v4124_v53 = vld [vmem:[#allocation7 + $0x4] sm:$0xf] }
  0xc5   :  { %2156 = vmatpush.bf16.msra.mxu2 %v3315_v26  ;;  %v427_v44 = vpop.f32.mrf.mxu2  ;;  %2170 = vmatpush.bf16.msra.mxu3 %v3443_v28  ;;  %v441_v47 = vpop.f32.mrf.mxu3  ;;  %v4312_v62 = vld [vmem:[#allocation7 + $0x5e4] sm:$0xf] }
  0xc6   :  { %2130 = vmatpush.bf16.msra.mxu0 %v3027_v29  ;;  %v401_v48 = vpop.f32.mrf.mxu0  ;;  %2144 = vmatpush.bf16.msra.mxu1 %v3155_v36  ;;  %v415_v57 = vpop.f32.mrf.mxu1  ;;  %v428_v6 = vadd.f32 %v427_v44, %v160_v43  ;;  %v442_v12 = vadd.f32 %v441_v47, %v161_v55  ;;  %v4232_v29 = vld [vmem:[#allocation7 + $0x364] sm:$0xf]  ;;  %v3107_v36 = vor.u32 %v4164_v18, %v3104_v19  ;;  %v3232_v47 = vld [vmem:[#allocation7 + $0x250] sm:$0xf0] }
  0xc7   :  { %v402_v56 = vadd.f32 %v401_v48, %v158_v9  ;;  %v416_v0 = vadd.f32 %v415_v57, %v159_v11  ;;  %v3392_v11 = vld [vmem:[#allocation7 + $0x390] sm:$0xf0]  ;;  %v4228_v48 = vld [vmem:[#allocation7 + $0x344] sm:$0xf] }
  0xc8   :  { %v452_v24 = vmax.f32 %v428_v6, 0.0  ;;  %v3395_v28 = vor.u32 %v4236_v15, %v3392_v11  ;;  %v453_v31 = vmax.f32 %v442_v12, 0.0  ;;  %v4280_v57 = vld [vmem:[#allocation7 + $0x4e4] sm:$0xf]  ;;  %v3219_v12 = vor.u32 %v4192_v2, %v3216_v3  ;;  %v3680_v15 = vld [vmem:[#allocation7 + $0x5d0] sm:$0xf0] }
  0xc9   :  { %v458_v4 = vmax.f32 %v402_v56, 0.0  ;;  %2157 = vmatpush.bf16.msra.mxu2 %v3299_v45  ;;  %v459_v7 = vmax.f32 %v416_v0, 0.0  ;;  %2171 = vmatpush.bf16.msra.mxu3 %v3427_v49  ;;  %v3379_v45 = vor.u32 %v4232_v29, %v3376_v30  ;;  %v3072_v56 = vld [vmem:[#allocation7 + $0x110] sm:$0xf0]  ;;  %v3363_v0 = vor.u32 %v4228_v48, %v3360_v52  ;;  %v4224_v6 = vld [vmem:[#allocation7 + $0x324] sm:$0xf] }
  0xca   :  { %2131 = vmatpush.bf16.msra.mxu0 %v3011_v50  ;;  %2145 = vmatpush.bf16.msra.mxu1 %v3139_v59  ;;  %v2963_v50 = vor.u32 %v4128_v37, %v2960_v38  ;;  %v3235_v59 = vor.u32 %v4196_v46, %v3232_v47  ;;  %v4276_v35 = vld [vmem:[#allocation7 + $0x4c4] sm:$0xf]  ;;  %v3328_v19 = vld [vmem:[#allocation7 + $0x310] sm:$0xf0] }
  0xcb   :  { %v4696_v9 = vpack.c.bf16 %v458_v4, %v450_v54  ;;  %v4698_v58 = vpack.c.bf16 %v459_v7, %v451_v63  ;;  %v2944_v54 = vld [vmem:[#allocation7 + $0x10] sm:$0xf0]  ;;  %v4188_v16 = vld [vmem:[#allocation7 + $0x204] sm:$0xf] }
  0xcc   :  { %v3696_v63 = vld [vmem:[#allocation7 + $0x5f0] sm:$0xf0]  ;;  %v2947_v4 = vor.u32 %v4124_v53, %v2944_v54  ;;  %v4220_v18 = vld [vmem:[#allocation7 + $0x304] sm:$0xf] }
  0xcd   :  { %2158 = vmatpush.bf16.msra.mxu2 %v3283_v5  ;;  %v429_v20 = vpop.f32.mrf.mxu2  ;;  %2080 = vmatmul.bf16.vlgmr.msrb.gmra.mxu0 %v4696_v9  ;;  %v443_v26 = vpop.f32.mrf.mxu3  ;;  %v3344_v7 = vld [vmem:[#allocation7 + $0x330] sm:$0xf0]  ;;  %v3699_v10 = vor.u32 %v4312_v62, %v3696_v63  ;;  %v4304_v30 = vld [vmem:[#allocation7 + $0x5a4] sm:$0xf] }
  0xce   :  { %2172 = vmatpush.bf16.msra.mxu3 %v3411_v8  ;;  %v430_v25 = vadd.f32 %v429_v20, %v160_v43  ;;  %2094 = vmatmul.bf16.vlgmr.msrb.gmra.mxu1 %v4698_v58  ;;  %v444_v32 = vadd.f32 %v443_v26, %v161_v55  ;;  %v3251_v43 = vor.u32 %v4200_v22, %v3248_v23  ;;  %v4156_v55 = vld [vmem:[#allocation7 + $0x104] sm:$0xf]  ;;  %v3536_v29 = vld [vmem:[#allocation7 + $0x4b0] sm:$0xf0] }
  0xcf   :  { %2132 = vmatpush.bf16.msra.mxu0 %v2995_v13  ;;  %2146 = vmatpush.bf16.msra.mxu1 %v3123_v14  ;;  %v3075_v5 = vor.u32 %v4156_v55, %v3072_v56  ;;  %v3571_v8 = vor.u32 %v4280_v57, %v3568_v61  ;;  %v3552_v13 = vld [vmem:[#allocation7 + $0x4d0] sm:$0xf0]  ;;  %v4308_v14 = vld [vmem:[#allocation7 + $0x5c4] sm:$0xf]  ;;  %v3347_v11 = vor.u32 %v4224_v6, %v3344_v7 }
  0xd0   :  { %v460_v39 = vmax.f32 %v430_v25, 0.0  ;;  %v461_v42 = vmax.f32 %v444_v32, 0.0  ;;  %v4344_v20 = vld [vmem:[#allocation7 + $0x6e4] sm:$0xf]  ;;  %v3555_v22 = vor.u32 %v4276_v35, %v3552_v13  ;;  %v3683_v23 = vor.u32 %v4308_v14, %v3680_v15  ;;  %v3952_v25 = vld [vmem:[#allocation7 + $0x7f0] sm:$0xf0] }
  0xd1   :  { %2159 = vmatpush.bf16.msra.mxu2 %v3267_v21  ;;  %v3824_v21 = vld [vmem:[#allocation7 + $0x6f0] sm:$0xf0]  ;;  %v4272_v26 = vld [vmem:[#allocation7 + $0x4a4] sm:$0xf]  ;;  %v3331_v32 = vor.u32 %v4220_v18, %v3328_v19 }
  0xd2   :  { %v4702_v44 = vpack.c.bf16 %v460_v39, %v452_v24  ;;  %2173 = vmatpush.bf16.msra.mxu3 %v3395_v28  ;;  %v4704_v49 = vpack.c.bf16 %v461_v42, %v453_v31  ;;  %v4376_v24 = vld [vmem:[#allocation7 + $0x7e4] sm:$0xf]  ;;  %v3203_v28 = vor.u32 %v4188_v16, %v3200_v17  ;;  %v3664_v31 = vld [vmem:[#allocation7 + $0x5b0] sm:$0xf0]  ;;  %v3539_v39 = vor.u32 %v4272_v26, %v3536_v29 }
  0xd3   :  { %2133 = vmatpush.bf16.msra.mxu0 %v2979_v34  ;;  %2147 = vmatpush.bf16.msra.mxu1 %v3107_v36  ;;  %v3827_v34 = vor.u32 %v4344_v20, %v3824_v21  ;;  %v3955_v36 = vor.u32 %v4376_v24, %v3952_v25  ;;  %v4340_v37 = vld [vmem:[#allocation7 + $0x6c4] sm:$0xf]  ;;  %v3808_v38 = vld [vmem:[#allocation7 + $0x6d0] sm:$0xf0]  ;;  %v3667_v40 = vor.u32 %v4304_v30, %v3664_v31 }
  0xd4   :  { %2108 = vmatmul.bf16.vlgmr.msrb.gmra.mxu2 %v4702_v44  ;;  %2122 = vmatmul.bf16.vlgmr.msrb.gmra.mxu3 %v4704_v49  ;;  %v4372_v41 = vld [vmem:[#allocation7 + $0x7c4] sm:$0xf]  ;;  %v3936_v42 = vld [vmem:[#allocation7 + $0x7d0] sm:$0xf0]  ;;  %v3811_v48 = vor.u32 %v4340_v37, %v3808_v38 }
  0xd5   :  { %2160 = vmatpush.bf16.msra.mxu2 %v3251_v43  ;;  %v4268_v43 = vld [vmem:[#allocation7 + $0x484] sm:$0xf]  ;;  %v3648_v47 = vld [vmem:[#allocation7 + $0x590] sm:$0xf0] }
  0xd6   :  { %2174 = vmatpush.bf16.msra.mxu3 %v3379_v45  ;;  %v3520_v45 = vld [vmem:[#allocation7 + $0x490] sm:$0xf0]  ;;  %v4300_v46 = vld [vmem:[#allocation7 + $0x584] sm:$0xf] }
  0xd7   :  { %2134 = vmatpush.bf16.msra.mxu0 %v2963_v50  ;;  %2148 = vmatpush.bf16.msra.mxu1 %v3091_v51  ;;  %v3939_v50 = vor.u32 %v4372_v41, %v3936_v42  ;;  %v4336_v51 = vld [vmem:[#allocation7 + $0x6a4] sm:$0xf]  ;;  %v3792_v52 = vld [vmem:[#allocation7 + $0x6b0] sm:$0xf0]  ;;  %v3523_v53 = vor.u32 %v4268_v43, %v3520_v45  ;;  %v3651_v54 = vor.u32 %v4300_v46, %v3648_v47  ;;  %v4155_v41 = vld [vmem:[#allocation7 + $0xf4] sm:$0xf0] }
  0xd8   :  { %v4368_v55 = vld [vmem:[#allocation7 + $0x7a4] sm:$0xf]  ;;  %v3920_v56 = vld [vmem:[#allocation7 + $0x7b0] sm:$0xf0]  ;;  %v3795_v63 = vor.u32 %v4336_v51, %v3792_v52  ;;  %v3190_v42 = vld [vmem:[#allocation7 + $0x1e8] sm:$0xf] }
  0xd9   :  { %2161 = vmatpush.bf16.msra.mxu2 %v3235_v59  ;;  %v4264_v57 = vld [vmem:[#allocation7 + $0x464] sm:$0xf]  ;;  %v3504_v59 = vld [vmem:[#allocation7 + $0x470] sm:$0xf0]  ;;  %v4187_v43 = vld [vmem:[#allocation7 + $0x1f4] sm:$0xf0] }
  0xda   :  { %2175 = vmatpush.bf16.msra.mxu3 %v3363_v0  ;;  %v4296_v61 = vld [vmem:[#allocation7 + $0x564] sm:$0xf]  ;;  %v3632_v62 = vld [vmem:[#allocation7 + $0x570] sm:$0xf0]  ;;  %v3923_v0 = vor.u32 %v4368_v55, %v3920_v56  ;;  %v3046_v55 = vld [vmem:[#allocation7 + $0xc8] sm:$0xf] }
  0xdb   :  { %2135 = vmatpush.bf16.msra.mxu0 %v2947_v4  ;;  %2149 = vmatpush.bf16.msra.mxu1 %v3075_v5  ;;  %v4332_v2 = vld [vmem:[#allocation7 + $0x684] sm:$0xf]  ;;  %v3776_v3 = vld [vmem:[#allocation7 + $0x690] sm:$0xf0]  ;;  %v3507_v4 = vor.u32 %v4264_v57, %v3504_v59  ;;  %v3635_v5 = vor.u32 %v4296_v61, %v3632_v62  ;;  %v4151_v57 = vld [vmem:[#allocation7 + $0xd4] sm:$0xf0] }
  0xdc   :  { %v4364_v6 = vld [vmem:[#allocation7 + $0x784] sm:$0xf]  ;;  %v3904_v7 = vld [vmem:[#allocation7 + $0x790] sm:$0xf0]  ;;  %v3779_v13 = vor.u32 %v4332_v2, %v3776_v3  ;;  %v3174_v59 = vld [vmem:[#allocation7 + $0x1c8] sm:$0xf] }
  0xdd   :  { %2162 = vmatpush.bf16.msra.mxu2 %v3219_v12  ;;  %v4292_v35 = vld [vmem:[#allocation7 + $0x544] sm:$0xf]  ;;  %v3616_v12 = vld [vmem:[#allocation7 + $0x550] sm:$0xf0]  ;;  %v3907_v14 = vor.u32 %v4364_v6, %v3904_v7  ;;  %v4183_v61 = vld [vmem:[#allocation7 + $0x1d4] sm:$0xf0]  ;;  %v3047_v6 = vor.u32 %v4151_v57, %v3046_v55 }
  0xde   :  { %2176 = vmatpush.bf16.msra.mxu3 %v3347_v11  ;;  %2136 = vmatmul.bf16.vlgmr.msra.gmra.mxu0 %v4680_v60  ;;  %v4328_v15 = vld [vmem:[#allocation7 + $0x664] sm:$0xf]  ;;  %v3760_v11 = vld [vmem:[#allocation7 + $0x670] sm:$0xf0]  ;;  %v3619_v17 = vor.u32 %v4292_v35, %v3616_v12  ;;  %v3175_v7 = vor.u32 %v4183_v61, %v3174_v59  ;;  %v3030_v12 = vld [vmem:[#allocation7 + $0xa8] sm:$0xf] }
  0xdf   :  { %2184 = vmatpush.bf16.msrb.mxu0 %v3571_v8  ;;  %2198 = vmatpush.bf16.msrb.mxu1 %v3699_v10  ;;  %v4260_v8 = vld [vmem:[#allocation7 + $0x444] sm:$0xf]  ;;  %v3488_v10 = vld [vmem:[#allocation7 + $0x450] sm:$0xf0]  ;;  %v3763_v24 = vor.u32 %v4328_v15, %v3760_v11  ;;  %v3158_v11 = vld [vmem:[#allocation7 + $0x1a8] sm:$0xf] }
  0xe0   :  { %2150 = vmatmul.bf16.vlgmr.msra.gmra.mxu1 %v4682_v1  ;;  %v3491_v16 = vor.u32 %v4260_v8, %v3488_v10  ;;  %v4360_v18 = vld [vmem:[#allocation7 + $0x764] sm:$0xf]  ;;  %v3888_v19 = vld [vmem:[#allocation7 + $0x770] sm:$0xf0]  ;;  %v3446_v8 = vld [vmem:[#allocation7 + $0x3e8] sm:$0xf] }
  0xe1   :  { %2163 = vmatpush.bf16.msra.mxu2 %v3203_v28  ;;  %v4256_v20 = vld [vmem:[#allocation7 + $0x424] sm:$0xf]  ;;  %v3472_v21 = vld [vmem:[#allocation7 + $0x430] sm:$0xf0]  ;;  %v3891_v25 = vor.u32 %v4360_v18, %v3888_v19  ;;  %v4251_v10 = vld [vmem:[#allocation7 + $0x3f4] sm:$0xf0] }
  0xe2   :  { %2177 = vmatpush.bf16.msra.mxu3 %v3331_v32  ;;  %v4324_v26 = vld [vmem:[#allocation7 + $0x644] sm:$0xf]  ;;  %v3744_v28 = vld [vmem:[#allocation7 + $0x650] sm:$0xf0]  ;;  %v3475_v30 = vor.u32 %v4256_v20, %v3472_v21  ;;  %v3302_v18 = vld [vmem:[#allocation7 + $0x2c8] sm:$0xf] }
  0xe3   :  { %2185 = vmatpush.bf16.msrb.mxu0 %v3555_v22  ;;  %2199 = vmatpush.bf16.msrb.mxu1 %v3683_v23  ;;  %v4288_v22 = vld [vmem:[#allocation7 + $0x524] sm:$0xf]  ;;  %v3600_v23 = vld [vmem:[#allocation7 + $0x530] sm:$0xf0]  ;;  %v4215_v19 = vld [vmem:[#allocation7 + $0x2d4] sm:$0xf0] }
  0xe4   :  { %2164 = vmatmul.bf16.vlgmr.msra.gmra.mxu2 %v4688_v27  ;;  %v4356_v29 = vld [vmem:[#allocation7 + $0x744] sm:$0xf]  ;;  %v3603_v31 = vor.u32 %v4288_v22, %v3600_v23  ;;  %v3872_v32 = vld [vmem:[#allocation7 + $0x750] sm:$0xf0]  ;;  %v3430_v21 = vld [vmem:[#allocation7 + $0x3c8] sm:$0xf] }
  0xe5   :  { %2212 = vmatpush.bf16.msrb.mxu2 %v3827_v34  ;;  %2178 = vmatmul.bf16.vlgmr.msra.gmra.mxu3 %v4690_v33  ;;  %v4252_v34 = vld [vmem:[#allocation7 + $0x404] sm:$0xf]  ;;  %v3584_v38 = vld [vmem:[#allocation7 + $0x510] sm:$0xf0]  ;;  %v3875_v45 = vor.u32 %v4356_v29, %v3872_v32  ;;  %v4247_v22 = vld [vmem:[#allocation7 + $0x3d4] sm:$0xf0] }
  0xe6   :  { %2226 = vmatpush.bf16.msrb.mxu3 %v3955_v36  ;;  %v3456_v36 = vld [vmem:[#allocation7 + $0x410] sm:$0xf0]  ;;  %v4284_v37 = vld [vmem:[#allocation7 + $0x504] sm:$0xf]  ;;  %v4175_v29 = vld [vmem:[#allocation7 + $0x194] sm:$0xf0] }
  0xe7   :  { %2186 = vmatpush.bf16.msrb.mxu0 %v3539_v39  ;;  %2200 = vmatpush.bf16.msrb.mxu1 %v3667_v40  ;;  %v3062_v39 = vld [vmem:[#allocation7 + $0xe8] sm:$0xf]  ;;  %v3747_v40 = vor.u32 %v4324_v26, %v3744_v28  ;;  %v4320_v46 = vld [vmem:[#allocation7 + $0x624] sm:$0xf]  ;;  %v3728_v47 = vld [vmem:[#allocation7 + $0x630] sm:$0xf0]  ;;  %v3303_v26 = vor.u32 %v4215_v19, %v3302_v18 }
  0xe8   :  { %v4352_v51 = vld [vmem:[#allocation7 + $0x724] sm:$0xf]  ;;  %v3856_v52 = vld [vmem:[#allocation7 + $0x730] sm:$0xf0]  ;;  %v3731_v56 = vor.u32 %v4320_v46, %v3728_v47  ;;  %v3142_v28 = vld [vmem:[#allocation7 + $0x188] sm:$0xf] }
  0xe9   :  { %2213 = vmatpush.bf16.msrb.mxu2 %v3811_v48  ;;  %v3459_v48 = vor.u32 %v4252_v34, %v3456_v36  ;;  %v3859_v62 = vor.u32 %v4352_v51, %v3856_v52  ;;  %v4348_v2 = vld [vmem:[#allocation7 + $0x704] sm:$0xf]  ;;  %v3840_v3 = vld [vmem:[#allocation7 + $0x710] sm:$0xf0]  ;;  %v4211_v32 = vld [vmem:[#allocation7 + $0x2b4] sm:$0xf0] }
  0xea   :  { %2227 = vmatpush.bf16.msrb.mxu3 %v3939_v50  ;;  %v3587_v50 = vor.u32 %v4284_v37, %v3584_v38  ;;  %v3414_v36 = vld [vmem:[#allocation7 + $0x3a8] sm:$0xf]  ;;  %v4243_v37 = vld [vmem:[#allocation7 + $0x3b4] sm:$0xf0]  ;;  %v3143_v38 = vor.u32 %v4175_v29, %v3142_v28 }
  0xeb   :  { %2187 = vmatpush.bf16.msrb.mxu0 %v3523_v53  ;;  %2201 = vmatpush.bf16.msrb.mxu1 %v3651_v54  ;;  %v3063_v53 = vor.u32 %v4155_v41, %v3062_v39  ;;  %v3191_v54 = vor.u32 %v4187_v43, %v3190_v42  ;;  %v2998_v39 = vld [vmem:[#allocation7 + $0x68] sm:$0xf]  ;;  %v4171_v43 = vld [vmem:[#allocation7 + $0x174] sm:$0xf0] }
  0xec   :  { %v3126_v42 = vld [vmem:[#allocation7 + $0x168] sm:$0xf]  ;;  %v4207_v47 = vld [vmem:[#allocation7 + $0x294] sm:$0xf0] }
  0xed   :  { %2214 = vmatpush.bf16.msrb.mxu2 %v3795_v63  ;;  %v4316_v63 = vld [vmem:[#allocation7 + $0x604] sm:$0xf]  ;;  %v3270_v46 = vld [vmem:[#allocation7 + $0x288] sm:$0xf]  ;;  %v4239_v51 = vld [vmem:[#allocation7 + $0x394] sm:$0xf0]  ;;  %v3127_v52 = vor.u32 %v4171_v43, %v3126_v42 }
  0xee   :  { %2228 = vmatpush.bf16.msrb.mxu3 %v3923_v0  ;;  %v3712_v0 = vld [vmem:[#allocation7 + $0x610] sm:$0xf0]  ;;  %v3271_v55 = vor.u32 %v4207_v47, %v3270_v46  ;;  %v4167_v57 = vld [vmem:[#allocation7 + $0x154] sm:$0xf0]  ;;  %v3254_v61 = vld [vmem:[#allocation7 + $0x268] sm:$0xf] }
  0xef   :  { %2188 = vmatpush.bf16.msrb.mxu0 %v3507_v4  ;;  %2202 = vmatpush.bf16.msrb.mxu1 %v3635_v5  ;;  %v3318_v4 = vld [vmem:[#allocation7 + $0x2e8] sm:$0xf]  ;;  %v4219_v5 = vld [vmem:[#allocation7 + $0x2f4] sm:$0xf0]  ;;  %v3715_v35 = vor.u32 %v4316_v63, %v3712_v0 }
  0xf0   :  { %v3319_v15 = vor.u32 %v4219_v5, %v3318_v4  ;;  %v3382_v0 = vld [vmem:[#allocation7 + $0x368] sm:$0xf]  ;;  %v4131_v5 = vld [vmem:[#allocation7 + $0x34] sm:$0xf0] }
  0xf1   :  { %2215 = vmatpush.bf16.msrb.mxu2 %v3779_v13  ;;  %v4147_v13 = vld [vmem:[#allocation7 + $0xb4] sm:$0xf0]  ;;  %v2966_v4 = vld [vmem:[#allocation7 + $0x28] sm:$0xf] }
  0xf2   :  { %2229 = vmatpush.bf16.msrb.mxu3 %v3907_v14  ;;  %v3843_v14 = vor.u32 %v4348_v2, %v3840_v3  ;;  %v3031_v20 = vor.u32 %v4147_v13, %v3030_v12  ;;  %v4235_v2 = vld [vmem:[#allocation7 + $0x374] sm:$0xf0]  ;;  %v2967_v13 = vor.u32 %v4131_v5, %v2966_v4  ;;  %v3078_v18 = vld [vmem:[#allocation7 + $0x108] sm:$0xf] }
  0xf3   :  { %2189 = vmatpush.bf16.msrb.mxu0 %v3491_v16  ;;  %2203 = vmatpush.bf16.msrb.mxu1 %v3619_v17  ;;  %v4179_v16 = vld [vmem:[#allocation7 + $0x1b4] sm:$0xf0]  ;;  %v3447_v17 = vor.u32 %v4251_v10, %v3446_v8  ;;  %v3383_v10 = vor.u32 %v4235_v2, %v3382_v0  ;;  %v3206_v43 = vld [vmem:[#allocation7 + $0x208] sm:$0xf] }
  0xf4   :  { %v3159_v23 = vor.u32 %v4179_v16, %v3158_v11  ;;  %v4163_v8 = vld [vmem:[#allocation7 + $0x134] sm:$0xf0]  ;;  %v2950_v11 = vld [vmem:[#allocation7 + $0x8] sm:$0xf] }
  0xf5   :  { %2216 = vmatpush.bf16.msrb.mxu2 %v3763_v24  ;;  %v3014_v24 = vld [vmem:[#allocation7 + $0x88] sm:$0xf]  ;;  %v4199_v12 = vld [vmem:[#allocation7 + $0x254] sm:$0xf0] }
  0xf6   :  { %2230 = vmatpush.bf16.msrb.mxu3 %v3891_v25  ;;  %v4143_v25 = vld [vmem:[#allocation7 + $0x94] sm:$0xf0]  ;;  %v3334_v46 = vld [vmem:[#allocation7 + $0x308] sm:$0xf] }
  0xf7   :  { %2190 = vmatpush.bf16.msrb.mxu0 %v3475_v30  ;;  %2204 = vmatpush.bf16.msrb.mxu1 %v3603_v31  ;;  %v3431_v30 = vor.u32 %v4247_v22, %v3430_v21  ;;  %v3286_v31 = vld [vmem:[#allocation7 + $0x2a8] sm:$0xf]  ;;  %v3015_v34 = vor.u32 %v4143_v25, %v3014_v24  ;;  %v4159_v19 = vld [vmem:[#allocation7 + $0x114] sm:$0xf0] }
  0xf8   :  { %v3287_v41 = vor.u32 %v4211_v32, %v3286_v31  ;;  %v3574_v21 = vld [vmem:[#allocation7 + $0x4e8] sm:$0xf]  ;;  %v4283_v22 = vld [vmem:[#allocation7 + $0x4f4] sm:$0xf0]  ;;  %v3079_v32 = vor.u32 %v4159_v19, %v3078_v18 }
  0xf9   :  { %2217 = vmatpush.bf16.msrb.mxu2 %v3747_v40  ;;  %v4139_v40 = vld [vmem:[#allocation7 + $0x74] sm:$0xf0]  ;;  %v3814_v2 = vld [vmem:[#allocation7 + $0x6c8] sm:$0xf] }
  0xfa   :  { %2231 = vmatpush.bf16.msrb.mxu3 %v3875_v45  ;;  %v3415_v45 = vor.u32 %v4243_v37, %v3414_v36  ;;  %v4315_v25 = vld [vmem:[#allocation7 + $0x5f4] sm:$0xf0]  ;;  %v3558_v36 = vld [vmem:[#allocation7 + $0x4c8] sm:$0xf] }
  0xfb   :  { %2191 = vmatpush.bf16.msrb.mxu0 %v3459_v48  ;;  %2205 = vmatpush.bf16.msrb.mxu1 %v3587_v50  ;;  %v2999_v48 = vor.u32 %v4139_v40, %v2998_v39  ;;  %v3398_v50 = vld [vmem:[#allocation7 + $0x388] sm:$0xf]  ;;  %v4195_v28 = vld [vmem:[#allocation7 + $0x234] sm:$0xf0] }
  0xfc   :  { %v3399_v59 = vor.u32 %v4239_v51, %v3398_v50  ;;  %v4227_v31 = vld [vmem:[#allocation7 + $0x334] sm:$0xf0]  ;;  %v3686_v40 = vld [vmem:[#allocation7 + $0x5c8] sm:$0xf] }
  0xfd   :  { %2218 = vmatpush.bf16.msrb.mxu2 %v3731_v56  ;;  %v3110_v56 = vld [vmem:[#allocation7 + $0x148] sm:$0xf]  ;;  %v4279_v39 = vld [vmem:[#allocation7 + $0x4d4] sm:$0xf0] }
  0xfe   :  { %2232 = vmatpush.bf16.msrb.mxu3 %v3859_v62  ;;  %2192 = vmatmul.bf16.vlgmr.msrb.gmra.mxu0 %v4696_v9  ;;  %v4203_v62 = vld [vmem:[#allocation7 + $0x274] sm:$0xf0]  ;;  %v3111_v3 = vor.u32 %v4167_v57, %v3110_v56  ;;  %v3559_v51 = vor.u32 %v4279_v39, %v3558_v36  ;;  %v3542_v56 = vld [vmem:[#allocation7 + $0x4a8] sm:$0xf] }
  0xff   :  { %2240 = vmatpush.bf16.msra.mxu0 %v3063_v53  ;;  %2254 = vmatpush.bf16.msra.mxu1 %v3191_v54  ;;  %v2982_v53 = vld [vmem:[#allocation7 + $0x48] sm:$0xf]  ;;  %v4135_v54 = vld [vmem:[#allocation7 + $0x54] sm:$0xf0] }
 0x100   :  { %2206 = vmatmul.bf16.vlgmr.msrb.gmra.mxu1 %v4698_v58  ;;  %v2983_v63 = vor.u32 %v4135_v54, %v2982_v53  ;;  %v4223_v47 = vld [vmem:[#allocation7 + $0x314] sm:$0xf0]  ;;  %v3942_v5 = vld [vmem:[#allocation7 + $0x7c8] sm:$0xf] }
 0x101   :  { %2219 = vmatpush.bf16.msrb.mxu2 %v3715_v35  ;;  %v3238_v35 = vld [vmem:[#allocation7 + $0x248] sm:$0xf]  ;;  %v4347_v50 = vld [vmem:[#allocation7 + $0x6f4] sm:$0xf0] }
 0x102   :  { %2233 = vmatpush.bf16.msrb.mxu3 %v3843_v14  ;;  %v3366_v14 = vld [vmem:[#allocation7 + $0x348] sm:$0xf]  ;;  %v4379_v53 = vld [vmem:[#allocation7 + $0x7f4] sm:$0xf0] }
 0x103   :  { %2241 = vmatpush.bf16.msra.mxu0 %v3047_v6  ;;  %2255 = vmatpush.bf16.msra.mxu1 %v3175_v7  ;;  %v3255_v6 = vor.u32 %v4203_v62, %v3254_v61  ;;  %v3094_v7 = vld [vmem:[#allocation7 + $0x128] sm:$0xf]  ;;  %v4275_v57 = vld [vmem:[#allocation7 + $0x4b4] sm:$0xf0] }
 0x104   :  { %2220 = vmatmul.bf16.vlgmr.msrb.gmra.mxu2 %v4702_v44  ;;  %v3095_v16 = vor.u32 %v4163_v8, %v3094_v7  ;;  %v3670_v62 = vld [vmem:[#allocation7 + $0x5a8] sm:$0xf]  ;;  %v3543_v4 = vor.u32 %v4275_v57, %v3542_v56  ;;  %v4371_v18 = vld [vmem:[#allocation7 + $0x7b4] sm:$0xf0] }
 0x105   :  { %2268 = vmatpush.bf16.msra.mxu2 %v3319_v15  ;;  %2234 = vmatmul.bf16.vlgmr.msrb.gmra.mxu3 %v4704_v49  ;;  %v4231_v15 = vld [vmem:[#allocation7 + $0x354] sm:$0xf0]  ;;  %v3526_v8 = vld [vmem:[#allocation7 + $0x488] sm:$0xf] }
 0x106   :  { %2282 = vmatpush.bf16.msra.mxu3 %v3447_v17  ;;  %v4127_v17 = vld [vmem:[#allocation7 + $0x14] sm:$0xf0]  ;;  %v3367_v24 = vor.u32 %v4231_v15, %v3366_v14  ;;  %v3798_v15 = vld [vmem:[#allocation7 + $0x6a8] sm:$0xf] }
 0x107   :  { %2242 = vmatpush.bf16.msra.mxu0 %v3031_v20  ;;  %2256 = vmatpush.bf16.msra.mxu1 %v3159_v23  ;;  %v3239_v20 = vor.u32 %v4199_v12, %v3238_v35  ;;  %v3702_v23 = vld [vmem:[#allocation7 + $0x5e8] sm:$0xf]  ;;  %v2951_v29 = vor.u32 %v4127_v17, %v2950_v11  ;;  %v4339_v11 = vld [vmem:[#allocation7 + $0x6b4] sm:$0xf0] }
 0x108   :  { %v3703_v37 = vor.u32 %v4315_v25, %v3702_v23  ;;  %v3654_v12 = vld [vmem:[#allocation7 + $0x588] sm:$0xf]  ;;  %v4263_v36 = vld [vmem:[#allocation7 + $0x454] sm:$0xf0] }
 0x109   :  { %2269 = vmatpush.bf16.msra.mxu2 %v3303_v26  ;;  %v3222_v26 = vld [vmem:[#allocation7 + $0x228] sm:$0xf]  ;;  %v4295_v39 = vld [vmem:[#allocation7 + $0x554] sm:$0xf0] }
 0x10a   :  { %2283 = vmatpush.bf16.msra.mxu3 %v3431_v30  ;;  %v3350_v30 = vld [vmem:[#allocation7 + $0x328] sm:$0xf]  ;;  %v4327_v56 = vld [vmem:[#allocation7 + $0x654] sm:$0xf0] }
 0x10b   :  { %2243 = vmatpush.bf16.msra.mxu0 %v3015_v34  ;;  %2257 = vmatpush.bf16.msra.mxu1 %v3143_v38  ;;  %v3575_v34 = vor.u32 %v4283_v22, %v3574_v21  ;;  %v3223_v38 = vor.u32 %v4195_v28, %v3222_v26  ;;  %v3351_v42 = vor.u32 %v4227_v31, %v3350_v30  ;;  %v3926_v17 = vld [vmem:[#allocation7 + $0x7a8] sm:$0xf]  ;;  %v4267_v21 = vld [vmem:[#allocation7 + $0x474] sm:$0xf0] }
 0x10c   :  { %v3799_v22 = vor.u32 %v4339_v11, %v3798_v15  ;;  %v3638_v23 = vld [vmem:[#allocation7 + $0x568] sm:$0xf]  ;;  %v3927_v25 = vor.u32 %v4371_v18, %v3926_v17  ;;  %v4335_v28 = vld [vmem:[#allocation7 + $0x694] sm:$0xf0]  ;;  %v4149_v17 = vld [vmem:[#allocation7 + $0xcc] sm:$0xf] }
 0x10d   :  { %2270 = vmatpush.bf16.msra.mxu2 %v3287_v41  ;;  %v4311_v41 = vld [vmem:[#allocation7 + $0x5d4] sm:$0xf0]  ;;  %v3782_v26 = vld [vmem:[#allocation7 + $0x688] sm:$0xf] }
 0x10e   :  { %2284 = vmatpush.bf16.msra.mxu3 %v3415_v45  ;;  %v4191_v45 = vld [vmem:[#allocation7 + $0x214] sm:$0xf0]  ;;  %v3687_v54 = vor.u32 %v4311_v41, %v3686_v40  ;;  %v3910_v30 = vld [vmem:[#allocation7 + $0x788] sm:$0xf] }
 0x10f   :  { %2244 = vmatpush.bf16.msra.mxu0 %v2999_v48  ;;  %2258 = vmatpush.bf16.msra.mxu1 %v3127_v52  ;;  %v3830_v48 = vld [vmem:[#allocation7 + $0x6e8] sm:$0xf]  ;;  %v4367_v31 = vld [vmem:[#allocation7 + $0x794] sm:$0xf0] }
 0x110   :  { %v3958_v52 = vld [vmem:[#allocation7 + $0x7e8] sm:$0xf]  ;;  %v3831_v61 = vor.u32 %v4347_v50, %v3830_v48  ;;  %v3911_v40 = vor.u32 %v4367_v31, %v3910_v30  ;;  %v4259_v50 = vld [vmem:[#allocation7 + $0x434] sm:$0xf0]  ;;  %v3320_v30 = vld [vmem:[#allocation7 + $0x2f8] sm:$0xf0] }
 0x111   :  { %2271 = vmatpush.bf16.msra.mxu2 %v3271_v55  ;;  %v3207_v55 = vor.u32 %v4191_v45, %v3206_v43  ;;  %v3959_v0 = vor.u32 %v4379_v53, %v3958_v52  ;;  %v3766_v41 = vld [vmem:[#allocation7 + $0x668] sm:$0xf]  ;;  %v4291_v53 = vld [vmem:[#allocation7 + $0x534] sm:$0xf0] }
 0x112   :  { %2285 = vmatpush.bf16.msra.mxu3 %v3399_v59  ;;  %v3335_v59 = vor.u32 %v4223_v47, %v3334_v46  ;;  %v3894_v45 = vld [vmem:[#allocation7 + $0x768] sm:$0xf]  ;;  %v4363_v46 = vld [vmem:[#allocation7 + $0x774] sm:$0xf0] }
 0x113   :  { %2245 = vmatpush.bf16.msra.mxu0 %v2983_v63  ;;  %2259 = vmatpush.bf16.msra.mxu1 %v3111_v3  ;;  %v4307_v63 = vld [vmem:[#allocation7 + $0x5b4] sm:$0xf0]  ;;  %v3478_v48 = vld [vmem:[#allocation7 + $0x428] sm:$0xf] }
 0x114   :  { %v4343_v3 = vld [vmem:[#allocation7 + $0x6d4] sm:$0xf0]  ;;  %v3671_v7 = vor.u32 %v4307_v63, %v3670_v62  ;;  %v3606_v52 = vld [vmem:[#allocation7 + $0x528] sm:$0xf]  ;;  %v3479_v57 = vor.u32 %v4259_v50, %v3478_v48  ;;  %v4245_v50 = vld [vmem:[#allocation7 + $0x3cc] sm:$0xf] }
 0x115   :  { %2272 = vmatpush.bf16.msra.mxu2 %v3255_v6  ;;  %v4375_v6 = vld [vmem:[#allocation7 + $0x7d4] sm:$0xf0]  ;;  %v3815_v35 = vor.u32 %v4343_v3, %v3814_v2  ;;  %v3462_v62 = vld [vmem:[#allocation7 + $0x408] sm:$0xf]  ;;  %v3607_v63 = vor.u32 %v4291_v53, %v3606_v52  ;;  %v4141_v53 = vld [vmem:[#allocation7 + $0x8c] sm:$0xf] }
 0x116   :  { %2286 = vmatpush.bf16.msra.mxu3 %v3383_v10  ;;  %v4271_v10 = vld [vmem:[#allocation7 + $0x494] sm:$0xf0]  ;;  %v3943_v14 = vor.u32 %v4375_v6, %v3942_v5  ;;  %v3590_v2 = vld [vmem:[#allocation7 + $0x508] sm:$0xf]  ;;  %v4153_v5 = vld [vmem:[#allocation7 + $0xec] sm:$0xf] }
 0x117   :  { %2246 = vmatpush.bf16.msra.mxu0 %v2967_v13  ;;  %2260 = vmatpush.bf16.msra.mxu1 %v3095_v16  ;;  %v4303_v13 = vld [vmem:[#allocation7 + $0x594] sm:$0xf0]  ;;  %v3527_v16 = vor.u32 %v4271_v10, %v3526_v8  ;;  %v3064_v6 = vld [vmem:[#allocation7 + $0xf8] sm:$0xf0] }
 0x118   :  { %v3655_v19 = vor.u32 %v4303_v13, %v3654_v12  ;;  %v4287_v3 = vld [vmem:[#allocation7 + $0x514] sm:$0xf0]  ;;  %v3192_v10 = vld [vmem:[#allocation7 + $0x1f8] sm:$0xf0] }
 0x119   :  { %2273 = vmatpush.bf16.msra.mxu2 %v3239_v20  ;;  %v3510_v20 = vld [vmem:[#allocation7 + $0x468] sm:$0xf]  ;;  %v4323_v12 = vld [vmem:[#allocation7 + $0x634] sm:$0xf0]  ;;  %v3591_v11 = vor.u32 %v4287_v3, %v3590_v2  ;;  %v3416_v2 = vld [vmem:[#allocation7 + $0x3b8] sm:$0xf0] }
 0x11a   :  { %2287 = vmatpush.bf16.msra.mxu3 %v3367_v24  ;;  %v4299_v24 = vld [vmem:[#allocation7 + $0x574] sm:$0xf0] }
 0x11b   :  { %2247 = vmatpush.bf16.msra.mxu0 %v2951_v29  ;;  %2261 = vmatpush.bf16.msra.mxu1 %v3079_v32  ;;  %v3511_v29 = vor.u32 %v4267_v21, %v3510_v20  ;;  %v3639_v32 = vor.u32 %v4299_v24, %v3638_v23  ;;  %v4355_v15 = vld [vmem:[#allocation7 + $0x734] sm:$0xf0]  ;;  %v3048_v20 = vld [vmem:[#allocation7 + $0xd8] sm:$0xf0]  ;;  %v4181_v21 = vld [vmem:[#allocation7 + $0x1cc] sm:$0xf] }
 0x11c   :  { %v3718_v24 = vld [vmem:[#allocation7 + $0x608] sm:$0xf]  ;;  %v3051_v31 = vor.u32 %v4149_v17, %v3048_v20  ;;  %v4133_v17 = vld [vmem:[#allocation7 + $0x4c] sm:$0xf] }
 0x11d   :  { %2274 = vmatpush.bf16.msra.mxu2 %v3223_v38  ;;  %v3622_v38 = vld [vmem:[#allocation7 + $0x548] sm:$0xf]  ;;  %v4165_v20 = vld [vmem:[#allocation7 + $0x14c] sm:$0xf] }
 0x11e   :  { %2288 = vmatpush.bf16.msra.mxu3 %v3351_v42  ;;  %2248 = vmatmul.bf16.vlgmr.msra.gmra.mxu0 %v4680_v60  ;;  %v4331_v42 = vld [vmem:[#allocation7 + $0x674] sm:$0xf0]  ;;  %v3623_v47 = vor.u32 %v4295_v39, %v3622_v38  ;;  %v4145_v38 = vld [vmem:[#allocation7 + $0xac] sm:$0xf]  ;;  %v3032_v39 = vld [vmem:[#allocation7 + $0xb8] sm:$0xf0] }
 0x11f   :  { %2296 = vmatpush.bf16.msrb.mxu0 %v3575_v34  ;;  %2310 = vmatpush.bf16.msrb.mxu1 %v3703_v37  ;;  %v3494_v34 = vld [vmem:[#allocation7 + $0x448] sm:$0xf]  ;;  %v3783_v37 = vor.u32 %v4335_v28, %v3782_v26  ;;  %v4351_v28 = vld [vmem:[#allocation7 + $0x714] sm:$0xf0]  ;;  %v3035_v48 = vor.u32 %v4145_v38, %v3032_v39  ;;  %v4197_v39 = vld [vmem:[#allocation7 + $0x24c] sm:$0xf] }
 0x120   :  { %2262 = vmatmul.bf16.vlgmr.msra.gmra.mxu1 %v4682_v1  ;;  %v3495_v43 = vor.u32 %v4263_v36, %v3494_v34  ;;  %v3846_v26 = vld [vmem:[#allocation7 + $0x708] sm:$0xf]  ;;  %v3448_v34 = vld [vmem:[#allocation7 + $0x3f8] sm:$0xf0] }
 0x121   :  { %2275 = vmatpush.bf16.msra.mxu2 %v3207_v55  ;;  %v3750_v55 = vld [vmem:[#allocation7 + $0x648] sm:$0xf] }
 0x122   :  { %2289 = vmatpush.bf16.msra.mxu3 %v3335_v59  ;;  %v3878_v59 = vld [vmem:[#allocation7 + $0x748] sm:$0xf] }
 0x123   :  { %2297 = vmatpush.bf16.msrb.mxu0 %v3559_v51  ;;  %2311 = vmatpush.bf16.msrb.mxu1 %v3687_v54  ;;  %v3767_v51 = vor.u32 %v4331_v42, %v3766_v41  ;;  %v3895_v54 = vor.u32 %v4363_v46, %v3894_v45  ;;  %v4177_v42 = vld [vmem:[#allocation7 + $0x1ac] sm:$0xf] }
 0x124   :  { %2276 = vmatmul.bf16.vlgmr.msra.gmra.mxu2 %v4688_v27  ;;  %v4213_v46 = vld [vmem:[#allocation7 + $0x2cc] sm:$0xf] }
 0x125   :  { %2324 = vmatpush.bf16.msrb.mxu2 %v3831_v61  ;;  %2290 = vmatmul.bf16.vlgmr.msra.gmra.mxu3 %v4690_v33  ;;  %v4359_v61 = vld [vmem:[#allocation7 + $0x754] sm:$0xf0] }
 0x126   :  { %2338 = vmatpush.bf16.msrb.mxu3 %v3959_v0  ;;  %v4255_v0 = vld [vmem:[#allocation7 + $0x414] sm:$0xf0]  ;;  %v3879_v8 = vor.u32 %v4359_v61, %v3878_v59  ;;  %v4209_v61 = vld [vmem:[#allocation7 + $0x2ac] sm:$0xf] }
 0x127   :  { %2298 = vmatpush.bf16.msrb.mxu0 %v3543_v4  ;;  %2312 = vmatpush.bf16.msrb.mxu1 %v3671_v7  ;;  %v3751_v4 = vor.u32 %v4327_v56, %v3750_v55  ;;  %v4185_v7 = vld [vmem:[#allocation7 + $0x1ec] sm:$0xf]  ;;  %v3463_v13 = vor.u32 %v4255_v0, %v3462_v62  ;;  %v3288_v62 = vld [vmem:[#allocation7 + $0x2b8] sm:$0xf0] }
 0x128   :  { %v3195_v18 = vor.u32 %v4185_v7, %v3192_v10  ;;  %v4173_v56 = vld [vmem:[#allocation7 + $0x18c] sm:$0xf] }
 0x129   :  { %2325 = vmatpush.bf16.msrb.mxu2 %v3815_v35  ;;  %v3734_v35 = vld [vmem:[#allocation7 + $0x628] sm:$0xf]  ;;  %v4241_v0 = vld [vmem:[#allocation7 + $0x3ac] sm:$0xf] }
 0x12a   :  { %2339 = vmatpush.bf16.msrb.mxu3 %v3943_v14  ;;  %v3862_v14 = vld [vmem:[#allocation7 + $0x728] sm:$0xf]  ;;  %v4169_v7 = vld [vmem:[#allocation7 + $0x16c] sm:$0xf]  ;;  %v3419_v10 = vor.u32 %v4241_v0, %v3416_v2 }
 0x12b   :  { %2299 = vmatpush.bf16.msrb.mxu0 %v3527_v16  ;;  %2313 = vmatpush.bf16.msrb.mxu1 %v3655_v19  ;;  %v3067_v16 = vor.u32 %v4153_v5, %v3064_v6  ;;  %v3735_v19 = vor.u32 %v4323_v12, %v3734_v35  ;;  %v3863_v23 = vor.u32 %v4355_v15, %v3862_v14  ;;  %v3000_v5 = vld [vmem:[#allocation7 + $0x78] sm:$0xf0]  ;;  %v4205_v35 = vld [vmem:[#allocation7 + $0x28c] sm:$0xf] }
 0x12c   :  { %v3291_v6 = vor.u32 %v4209_v61, %v3288_v62  ;;  %v3272_v12 = vld [vmem:[#allocation7 + $0x298] sm:$0xf0]  ;;  %v4237_v14 = vld [vmem:[#allocation7 + $0x38c] sm:$0xf] }
 0x12d   :  { %2326 = vmatpush.bf16.msrb.mxu2 %v3799_v22  ;;  %v3176_v22 = vld [vmem:[#allocation7 + $0x1d8] sm:$0xf0]  ;;  %v4193_v61 = vld [vmem:[#allocation7 + $0x22c] sm:$0xf] }
 0x12e   :  { %2340 = vmatpush.bf16.msrb.mxu3 %v3927_v25  ;;  %v4319_v25 = vld [vmem:[#allocation7 + $0x614] sm:$0xf0]  ;;  %v3179_v36 = vor.u32 %v4181_v21, %v3176_v22  ;;  %v3400_v15 = vld [vmem:[#allocation7 + $0x398] sm:$0xf0]  ;;  %v4225_v2 = vld [vmem:[#allocation7 + $0x32c] sm:$0xf] }
 0x12f   :  { %2300 = vmatpush.bf16.msrb.mxu0 %v3511_v29  ;;  %2314 = vmatpush.bf16.msrb.mxu1 %v3639_v32  ;;  %v4217_v29 = vld [vmem:[#allocation7 + $0x2ec] sm:$0xf]  ;;  %v3112_v21 = vld [vmem:[#allocation7 + $0x158] sm:$0xf0]  ;;  %v3403_v22 = vor.u32 %v4237_v14, %v3400_v15 }
 0x130   :  { %v4249_v32 = vld [vmem:[#allocation7 + $0x3ec] sm:$0xf]  ;;  %v3323_v41 = vor.u32 %v4217_v29, %v3320_v30  ;;  %v3115_v29 = vor.u32 %v4165_v20, %v3112_v21  ;;  %v3224_v62 = vld [vmem:[#allocation7 + $0x238] sm:$0xf0] }
 0x131   :  { %2327 = vmatpush.bf16.msrb.mxu2 %v3783_v37  ;;  %v3719_v37 = vor.u32 %v4319_v25, %v3718_v24  ;;  %v3451_v45 = vor.u32 %v4249_v32, %v3448_v34  ;;  %v3256_v24 = vld [vmem:[#allocation7 + $0x278] sm:$0xf0]  ;;  %v4129_v30 = vld [vmem:[#allocation7 + $0x2c] sm:$0xf] }
 0x132   :  { %2341 = vmatpush.bf16.msrb.mxu3 %v3911_v40  ;;  %v3847_v40 = vor.u32 %v4351_v28, %v3846_v26  ;;  %v4233_v26 = vld [vmem:[#allocation7 + $0x36c] sm:$0xf]  ;;  %v3384_v28 = vld [vmem:[#allocation7 + $0x378] sm:$0xf0] }
 0x133   :  { %2301 = vmatpush.bf16.msrb.mxu0 %v3495_v43  ;;  %2315 = vmatpush.bf16.msrb.mxu1 %v3623_v47  ;;  %v3160_v43 = vld [vmem:[#allocation7 + $0x1b8] sm:$0xf0]  ;;  %v4161_v34 = vld [vmem:[#allocation7 + $0x12c] sm:$0xf]  ;;  %v3387_v38 = vor.u32 %v4233_v26, %v3384_v28 }
 0x134   :  { %v3304_v47 = vld [vmem:[#allocation7 + $0x2d8] sm:$0xf0]  ;;  %v3163_v52 = vor.u32 %v4177_v42, %v3160_v43  ;;  %v4229_v42 = vld [vmem:[#allocation7 + $0x34c] sm:$0xf] }
 0x135   :  { %2328 = vmatpush.bf16.msrb.mxu2 %v3767_v51  ;;  %v3432_v51 = vld [vmem:[#allocation7 + $0x3d8] sm:$0xf0]  ;;  %v3307_v55 = vor.u32 %v4213_v46, %v3304_v47  ;;  %v4189_v14 = vld [vmem:[#allocation7 + $0x20c] sm:$0xf] }
 0x136   :  { %2342 = vmatpush.bf16.msrb.mxu3 %v3895_v54  ;;  %v3016_v54 = vld [vmem:[#allocation7 + $0x98] sm:$0xf0]  ;;  %v3435_v59 = vor.u32 %v4245_v50, %v3432_v51  ;;  %v4273_v26 = vld [vmem:[#allocation7 + $0x4ac] sm:$0xf] }
 0x137   :  { %2302 = vmatpush.bf16.msrb.mxu0 %v3479_v57  ;;  %2316 = vmatpush.bf16.msrb.mxu1 %v3607_v63  ;;  %v3144_v57 = vld [vmem:[#allocation7 + $0x198] sm:$0xf0]  ;;  %v3019_v63 = vor.u32 %v4141_v53, %v3016_v54  ;;  %v4313_v54 = vld [vmem:[#allocation7 + $0x5ec] sm:$0xf] }
 0x138   :  { %v3147_v3 = vor.u32 %v4173_v56, %v3144_v57  ;;  %v3368_v43 = vld [vmem:[#allocation7 + $0x358] sm:$0xf0] }
 0x139   :  { %2329 = vmatpush.bf16.msrb.mxu2 %v3751_v4  ;;  %v4137_v4 = vld [vmem:[#allocation7 + $0x6c] sm:$0xf]  ;;  %v2952_v47 = vld [vmem:[#allocation7 + $0x18] sm:$0xf0]  ;;  %v3371_v57 = vor.u32 %v4229_v42, %v3368_v43 }
 0x13a   :  { %2343 = vmatpush.bf16.msrb.mxu3 %v3879_v8  ;;  %v3128_v8 = vld [vmem:[#allocation7 + $0x178] sm:$0xf0]  ;;  %v4373_v42 = vld [vmem:[#allocation7 + $0x7cc] sm:$0xf] }
 0x13b   :  { %2303 = vmatpush.bf16.msrb.mxu0 %v3463_v13  ;;  %2317 = vmatpush.bf16.msrb.mxu1 %v3591_v11  ;;  %v3003_v13 = vor.u32 %v4137_v4, %v3000_v5  ;;  %v4724_v11 = vpop.f32.mrf.mxu0  ;;  %v3080_v50 = vld [vmem:[#allocation7 + $0x118] sm:$0xf0] }
 0x13c   :  { %v3576_v53 = vld [vmem:[#allocation7 + $0x4f8] sm:$0xf0] }
 0x13d   :  { %2330 = vmatpush.bf16.msrb.mxu2 %v3735_v19  ;;  %v3275_v19 = vor.u32 %v4205_v35, %v3272_v12  ;;  %v4309_v35 = vld [vmem:[#allocation7 + $0x5cc] sm:$0xf]  ;;  %v3688_v12 = vld [vmem:[#allocation7 + $0x5d8] sm:$0xf0] }
 0x13e   :  { %2344 = vmatpush.bf16.msrb.mxu3 %v3863_v23  ;;  %2304 = vmatmul.bf16.vlgmr.msrb.gmra.mxu0 %v4696_v9  ;;  %v4201_v23 = vld [vmem:[#allocation7 + $0x26c] sm:$0xf]  ;;  %v3208_v15 = vld [vmem:[#allocation7 + $0x218] sm:$0xf0] }
 0x13f   :  { %2352 = vmatpush.bf16.msra.mxu0 %v3067_v16  ;;  %2366 = vmatpush.bf16.msra.mxu1 %v3195_v18  ;;  %v3131_v16 = vor.u32 %v4169_v7, %v3128_v8  ;;  %v2984_v18 = vld [vmem:[#allocation7 + $0x58] sm:$0xf0]  ;;  %v3259_v32 = vor.u32 %v4201_v23, %v3256_v24  ;;  %v3227_v8 = vor.u32 %v4193_v61, %v3224_v62  ;;  %v4265_v62 = vld [vmem:[#allocation7 + $0x46c] sm:$0xf] }
 0x140   :  { %2318 = vmatmul.bf16.vlgmr.msrb.gmra.mxu1 %v4698_v58  ;;  %v2987_v25 = vor.u32 %v4133_v17, %v2984_v18  ;;  %v3336_v17 = vld [vmem:[#allocation7 + $0x318] sm:$0xf0]  ;;  %v4345_v18 = vld [vmem:[#allocation7 + $0x6ec] sm:$0xf]  ;;  %v3691_v24 = vor.u32 %v4309_v35, %v3688_v12 }
 0x141   :  { %2331 = vmatpush.bf16.msrb.mxu2 %v3719_v37  ;;  %v4726_v37 = vpop.f32.mrf.mxu1  ;;  %v3960_v23 = vld [vmem:[#allocation7 + $0x7f8] sm:$0xf0]  ;;  %v4261_v12 = vld [vmem:[#allocation7 + $0x44c] sm:$0xf] }
 0x142   :  { %2345 = vmatpush.bf16.msrb.mxu3 %v3847_v40  ;;  %v3240_v40 = vld [vmem:[#allocation7 + $0x258] sm:$0xf0] }
 0x143   :  { %2353 = vmatpush.bf16.msra.mxu0 %v3051_v31  ;;  %2367 = vmatpush.bf16.msra.mxu1 %v3179_v36  ;;  %v2968_v31 = vld [vmem:[#allocation7 + $0x38] sm:$0xf0]  ;;  %v3243_v51 = vor.u32 %v4197_v39, %v3240_v40 }
 0x144   :  { %2332 = vmatmul.bf16.vlgmr.msrb.gmra.mxu2 %v4702_v44  ;;  %v3096_v36 = vld [vmem:[#allocation7 + $0x138] sm:$0xf0] }
 0x145   :  { %2380 = vmatpush.bf16.msra.mxu2 %v3323_v41  ;;  %2346 = vmatmul.bf16.vlgmr.msrb.gmra.mxu3 %v4704_v49  ;;  %v2971_v41 = vor.u32 %v4129_v30, %v2968_v31  ;;  %v3099_v46 = vor.u32 %v4161_v34, %v3096_v36  ;;  %v3544_v28 = vld [vmem:[#allocation7 + $0x4b8] sm:$0xf0]  ;;  %v4305_v31 = vld [vmem:[#allocation7 + $0x5ac] sm:$0xf] }
 0x146   :  { %2394 = vmatpush.bf16.msra.mxu3 %v3451_v45  ;;  %v4125_v45 = vld [vmem:[#allocation7 + $0xc] sm:$0xf]  ;;  %v3944_v43 = vld [vmem:[#allocation7 + $0x7d8] sm:$0xf0] }
 0x147   :  { %2354 = vmatpush.bf16.msra.mxu0 %v3035_v48  ;;  %2368 = vmatpush.bf16.msra.mxu1 %v3163_v52  ;;  %v4157_v48 = vld [vmem:[#allocation7 + $0x10c] sm:$0xf]  ;;  %v4730_v56 = vpop.f32.mrf.mxu2  ;;  %v2955_v0 = vor.u32 %v4125_v45, %v2952_v47  ;;  %v3528_v47 = vld [vmem:[#allocation7 + $0x498] sm:$0xf0] }
 0x148   :  { %v4281_v52 = vld [vmem:[#allocation7 + $0x4ec] sm:$0xf]  ;;  %v3083_v4 = vor.u32 %v4157_v48, %v3080_v50  ;;  %v3656_v50 = vld [vmem:[#allocation7 + $0x598] sm:$0xf0] }
 0x149   :  { %2381 = vmatpush.bf16.msra.mxu2 %v3307_v55  ;;  %v4728_v55 = vpop.f32.mrf.mxu0  ;;  %v3579_v5 = vor.u32 %v4281_v52, %v3576_v53  ;;  %v4734_v20 = vpop.f32.mrf.mxu1  ;;  %v4341_v36 = vld [vmem:[#allocation7 + $0x6cc] sm:$0xf]  ;;  %v3800_v53 = vld [vmem:[#allocation7 + $0x6b8] sm:$0xf0] }
 0x14a   :  { %2395 = vmatpush.bf16.msra.mxu3 %v3435_v59  ;;  %v3704_v59 = vld [vmem:[#allocation7 + $0x5f8] sm:$0xf0]  ;;  %v4301_v48 = vld [vmem:[#allocation7 + $0x58c] sm:$0xf] }
 0x14b   :  { %2355 = vmatpush.bf16.msra.mxu0 %v3019_v63  ;;  %2369 = vmatpush.bf16.msra.mxu1 %v3147_v3  ;;  %v4732_v63 = vpop.f32.mrf.mxu3  ;;  %v3352_v3 = vld [vmem:[#allocation7 + $0x338] sm:$0xf0]  ;;  %v3707_v7 = vor.u32 %v4313_v54, %v3704_v59  ;;  %v4337_v52 = vld [vmem:[#allocation7 + $0x6ac] sm:$0xf]  ;;  %v3659_v61 = vor.u32 %v4301_v48, %v3656_v50 }
 0x14c   :  { %v3928_v59 = vld [vmem:[#allocation7 + $0x7b8] sm:$0xf0]  ;;  %v4253_v48 = vld [vmem:[#allocation7 + $0x40c] sm:$0xf] }
 0x14d   :  { %2382 = vmatpush.bf16.msra.mxu2 %v3291_v6  ;;  %v4277_v6 = vld [vmem:[#allocation7 + $0x4cc] sm:$0xf]  ;;  %v3912_v35 = vld [vmem:[#allocation7 + $0x798] sm:$0xf0] }
 0x14e   :  { %2396 = vmatpush.bf16.msra.mxu3 %v3419_v10  ;;  %v3560_v10 = vld [vmem:[#allocation7 + $0x4d8] sm:$0xf0] }
 0x14f   :  { %2356 = vmatpush.bf16.msra.mxu0 %v3003_v13  ;;  %2370 = vmatpush.bf16.msra.mxu1 %v3131_v16  ;;  %v3355_v13 = vor.u32 %v4225_v2, %v3352_v3  ;;  %v4221_v16 = vld [vmem:[#allocation7 + $0x30c] sm:$0xf]  ;;  %v3563_v21 = vor.u32 %v4277_v6, %v3560_v10  ;;  %v4740_v40 = vpop.f32.mrf.mxu2  ;;  %v3803_v3 = vor.u32 %v4337_v52, %v3800_v53  ;;  %v3464_v50 = vld [vmem:[#allocation7 + $0x418] sm:$0xf0] }
 0x150   :  { %v4365_v10 = vld [vmem:[#allocation7 + $0x78c] sm:$0xf]  ;;  %v3592_v53 = vld [vmem:[#allocation7 + $0x518] sm:$0xf0] }
 0x151   :  { %2383 = vmatpush.bf16.msra.mxu2 %v3275_v19  ;;  %v3832_v19 = vld [vmem:[#allocation7 + $0x6f8] sm:$0xf0]  ;;  %v4738_v39 = vpop.f32.mrf.mxu0  ;;  %v4746_v2 = vpop.f32.mrf.mxu1  ;;  %v4285_v52 = vld [vmem:[#allocation7 + $0x50c] sm:$0xf] }
 0x152   :  { %2397 = vmatpush.bf16.msra.mxu3 %v3403_v22  ;;  %v4377_v22 = vld [vmem:[#allocation7 + $0x7ec] sm:$0xf]  ;;  %v3835_v30 = vor.u32 %v4345_v18, %v3832_v19  ;;  %v3624_v18 = vld [vmem:[#allocation7 + $0x558] sm:$0xf0] }
 0x153   :  { %2357 = vmatpush.bf16.msra.mxu0 %v2987_v25  ;;  %2371 = vmatpush.bf16.msra.mxu1 %v3115_v29  ;;  %v3211_v25 = vor.u32 %v4189_v14, %v3208_v15  ;;  %v3339_v29 = vor.u32 %v4221_v16, %v3336_v17  ;;  %v3963_v34 = vor.u32 %v4377_v22, %v3960_v23  ;;  %v4742_v45 = vpop.f32.mrf.mxu3  ;;  %v4293_v17 = vld [vmem:[#allocation7 + $0x54c] sm:$0xf]  ;;  %v3768_v23 = vld [vmem:[#allocation7 + $0x678] sm:$0xf0] }
 0x154   :  { %v4329_v22 = vld [vmem:[#allocation7 + $0x66c] sm:$0xf] }
 0x155   :  { %2384 = vmatpush.bf16.msra.mxu2 %v3259_v32  ;;  %v3672_v32 = vld [vmem:[#allocation7 + $0x5b8] sm:$0xf0] }
 0x156   :  { %2398 = vmatpush.bf16.msra.mxu3 %v3387_v38  ;;  %v3816_v38 = vld [vmem:[#allocation7 + $0x6d8] sm:$0xf0] }
 0x157   :  { %2358 = vmatpush.bf16.msra.mxu0 %v2971_v41  ;;  %2372 = vmatpush.bf16.msra.mxu1 %v3099_v46  ;;  %v3547_v41 = vor.u32 %v4273_v26, %v3544_v28  ;;  %v4269_v46 = vld [vmem:[#allocation7 + $0x48c] sm:$0xf]  ;;  %v4750_v15 = vpop.f32.mrf.mxu2  ;;  %v3896_v26 = vld [vmem:[#allocation7 + $0x778] sm:$0xf0]  ;;  %v3627_v28 = vor.u32 %v4293_v17, %v3624_v18 }
 0x158   :  { %v3531_v54 = vor.u32 %v4269_v46, %v3528_v47  ;;  %v3880_v46 = vld [vmem:[#allocation7 + $0x758] sm:$0xf0]  ;;  %v4756_v47 = vld [vmem:[#allocation9] sm:$0xf]  ;;  %v4349_v17 = vld [vmem:[#allocation7 + $0x70c] sm:$0xf] }
 0x159   :  { %2385 = vmatpush.bf16.msra.mxu2 %v3243_v51  ;;  %v3947_v51 = vor.u32 %v4373_v42, %v3944_v43  ;;  %v4748_v14 = vpop.f32.mrf.mxu0  ;;  %v4754_v42 = vpop.f32.mrf.mxu1  ;;  %v3848_v18 = vld [vmem:[#allocation7 + $0x718] sm:$0xf0] }
 0x15a   :  { %2399 = vmatpush.bf16.msra.mxu3 %v3371_v57  ;;  %v4369_v57 = vld [vmem:[#allocation7 + $0x7ac] sm:$0xf] }
 0x15b   :  { %2359 = vmatpush.bf16.msra.mxu0 %v2955_v0  ;;  %2373 = vmatpush.bf16.msra.mxu1 %v3083_v4  ;;  %v3512_v0 = vld [vmem:[#allocation7 + $0x478] sm:$0xf0]  ;;  %v4297_v4 = vld [vmem:[#allocation7 + $0x56c] sm:$0xf]  ;;  %v3931_v6 = vor.u32 %v4369_v57, %v3928_v59  ;;  %v4752_v19 = vpop.f32.mrf.mxu3 }
 0x15c   :  { %v4321_v57 = vld [vmem:[#allocation7 + $0x62c] sm:$0xf]  ;;  %v3736_v59 = vld [vmem:[#allocation7 + $0x638] sm:$0xf0] }
 0x15d   :  { %2386 = vmatpush.bf16.msra.mxu2 %v3227_v8  ;;  %v3515_v8 = vor.u32 %v4265_v62, %v3512_v0 }
 0x15e   :  { %2400 = vmatpush.bf16.msra.mxu3 %v3355_v13  ;;  %2360 = vmatmul.bf16.vlgmr.msra.gmra.mxu0 %v4680_v60  ;;  %v3675_v60 = vor.u32 %v4305_v31, %v3672_v32  ;;  %v3496_v13 = vld [vmem:[#allocation7 + $0x458] sm:$0xf0]  ;;  %v3771_v31 = vor.u32 %v4329_v22, %v3768_v23  ;;  %v4289_v32 = vld [vmem:[#allocation7 + $0x52c] sm:$0xf] }
 0x15f   :  { %2408 = vmatpush.bf16.msrb.mxu0 %v3579_v5  ;;  %2422 = vmatpush.bf16.msrb.mxu1 %v3707_v7  ;;  %v3640_v5 = vld [vmem:[#allocation7 + $0x578] sm:$0xf0]  ;;  %v4333_v7 = vld [vmem:[#allocation7 + $0x68c] sm:$0xf]  ;;  %v4759_v0 = vpop.f32.mrf.mxu2 }
 0x160   :  { %2374 = vmatmul.bf16.vlgmr.msra.gmra.mxu1 %v4682_v1  ;;  %v3819_v1 = vor.u32 %v4341_v36, %v3816_v38  ;;  %v4325_v38 = vld [vmem:[#allocation7 + $0x64c] sm:$0xf] }
 0x161   :  { %2387 = vmatpush.bf16.msra.mxu2 %v3211_v25  ;;  %v4361_v25 = vld [vmem:[#allocation7 + $0x76c] sm:$0xf]  ;;  %v2137_v62 = vpop.f32.mrf.mxu0  ;;  %v2151_v23 = vpop.f32.mrf.mxu1 }
 0x162   :  { %2401 = vmatpush.bf16.msra.mxu3 %v3339_v29  ;;  %v4257_v29 = vld [vmem:[#allocation7 + $0x42c] sm:$0xf]  ;;  %v3899_v36 = vor.u32 %v4361_v25, %v3896_v26  ;;  %v3851_v25 = vor.u32 %v4349_v17, %v3848_v18 }
 0x163   :  { %2409 = vmatpush.bf16.msrb.mxu0 %v3563_v21  ;;  %2423 = vmatpush.bf16.msrb.mxu1 %v3691_v24  ;;  %v3915_v21 = vor.u32 %v4365_v10, %v3912_v35  ;;  %v3499_v24 = vor.u32 %v4261_v12, %v3496_v13  ;;  %v3739_v10 = vor.u32 %v4321_v57, %v3736_v59  ;;  %v4395_v35 = vld [vmem:[#allocation10 + $0x78] sm:$0xff]  ;;  %v4317_v12 = vld [vmem:[#allocation7 + $0x60c] sm:$0xf] }
 0x164   :  { %2388 = vmatmul.bf16.vlgmr.msra.gmra.mxu2 %v4688_v27  ;;  %v3784_v27 = vld [vmem:[#allocation7 + $0x698] sm:$0xf0] }
 0x165   :  { %2436 = vmatpush.bf16.msrb.mxu2 %v3835_v30  ;;  %2402 = vmatmul.bf16.vlgmr.msra.gmra.mxu3 %v4690_v33  ;;  %v3643_v33 = vor.u32 %v4297_v4, %v3640_v5  ;;  %v3787_v16 = vor.u32 %v4333_v7, %v3784_v27  ;;  %v3480_v30 = vld [vmem:[#allocation7 + $0x438] sm:$0xf0]  ;;  %v4353_v4 = vld [vmem:[#allocation7 + $0x72c] sm:$0xf]  ;;  %v3595_v7 = vor.u32 %v4285_v52, %v3592_v53  ;;  %v4390_v52 = vld [vmem:[#allocation10 + $0x50] sm:$0xff] }
 0x166   :  { %2450 = vmatpush.bf16.msrb.mxu3 %v3963_v34  ;;  %v3608_v34 = vld [vmem:[#allocation7 + $0x538] sm:$0xf0]  ;;  %v3483_v43 = vor.u32 %v4257_v29, %v3480_v30 }
 0x167   :  { %2410 = vmatpush.bf16.msrb.mxu0 %v3547_v41  ;;  %2424 = vmatpush.bf16.msrb.mxu1 %v3675_v60  ;;  %v3752_v41 = vld [vmem:[#allocation7 + $0x658] sm:$0xf0]  ;;  %v4357_v60 = vld [vmem:[#allocation7 + $0x74c] sm:$0xf]  ;;  %v2165_v30 = vpop.f32.mrf.mxu2 }
 0x168   :  { %v3864_v5 = vld [vmem:[#allocation7 + $0x738] sm:$0xf0] }
 0x169   :  { %2437 = vmatpush.bf16.msrb.mxu2 %v3819_v1  ;;  %v3611_v1 = vor.u32 %v4289_v32, %v3608_v34  ;;  %v4387_v27 = vld [vmem:[#allocation10 + $0x38] sm:$0xff]  ;;  %v729_v32 = vperm.slane %v4756_v47, 1 }
 0x16a   :  { %2451 = vmatpush.bf16.msrb.mxu3 %v3947_v51  ;;  %v3755_v51 = vor.u32 %v4325_v38, %v3752_v41  ;;  %v3720_v13 = vld [vmem:[#allocation7 + $0x618] sm:$0xf0]  ;;  %v2153_v38 = vpop.f32.mrf.mxu1 }
 0x16b   :  { %2411 = vmatpush.bf16.msrb.mxu0 %v3531_v54  ;;  %2425 = vmatpush.bf16.msrb.mxu1 %v3659_v61  ;;  %v3883_v54 = vor.u32 %v4357_v60, %v3880_v46  ;;  %v728_v61 = vperm.slane %v4756_v47, 0  ;;  %v4383_v41 = vld [vmem:[#allocation10 + $0x18] sm:$0xff] }
 0x16d   :  { %2438 = vmatpush.bf16.msrb.mxu2 %v3803_v3  ;;  %v3467_v3 = vor.u32 %v4253_v48, %v3464_v50  ;;  %v4382_v50 = vld [vmem:[#allocation10 + $0x10] sm:$0xff] }
 0x16e   :  { %2452 = vmatpush.bf16.msrb.mxu3 %v3931_v6  ;;  %v4761_v6 = vpop.f32.mrf.mxu3 }
 0x16f   :  { %2412 = vmatpush.bf16.msrb.mxu0 %v3515_v8  ;;  %2426 = vmatpush.bf16.msrb.mxu1 %v3643_v33  ;;  %v2028_v8 = vadd.f32 %v4728_v55, %v728_v61  ;;  %v3867_v33 = vor.u32 %v4353_v4, %v3864_v5  ;;  %v3723_v55 = vor.u32 %v4317_v12, %v3720_v13 }
 0x171   :  { %2439 = vmatpush.bf16.msrb.mxu2 %v3787_v16  ;;  %v2026_v16 = vadd.f32 %v4724_v11, %v728_v61  ;;  %v2042_v22 = vadd.f32 %v4734_v20, %v2028_v8  ;;  %v2139_v20 = vpop.f32.mrf.mxu0  ;;  %v4381_v61 = vld [vmem:[#allocation10 + $0x8] sm:$0xff] }
 0x172   :  { %2453 = vmatpush.bf16.msrb.mxu3 %v3915_v21  ;;  %v4386_v21 = vld [vmem:[#allocation10 + $0x30] sm:$0xff]  ;;  %v2140_v46 = vadd.f32 %v2139_v20, %v729_v32 }
 0x173   :  { %2413 = vmatpush.bf16.msrb.mxu0 %v3499_v24  ;;  %2427 = vmatpush.bf16.msrb.mxu1 %v3627_v28  ;;  %v4394_v24 = vld [vmem:[#allocation10 + $0x70] sm:$0xff]  ;;  %v2040_v26 = vadd.f32 %v4726_v37, %v2026_v16  ;;  %v2056_v11 = vadd.f32 %v4740_v40, %v2042_v22  ;;  %v4385_v28 = vld [vmem:[#allocation10 + $0x28] sm:$0xff]  ;;  %v4384_v37 = vld [vmem:[#allocation10 + $0x20] sm:$0xff]  ;;  %v2138_v40 = vadd.f32 %v2137_v62, %v729_v32 }
 0x174   :  { %v2154_v53 = vadd.f32 %v2153_v38, %v2140_v46  ;;  %v4389_v62 = vld [vmem:[#allocation10 + $0x48] sm:$0xff] }
 0x175   :  { %2440 = vmatpush.bf16.msrb.mxu2 %v3771_v31  ;;  %v2054_v29 = vadd.f32 %v4730_v56, %v2040_v26  ;;  %v4393_v31 = vld [vmem:[#allocation10 + $0x68] sm:$0xff]  ;;  %v4392_v56 = vld [vmem:[#allocation10 + $0x60] sm:$0xff]  ;;  %v4402_v26 = vld [vmem:[#allocation10 + $0xb0] sm:$0xff] }
 0x176   :  { %2454 = vmatpush.bf16.msrb.mxu3 %v3899_v36  ;;  %v2179_v34 = vpop.f32.mrf.mxu3 }
 0x177   :  { %2414 = vmatpush.bf16.msrb.mxu0 %v3483_v43  ;;  %2428 = vmatpush.bf16.msrb.mxu1 %v3611_v1 }
 0x179   :  { %2441 = vmatpush.bf16.msrb.mxu2 %v3755_v51 }
 0x17a   :  { %2455 = vmatpush.bf16.msrb.mxu3 %v3883_v54 }
 0x17b   :  { %2415 = vmatpush.bf16.msrb.mxu0 %v3467_v3  ;;  %2429 = vmatpush.bf16.msrb.mxu1 %v3595_v7  ;;  %v2193_v60 = vpop.f32.mrf.mxu0 }
 0x17d   :  { %2442 = vmatpush.bf16.msrb.mxu2 %v3739_v10  ;;  %v2207_v54 = vpop.f32.mrf.mxu1 }
 0x17e   :  { %2456 = vmatpush.bf16.msrb.mxu3 %v3867_v33  ;;  %2416 = vmatmul.bf16.vlgmr.msrb.gmra.mxu0 %v4696_v9  ;;  %v2070_v9 = vadd.f32 %v4742_v45, %v2056_v11  ;;  %v4391_v45 = vld [vmem:[#allocation10 + $0x58] sm:$0xff]  ;;  %v4401_v11 = vld [vmem:[#allocation10 + $0xa8] sm:$0xff] }
 0x17f   :  { %2736 = vmatpush.bf16.msra.mxu0 %v4387_v27  ;;  %2750 = vmatpush.bf16.msra.mxu1 %v4395_v35  ;;  %v4380_v27 = vld [vmem:[#allocation10] sm:$0xff] }
 0x180   :  { %2430 = vmatmul.bf16.vlgmr.msrb.gmra.mxu1 %v4698_v58  ;;  %v2068_v58 = vadd.f32 %v4732_v63, %v2054_v29  ;;  %v2084_v36 = vadd.f32 %v4748_v14, %v2070_v9  ;;  %v2167_v63 = vpop.f32.mrf.mxu2  ;;  %v4399_v29 = vld [vmem:[#allocation10 + $0x98] sm:$0xff] }
 0x181   :  { %2443 = vmatpush.bf16.msrb.mxu2 %v3723_v55  ;;  %v2168_v59 = vadd.f32 %v2167_v63, %v2154_v53 }
 0x182   :  { %2457 = vmatpush.bf16.msrb.mxu3 %v3851_v25  ;;  %v2082_v43 = vadd.f32 %v4738_v39, %v2068_v58  ;;  %v2098_v1 = vadd.f32 %v4754_v42, %v2084_v36  ;;  %v730_v58 = vperm.slane %v4756_v47, 2 }
 0x183   :  { %2737 = vmatpush.bf16.msra.mxu0 %v4386_v21  ;;  %2751 = vmatpush.bf16.msra.mxu1 %v4394_v24 }
 0x184   :  { %2444 = vmatmul.bf16.vlgmr.msrb.gmra.mxu2 %v4702_v44  ;;  %v2152_v44 = vadd.f32 %v2151_v23, %v2138_v40  ;;  %v2096_v51 = vadd.f32 %v4746_v2, %v2082_v43  ;;  %v2112_v14 = vadd.f32 %v4759_v0, %v2098_v1  ;;  %v2195_v2 = vpop.f32.mrf.mxu0 }
 0x185   :  { %2458 = vmatmul.bf16.vlgmr.msrb.gmra.mxu3 %v4704_v49  ;;  %v2181_v49 = vpop.f32.mrf.mxu3  ;;  %v2209_v13 = vpop.f32.mrf.mxu1 }
 0x186   :  { %v2166_v48 = vadd.f32 %v2165_v30, %v2152_v44  ;;  %v2110_v39 = vadd.f32 %v4750_v15, %v2096_v51  ;;  %v2126_v42 = vadd.f32 %v4761_v6, %v2112_v14  ;;  %v2182_v0 = vadd.f32 %v2181_v49, %v2168_v59  ;;  %v4388_v15 = vld [vmem:[#allocation10 + $0x40] sm:$0xff]  ;;  %v4398_v30 = vld [vmem:[#allocation10 + $0x90] sm:$0xff] }
 0x187   :  { %2738 = vmatpush.bf16.msra.mxu0 %v4385_v28  ;;  %2752 = vmatpush.bf16.msra.mxu1 %v4393_v31  ;;  %v4400_v28 = vld [vmem:[#allocation10 + $0xa0] sm:$0xff]  ;;  %v4397_v31 = vld [vmem:[#allocation10 + $0x88] sm:$0xff] }
 0x188   :  { %v2180_v57 = vadd.f32 %v2179_v34, %v2166_v48  ;;  %v2124_v4 = vadd.f32 %v4752_v19, %v2110_v39  ;;  %v2221_v5 = vpop.f32.mrf.mxu2  ;;  %v2468_v8 = vmax.f32 %v2126_v42, 0.0  ;;  %v2196_v35 = vadd.f32 %v2195_v2, %v2182_v0  ;;  %v4403_v19 = vld [vmem:[#allocation10 + $0xb8] sm:$0xff]  ;;  %v4396_v34 = vld [vmem:[#allocation10 + $0x80] sm:$0xff] }
 0x189   :  { %2764 = vmatpush.bf16.msra.mxu2 %v4403_v19  ;;  %v4411_v42 = vld [vmem:[#allocation10 + $0xf8] sm:$0xff]  ;;  %v731_v19 = vperm.slane %v4756_v47, 3 }
 0x18a   :  { %v2194_v3 = vadd.f32 %v2193_v60, %v2180_v57  ;;  %v2464_v33 = vmax.f32 %v2124_v4, 0.0  ;;  %v2210_v16 = vadd.f32 %v2209_v13, %v2196_v35  ;;  %2778 = vmatpush.bf16.msra.mxu3 %v4411_v42  ;;  %v4404_v13 = vld [vmem:[#allocation10 + $0xc0] sm:$0xff] }
 0x18b   :  { %2739 = vmatpush.bf16.msra.mxu0 %v4384_v37  ;;  %2753 = vmatpush.bf16.msra.mxu1 %v4392_v56 }
 0x18c   :  { %v2208_v10 = vadd.f32 %v2207_v54, %v2194_v3  ;;  %v2472_v6 = vpack.c.bf16 %v2468_v8, %v2464_v33  ;;  %v4409_v8 = vld [vmem:[#allocation10 + $0xe8] sm:$0xff]  ;;  %v4406_v33 = vld [vmem:[#allocation10 + $0xd0] sm:$0xff] }
 0x18d   :  { %v2235_v7 = vpop.f32.mrf.mxu3  ;;  %2765 = vmatpush.bf16.msra.mxu2 %v4402_v26 }
 0x18e   :  { %v2222_v12 = vadd.f32 %v2221_v5, %v2208_v10  ;;  %v4407_v10 = vld [vmem:[#allocation10 + $0xd8] sm:$0xff] }
 0x18f   :  { %2740 = vmatpush.bf16.msra.mxu0 %v4383_v41  ;;  %2754 = vmatpush.bf16.msra.mxu1 %v4391_v45 }
 0x190   :  { %v2223_v17 = vpop.f32.mrf.mxu2  ;;  %v2236_v18 = vadd.f32 %v2235_v7, %v2222_v12  ;;  %v4405_v12 = vld [vmem:[#allocation10 + $0xc8] sm:$0xff] }
 0x191   :  { %v2224_v21 = vadd.f32 %v2223_v17, %v2210_v16  ;;  %2766 = vmatpush.bf16.msra.mxu2 %v4401_v11 }
 0x192   :  { %v2465_v55 = vmax.f32 %v2236_v18, 0.0 }
 0x193   :  { %2741 = vmatpush.bf16.msra.mxu0 %v4382_v50  ;;  %2755 = vmatpush.bf16.msra.mxu1 %v4390_v52 }
 0x195   :  { %v2237_v22 = vpop.f32.mrf.mxu3  ;;  %2767 = vmatpush.bf16.msra.mxu2 %v4400_v28 }
 0x196   :  { %v2238_v23 = vadd.f32 %v2237_v22, %v2224_v21 }
 0x197   :  { %2742 = vmatpush.bf16.msra.mxu0 %v4381_v61  ;;  %2756 = vmatpush.bf16.msra.mxu1 %v4389_v62 }
 0x198   :  { %v2469_v24 = vmax.f32 %v2238_v23, 0.0 }
 0x199   :  { %2768 = vmatpush.bf16.msra.mxu2 %v4399_v29 }
 0x19a   :  { %v2473_v25 = vpack.c.bf16 %v2469_v24, %v2465_v55 }
 0x19b   :  { %2743 = vmatpush.bf16.msra.mxu0 %v4380_v27  ;;  %2757 = vmatpush.bf16.msra.mxu1 %v4388_v15  ;;  %v2249_v20 = vpop.f32.mrf.mxu0  ;;  %v4410_v27 = vld [vmem:[#allocation10 + $0xf0] sm:$0xff]  ;;  %v4408_v15 = vld [vmem:[#allocation10 + $0xe0] sm:$0xff] }
 0x19c   :  { %v2250_v40 = vadd.f32 %v2249_v20, %v730_v58  ;;  %2779 = vmatpush.bf16.msra.mxu3 %v4410_v27 }
 0x19d   :  { %2769 = vmatpush.bf16.msra.mxu2 %v4398_v30  ;;  %v2263_v32 = vpop.f32.mrf.mxu1 }
 0x19e   :  { %2744 = vmatmul.bf16.vlgmr.msra.gmra.mxu0 %v2472_v6  ;;  %2758 = vmatmul.bf16.vlgmr.msra.gmra.mxu1 %v2473_v25  ;;  %v2264_v41 = vadd.f32 %v2263_v32, %v2250_v40 }
 0x1a0   :  { %2780 = vmatpush.bf16.msra.mxu3 %v4409_v8 }
 0x1a1   :  { %2770 = vmatpush.bf16.msra.mxu2 %v4397_v31 }
 0x1a3   :  { %v2251_v9 = vpop.f32.mrf.mxu0 }
 0x1a4   :  { %v2252_v43 = vadd.f32 %v2251_v9, %v730_v58  ;;  %2781 = vmatpush.bf16.msra.mxu3 %v4408_v15 }
 0x1a5   :  { %2771 = vmatpush.bf16.msra.mxu2 %v4396_v34  ;;  %v2265_v36 = vpop.f32.mrf.mxu1 }
 0x1a6   :  { %v2266_v46 = vadd.f32 %v2265_v36, %v2252_v43 }
 0x1a7   :  { %v2277_v37 = vpop.f32.mrf.mxu2 }
 0x1a8   :  { %v2291_v56 = vpop.f32.mrf.mxu3  ;;  %v2278_v45 = vadd.f32 %v2277_v37, %v2264_v41  ;;  %2782 = vmatpush.bf16.msra.mxu3 %v4407_v10 }
 0x1aa   :  { %v2292_v63 = vadd.f32 %v2291_v56, %v2278_v45 }
 0x1ac   :  { %2783 = vmatpush.bf16.msra.mxu3 %v4406_v33 }
 0x1af   :  { %v2279_v60 = vpop.f32.mrf.mxu2 }
 0x1b0   :  { %v2293_v44 = vpop.f32.mrf.mxu3  ;;  %v2280_v48 = vadd.f32 %v2279_v60, %v2266_v46  ;;  %2784 = vmatpush.bf16.msra.mxu3 %v4405_v12 }
 0x1b2   :  { %v2294_v14 = vadd.f32 %v2293_v44, %v2280_v48 }
 0x1b4   :  { %2785 = vmatpush.bf16.msra.mxu3 %v4404_v13 }
 0x1bb   :  { %v2305_v38 = vpop.f32.mrf.mxu0 }
 0x1bc   :  { %v2306_v49 = vadd.f32 %v2305_v38, %v2292_v63 }
 0x1bd   :  { %v2319_v1 = vpop.f32.mrf.mxu1 }
 0x1be   :  { %v2320_v53 = vadd.f32 %v2319_v1, %v2306_v49 }
 0x1c3   :  { %v2307_v50 = vpop.f32.mrf.mxu0 }
 0x1c4   :  { %v2308_v39 = vadd.f32 %v2307_v50, %v2294_v14  ;;  %v4431_v50 = vld [vmem:[%s4798_s6] ss:$0 sm:$0xff] }
 0x1c5   :  { %v2321_v57 = vpop.f32.mrf.mxu1 }
 0x1c6   :  { %v2322_v59 = vadd.f32 %v2321_v57, %v2308_v39 }
 0x1c7   :  { %v2333_v51 = vpop.f32.mrf.mxu2 }
 0x1c8   :  { %v2347_v52 = vpop.f32.mrf.mxu3  ;;  %v2334_v54 = vadd.f32 %v2333_v51, %v2320_v53 }
 0x1ca   :  { %v2348_v62 = vadd.f32 %v2347_v52, %v2334_v54 }
 0x1cc   :  { %v2466_v5 = vmax.f32 %v2348_v62, 0.0 }
 0x1cf   :  { %v2335_v61 = vpop.f32.mrf.mxu2 }
 0x1d0   :  { %v2336_v3 = vadd.f32 %v2335_v61, %v2322_v59  ;;  %v2349_v4 = vpop.f32.mrf.mxu3 }
 0x1d2   :  { %v2350_v2 = vadd.f32 %v2349_v4, %v2336_v3 }
 0x1d4   :  { %v2470_v0 = vmax.f32 %v2350_v2, 0.0 }
 0x1d6   :  { %v2474_v7 = vpack.c.bf16 %v2470_v0, %v2466_v5 }
 0x1d8   :  { %2772 = vmatmul.bf16.vlgmr.msra.gmra.mxu2 %v2474_v7 }
 0x1db   :  { %v2361_v35 = vpop.f32.mrf.mxu0 }
 0x1dc   :  { %v2362_v21 = vadd.f32 %v2361_v35, %v731_v19 }
 0x1dd   :  { %v2375_v6 = vpop.f32.mrf.mxu1 }
 0x1de   :  { %v2376_v55 = vadd.f32 %v2375_v6, %v2362_v21 }
 0x1e3   :  { %v2363_v16 = vpop.f32.mrf.mxu0 }
 0x1e4   :  { %v2364_v24 = vadd.f32 %v2363_v16, %v731_v19 }
 0x1e5   :  { %v2377_v22 = vpop.f32.mrf.mxu1 }
 0x1e6   :  { %v2378_v28 = vadd.f32 %v2377_v22, %v2364_v24 }
 0x1e7   :  { %v2389_v17 = vpop.f32.mrf.mxu2 }
 0x1e8   :  { %v2403_v18 = vpop.f32.mrf.mxu3  ;;  %v2390_v26 = vadd.f32 %v2389_v17, %v2376_v55 }
 0x1ea   :  { %v2404_v20 = vadd.f32 %v2403_v18, %v2390_v26 }
 0x1ef   :  { %v2391_v25 = vpop.f32.mrf.mxu2 }
 0x1f0   :  { %v2405_v11 = vpop.f32.mrf.mxu3  ;;  %v2392_v30 = vadd.f32 %v2391_v25, %v2378_v28 }
 0x1f2   :  { %v2406_v9 = vadd.f32 %v2405_v11, %v2392_v30 }
 0x1fb   :  { %v2417_v23 = vpop.f32.mrf.mxu0 }
 0x1fc   :  { %v2418_v31 = vadd.f32 %v2417_v23, %v2404_v20 }
 0x1fd   :  { %v2431_v29 = vpop.f32.mrf.mxu1 }
 0x1fe   :  { %v2432_v47 = vadd.f32 %v2431_v29, %v2418_v31 }
 0x203   :  { %v2419_v32 = vpop.f32.mrf.mxu0 }
 0x204   :  { %v2420_v58 = vadd.f32 %v2419_v32, %v2406_v9 }
 0x205   :  { %v2433_v40 = vpop.f32.mrf.mxu1 }
 0x206   :  { %v2434_v36 = vadd.f32 %v2433_v40, %v2420_v58 }
 0x207   :  { %v2445_v34 = vpop.f32.mrf.mxu2 }
 0x208   :  { %v2459_v37 = vpop.f32.mrf.mxu3  ;;  %v2446_v56 = vadd.f32 %v2445_v34, %v2432_v47 }
 0x20a   :  { %v2460_v41 = vadd.f32 %v2459_v37, %v2446_v56 }
 0x20c   :  { %v2467_v44 = vmax.f32 %v2460_v41, 0.0 }
 0x20f   :  { %v2447_v38 = vpop.f32.mrf.mxu2 }
 0x210   :  { %v2448_v43 = vadd.f32 %v2447_v38, %v2434_v36  ;;  %v2461_v60 = vpop.f32.mrf.mxu3 }
 0x212   :  { %v2462_v45 = vadd.f32 %v2461_v60, %v2448_v43 }
 0x214   :  { %v2471_v46 = vmax.f32 %v2462_v45, 0.0 }
 0x216   :  { %v2475_v1 = vpack.c.bf16 %v2471_v46, %v2467_v44 }
 0x218   :  { %2786 = vmatmul.bf16.vlgmr.msra.gmra.mxu3 %v2475_v1 }
 0x21b   :  { %v2745_v63 = vpop.f32.mrf.mxu0  ;;  %v2759_v48 = vpop.f32.mrf.mxu1 }
 0x21c   :  { %v2746_v53 = vadd.f32 %v4431_v50, %v2745_v63 }
 0x21e   :  { %v2760_v57 = vadd.f32 %v2759_v48, %v2746_v53 }
 0x223   :  { %v2747_v51 = vpop.f32.mrf.mxu0  ;;  %v2761_v52 = vpop.f32.mrf.mxu1 }
 0x224   :  { %v2748_v39 = vadd.f32 %v4431_v50, %v2747_v51 }
 0x226   :  { %v2762_v59 = vadd.f32 %v2761_v52, %v2748_v39 }
 0x25b   :  { %v2773_v49 = vpop.f32.mrf.mxu2 }
 0x25c   :  { %v2774_v61 = vadd.f32 %v2773_v49, %v2760_v57 }
 0x263   :  { %v2775_v54 = vpop.f32.mrf.mxu2 }
 0x264   :  { %v2776_v42 = vadd.f32 %v2775_v54, %v2762_v59 }
 0x29b   :  { %v2787_v14 = vpop.f32.mrf.mxu3 }
 0x29c   :  { %v2788_v3 = vadd.f32 %v2787_v14, %v2774_v61 }
 0x2a3   :  { %v2789_v62 = vpop.f32.mrf.mxu3 }
 0x2a4   :  { %v2790_v4 = vadd.f32 %v2789_v62, %v2776_v42 }
 0x2a6   :  { %v4415_v2 = vpack.c.bf16 %v2790_v4, %v2788_v3 }
 0x2a8   :  { %4416 = vst [vmem:[%s4799_s7] sm:$0xff] %v4415_v2  }
 0x2a9   :  { %2800 = vsyncpa [#allocation3], 1 }
 0x2aa   :  { %2801 = vsyncpa [#allocation5], 1 }
 0x2ab   :  { %2802 = vsyncpa [#allocation8], 1 }
 0x2ac   :  { %2803 = vsyncpa [#allocation11], 1 }

// kernel: _forward_impl.1
= control target key start
LH: loop header
LB: loop body
LE: loop exit
PB: predicated region body
PF: predicated region fallthrough
CT: control target
= control target key end

     0   :  { %12 = vsyncpa [#allocation3], 0  ;;  %s4792_s0 = inlined_call_operand.hbm [shape: f32[16,64], index: 0, kind: input, shape index: {}]   ;;  %s4793_s1 = inlined_call_operand.hbm [shape: bf16[64,1024], index: 1, kind: input, shape index: {}]   ;;  %s4794_s2 = inlined_call_operand.hbm [shape: f32[1,1024], index: 2, kind: input, shape index: {}]   ;;  %s4795_s3 = inlined_call_operand.hbm [shape: bf16[1024,512], index: 3, kind: input, shape index: {}]   ;;  %s4796_s4 = inlined_call_operand.hbm [shape: f32[1,512], index: 4, kind: input, shape index: {}]   ;;  %s4797_s5 = inlined_call_operand.hbm [shape: bf16[512,128], index: 5, kind: input, shape index: {}]   ;;  %s4798_s6 = inlined_call_operand.vmem [shape: f32[1,128], index: 6, kind: input, shape index: {}]   ;;  %s4799_s7 = inlined_call_operand.vmem [shape: bf16[16,128], index: 7, kind: output, shape index: {}]  }
   0x1   :  { %13 = vsyncpa [#allocation5], 0 }
   0x2   :  { %14 = vsyncpa [#allocation8], 0  ;;  %s33_s26 = sshll.u32 %s4793_s1, 4  ;;  %s34_s26 = int_to_ptr.hbm [resolvable:$true] %s33_s26 }
   0x3   :  { %15 = vsyncpa [#allocation11], 0  ;;  %s4584_s27 = smov [#allocation4]   ;;  %s57_s8 = sshll.u32 %s4795_s3, 4  ;;  %s58_s8 = int_to_ptr.hbm [resolvable:$true] %s57_s8 }
   0x4   :  { %s35_s28 = sshll.u32 %s4584_s27, 4  ;;  %s4585_s9 = smov 512   ;;  %s36_s28 = int_to_ptr.vmem [resolvable:$true] %s35_s28 }
   0x5   :  { %s4586_s10 = smov 32   ;;  %s4587_s11 = smov [#allocation7]  }
   0x6   :  { %41 = dma.hbm_to_vmem [thread:$0]  %s34_s26, 4096, %s36_s28, [#allocation5], %s4585_s9, %s4585_s9, %s4586_s10  }
   0x7   :  { %s59_s12 = sshll.u32 %s4587_s11, 4  ;;  %s4588_s13 = smov 256   ;;  %s60_s12 = int_to_ptr.vmem [resolvable:$true] %s59_s12 }
   0x8   :  { %s4589_s14 = smov 16   ;;  %s20_s16 = sshll.u32 %s4792_s0, 4  ;;  %s21_s16 = int_to_ptr.hbm [resolvable:$true] %s20_s16 }
   0x9   :  { %65 = dma.hbm_to_vmem [thread:$0]  %s58_s8, 32768, %s60_s12, [#allocation8], %s4588_s13, %s4588_s13, %s4589_s14  }
   0xa   :  { %s4590_s17 = smov [#allocation2]   ;;  %s47_s20 = sshll.u32 %s4794_s2, 4  ;;  %s48_s20 = int_to_ptr.hbm [resolvable:$true] %s47_s20 }
   0xb   :  { %s22_s18 = sshll.u32 %s4590_s17, 4  ;;  %s4591_s21 = smov 128   ;;  %s23_s18 = int_to_ptr.vmem [resolvable:$true] %s22_s18 }
   0xc   :  { %s4592_s22 = smov 8   ;;  %s4593_s23 = smov [#allocation6]  }
   0xd   :  { %28 = dma.hbm_to_vmem [thread:$0]  %s21_s16, 256, %s23_s18, [#allocation3], %s4591_s21, %s4591_s21, %s4592_s22  }
   0xe   :  { %s49_s24 = sshll.u32 %s4593_s23, 4  ;;  %s71_s27 = sshll.u32 %s4796_s4, 4  ;;  %s50_s24 = int_to_ptr.vmem [resolvable:$true] %s49_s24  ;;  %s72_s27 = int_to_ptr.hbm [resolvable:$true] %s71_s27 }
   0xf   :  { %52 = dma.hbm_to_vmem [thread:$0]  %s48_s20, 128, %s50_s24, [#allocation5]  }
  0x10   :  { %s81_s29 = sshll.u32 %s4797_s5, 4  ;;  %s4594_s30 = smov [#allocation9]   ;;  %s82_s29 = int_to_ptr.hbm [resolvable:$true] %s81_s29 }
  0x11   :  { %s73_s8 = sshll.u32 %s4594_s30, 4  ;;  %s4595_s2 = smov [#allocation10]   ;;  %s74_s8 = int_to_ptr.vmem [resolvable:$true] %s73_s8 }
  0x12   :  { %76 = dma.hbm_to_vmem [thread:$0]  %s72_s27, 64, %s74_s8, [#allocation8]  }
  0x13   :  { %s83_s9 = sshll.u32 %s4595_s2, 4  ;;  %s4596_s10 = smov 64   ;;  %s84_s9 = int_to_ptr.vmem [resolvable:$true] %s83_s9 }
  0x14   :  { %s4597_s11 = smov 4  }
  0x15   :  { %89 = dma.hbm_to_vmem [thread:$0]  %s82_s29, 4096, %s84_s9, [#allocation11], %s4596_s10, %s4596_s10, %s4597_s11  }
  0x16   :  { %4576 = dma.done.wait [#allocation3], 256  }
  0x17   :  { %4577 = vsyncadd [#allocation3], 4294967040 }
  0x18   :  { %4578 = dma.done.wait [#allocation5], 4224  }
  0x19   :  { %4579 = vsyncadd [#allocation5], 4294963072 }
  0x1a   :  { %4580 = dma.done.wait [#allocation8], 32832  }
  0x1b   :  { %4581 = vsyncadd [#allocation8], 4294934464 }
  0x1c   :  { %4582 = dma.done.wait [#allocation11], 4096  }
  0x1d   :  { %4583 = vsyncadd [#allocation11], 4294963200  ;;  %v2902_v0 = vld [vmem:[#allocation4 + $0xc0] sm:$0xf]  ;;  %v4116_v2 = vld [vmem:[#allocation4 + $0xc4] sm:$0xf] }
  0x1e   :  { %v4120_v1 = vld [vmem:[#allocation4 + $0xdc] sm:$0xf0]  ;;  %v2904_v4 = vld [vmem:[#allocation4 + $0xe0] sm:$0xf0]  ;;  %v2910_v5 = vld [vmem:[#allocation4 + $0xc8] sm:$0xf] }
  0x1f   :  { %v2903_v3 = vor.u32 %v4120_v1, %v2902_v0  ;;  %v4121_v6 = vld [vmem:[#allocation4 + $0xe4] sm:$0xf0]  ;;  %v2907_v7 = vor.u32 %v4116_v2, %v2904_v4  ;;  %v4117_v9 = vld [vmem:[#allocation4 + $0xcc] sm:$0xf]  ;;  %v2870_v11 = vld [vmem:[#allocation4 + $0x80] sm:$0xf] }
  0x20   :  { %v2911_v8 = vor.u32 %v4121_v6, %v2910_v5  ;;  %v2912_v10 = vld [vmem:[#allocation4 + $0xe8] sm:$0xf0]  ;;  %v4112_v13 = vld [vmem:[#allocation4 + $0x9c] sm:$0xf0]  ;;  %v4108_v14 = vld [vmem:[#allocation4 + $0x84] sm:$0xf] }
  0x21   :  { %338 = vmatpush.bf16.msra.mxu0 %v2903_v3  ;;  %v2915_v12 = vor.u32 %v4117_v9, %v2912_v10  ;;  %v2872_v15 = vld [vmem:[#allocation4 + $0xa0] sm:$0xf0]  ;;  %352 = vmatpush.bf16.msra.mxu1 %v2907_v7  ;;  %v2871_v16 = vor.u32 %v4112_v13, %v2870_v11  ;;  %v2878_v18 = vld [vmem:[#allocation4 + $0x88] sm:$0xf]  ;;  %v4109_v20 = vld [vmem:[#allocation4 + $0x8c] sm:$0xf] }
  0x22   :  { %366 = vmatpush.bf16.msra.mxu2 %v2911_v8  ;;  %v2875_v17 = vor.u32 %v4108_v14, %v2872_v15  ;;  %v4113_v19 = vld [vmem:[#allocation4 + $0xa4] sm:$0xf0]  ;;  %v2880_v22 = vld [vmem:[#allocation4 + $0xa8] sm:$0xf0]  ;;  %v2838_v23 = vld [vmem:[#allocation4 + $0x40] sm:$0xf] }
  0x23   :  { %380 = vmatpush.bf16.msra.mxu3 %v2915_v12  ;;  %v2879_v21 = vor.u32 %v4113_v19, %v2878_v18  ;;  %v4104_v24 = vld [vmem:[#allocation4 + $0x5c] sm:$0xf0]  ;;  %v2883_v25 = vor.u32 %v4109_v20, %v2880_v22  ;;  %v4100_v26 = vld [vmem:[#allocation4 + $0x44] sm:$0xf]  ;;  %v2846_v28 = vld [vmem:[#allocation4 + $0x48] sm:$0xf] }
  0x24   :  { %v2840_v27 = vld [vmem:[#allocation4 + $0x60] sm:$0xf0]  ;;  %v2839_v29 = vor.u32 %v4104_v24, %v2838_v23  ;;  %v4105_v30 = vld [vmem:[#allocation4 + $0x64] sm:$0xf0]  ;;  %v4101_v31 = vld [vmem:[#allocation4 + $0x4c] sm:$0xf] }
  0x25   :  { %339 = vmatpush.bf16.msra.mxu0 %v2871_v16  ;;  %v2848_v32 = vld [vmem:[#allocation4 + $0x68] sm:$0xf0]  ;;  %353 = vmatpush.bf16.msra.mxu1 %v2875_v17  ;;  %v2843_v33 = vor.u32 %v4100_v26, %v2840_v27  ;;  %v2847_v34 = vor.u32 %v4105_v30, %v2846_v28  ;;  %v2806_v35 = vld [vmem:[#allocation4] sm:$0xf]  ;;  %v4092_v37 = vld [vmem:[#allocation4 + $0x4] sm:$0xf] }
  0x26   :  { %367 = vmatpush.bf16.msra.mxu2 %v2879_v21  ;;  %v4096_v36 = vld [vmem:[#allocation4 + $0x1c] sm:$0xf0]  ;;  %v2851_v38 = vor.u32 %v4101_v31, %v2848_v32  ;;  %v2808_v39 = vld [vmem:[#allocation4 + $0x20] sm:$0xf0]  ;;  %v2814_v40 = vld [vmem:[#allocation4 + $0x8] sm:$0xf] }
  0x27   :  { %381 = vmatpush.bf16.msra.mxu3 %v2883_v25  ;;  %v4097_v41 = vld [vmem:[#allocation4 + $0x24] sm:$0xf0]  ;;  %v4093_v42 = vld [vmem:[#allocation4 + $0xc] sm:$0xf]  ;;  %v117_v44 = vld [vmem:[#allocation2] sm:$0xff]  ;;  %v2807_v45 = vor.u32 %v4096_v36, %v2806_v35  ;;  %v2811_v49 = vor.u32 %v4092_v37, %v2808_v39  ;;  %vm330_vm0 = vcmask 523264  }
  0x28   :  { %v2816_v43 = vld [vmem:[#allocation4 + $0x28] sm:$0xf0]  ;;  %v118_v46 = vld [vmem:[#allocation2 + $0x8] sm:$0xff]  ;;  %v2918_v47 = vld [vmem:[#allocation4 + $0xd0] sm:$0xf]  ;;  %v2815_v50 = vor.u32 %v4097_v41, %v2814_v40 }
  0x29   :  { %340 = vmatpush.bf16.msra.mxu0 %v2839_v29  ;;  %v4122_v48 = vld [vmem:[#allocation4 + $0xec] sm:$0xf0]  ;;  %354 = vmatpush.bf16.msra.mxu1 %v2843_v33  ;;  %v4118_v51 = vld [vmem:[#allocation4 + $0xd4] sm:$0xf]  ;;  %v2819_v53 = vor.u32 %v4093_v42, %v2816_v43  ;;  %v2926_v55 = vld [vmem:[#allocation4 + $0xd8] sm:$0xf]  ;;  %v4656_v58 = vpack.c.bf16 %v118_v46, %v117_v44 }
  0x2a   :  { %368 = vmatpush.bf16.msra.mxu2 %v2847_v34  ;;  %v2920_v52 = vld [vmem:[#allocation4 + $0xf0] sm:$0xf0]  ;;  %v2919_v54 = vor.u32 %v4122_v48, %v2918_v47  ;;  %v4123_v56 = vld [vmem:[#allocation4 + $0xf4] sm:$0xf0]  ;;  %v4119_v57 = vld [vmem:[#allocation4 + $0xdc] sm:$0xf] }
  0x2b   :  { %382 = vmatpush.bf16.msra.mxu3 %v2851_v38  ;;  %v2923_v59 = vor.u32 %v4118_v51, %v2920_v52  ;;  %v2928_v60 = vld [vmem:[#allocation4 + $0xf8] sm:$0xf0]  ;;  %v2886_v61 = vld [vmem:[#allocation4 + $0x90] sm:$0xf]  ;;  %v4110_v63 = vld [vmem:[#allocation4 + $0x94] sm:$0xf]  ;;  %v2927_v1 = vor.u32 %v4123_v56, %v2926_v55 }
  0x2c   :  { %v4114_v62 = vld [vmem:[#allocation4 + $0xac] sm:$0xf0]  ;;  %v2888_v0 = vld [vmem:[#allocation4 + $0xb0] sm:$0xf0]  ;;  %v2931_v2 = vor.u32 %v4119_v57, %v2928_v60  ;;  %v2894_v4 = vld [vmem:[#allocation4 + $0x98] sm:$0xf] }
  0x2d   :  { %341 = vmatpush.bf16.msra.mxu0 %v2807_v45  ;;  %355 = vmatpush.bf16.msra.mxu1 %v2811_v49  ;;  %v2887_v3 = vor.u32 %v4114_v62, %v2886_v61  ;;  %v4115_v5 = vld [vmem:[#allocation4 + $0xb4] sm:$0xf0]  ;;  %v4111_v6 = vld [vmem:[#allocation4 + $0x9c] sm:$0xf]  ;;  %v2891_v7 = vor.u32 %v4110_v63, %v2888_v0  ;;  %v2854_v9 = vld [vmem:[#allocation4 + $0x50] sm:$0xf] }
  0x2e   :  { %369 = vmatpush.bf16.msra.mxu2 %v2815_v50  ;;  %v2896_v8 = vld [vmem:[#allocation4 + $0xb8] sm:$0xf0]  ;;  %v4106_v10 = vld [vmem:[#allocation4 + $0x6c] sm:$0xf0]  ;;  %v4102_v11 = vld [vmem:[#allocation4 + $0x54] sm:$0xf]  ;;  %v2895_v13 = vor.u32 %v4115_v5, %v2894_v4 }
  0x2f   :  { %383 = vmatpush.bf16.msra.mxu3 %v2819_v53  ;;  %v2856_v12 = vld [vmem:[#allocation4 + $0x70] sm:$0xf0]  ;;  %v2862_v14 = vld [vmem:[#allocation4 + $0x58] sm:$0xf]  ;;  %v2899_v15 = vor.u32 %v4111_v6, %v2896_v8  ;;  %v2855_v16 = vor.u32 %v4106_v10, %v2854_v9  ;;  %v4103_v18 = vld [vmem:[#allocation4 + $0x5c] sm:$0xf] }
  0x30   :  { %2932 = vmatmul.msk.bf16.vlgmr.msra.gmra.mxu0 %vm330_vm0, %v4656_v58  ;;  %2933 = vmatmul.msk.bf16.vlgmr.msra.gmra.mxu1 %vm330_vm0, %v4656_v58  ;;  %v4107_v17 = vld [vmem:[#allocation4 + $0x74] sm:$0xf0]  ;;  %v2864_v19 = vld [vmem:[#allocation4 + $0x78] sm:$0xf0]  ;;  %v2859_v20 = vor.u32 %v4102_v11, %v2856_v12  ;;  %v2822_v21 = vld [vmem:[#allocation4 + $0x10] sm:$0xf] }
  0x31   :  { %394 = vmatpush.bf16.msrb.mxu0 %v2919_v54  ;;  %408 = vmatpush.bf16.msrb.mxu1 %v2923_v59  ;;  %v4098_v22 = vld [vmem:[#allocation4 + $0x2c] sm:$0xf0]  ;;  %v4094_v23 = vld [vmem:[#allocation4 + $0x14] sm:$0xf]  ;;  %v3054_v25 = vld [vmem:[#allocation7 + $0xe0] sm:$0xf]  ;;  %v2863_v27 = vor.u32 %v4107_v17, %v2862_v14  ;;  %v2867_v30 = vor.u32 %v4103_v18, %v2864_v19 }
  0x32   :  { %2934 = vmatmul.msk.bf16.vlgmr.msra.gmra.mxu2 %vm330_vm0, %v4656_v58  ;;  %2935 = vmatmul.msk.bf16.vlgmr.msra.gmra.mxu3 %vm330_vm0, %v4656_v58  ;;  %v2824_v24 = vld [vmem:[#allocation4 + $0x30] sm:$0xf0]  ;;  %v4154_v26 = vld [vmem:[#allocation7 + $0xec] sm:$0xf0]  ;;  %v3182_v28 = vld [vmem:[#allocation7 + $0x1e0] sm:$0xf]  ;;  %v2823_v31 = vor.u32 %v4098_v22, %v2822_v21 }
  0x33   :  { %422 = vmatpush.bf16.msrb.mxu2 %v2927_v1  ;;  %436 = vmatpush.bf16.msrb.mxu3 %v2931_v2  ;;  %v4186_v29 = vld [vmem:[#allocation7 + $0x1ec] sm:$0xf0]  ;;  %v4095_v34 = vld [vmem:[#allocation4 + $0x1c] sm:$0xf]  ;;  %v2827_v35 = vor.u32 %v4094_v23, %v2824_v24  ;;  %v3055_v37 = vor.u32 %v4154_v26, %v3054_v25  ;;  %v3310_v38 = vld [vmem:[#allocation7 + $0x2e0] sm:$0xf] }
  0x34   :  { %v2830_v32 = vld [vmem:[#allocation4 + $0x18] sm:$0xf]  ;;  %v2832_v36 = vld [vmem:[#allocation4 + $0x38] sm:$0xf0]  ;;  %v3183_v40 = vor.u32 %v4186_v29, %v3182_v28  ;;  %v3438_v41 = vld [vmem:[#allocation7 + $0x3e0] sm:$0xf] }
  0x35   :  { %395 = vmatpush.bf16.msrb.mxu0 %v2887_v3  ;;  %409 = vmatpush.bf16.msrb.mxu1 %v2891_v7  ;;  %v4099_v33 = vld [vmem:[#allocation4 + $0x34] sm:$0xf0]  ;;  %v2835_v44 = vor.u32 %v4095_v34, %v2832_v36  ;;  %v3038_v45 = vld [vmem:[#allocation7 + $0xc0] sm:$0xf] }
  0x36   :  { %v4218_v39 = vld [vmem:[#allocation7 + $0x2ec] sm:$0xf0]  ;;  %v2831_v43 = vor.u32 %v4099_v33, %v2830_v32  ;;  %v3166_v47 = vld [vmem:[#allocation7 + $0x1c0] sm:$0xf] }
  0x37   :  { %423 = vmatpush.bf16.msrb.mxu2 %v2895_v13  ;;  %437 = vmatpush.bf16.msrb.mxu3 %v2899_v15  ;;  %v4250_v42 = vld [vmem:[#allocation7 + $0x3ec] sm:$0xf0]  ;;  %v3311_v48 = vor.u32 %v4218_v39, %v3310_v38  ;;  %v3294_v51 = vld [vmem:[#allocation7 + $0x2c0] sm:$0xf] }
  0x38   :  { %v4150_v46 = vld [vmem:[#allocation7 + $0xcc] sm:$0xf0]  ;;  %v3439_v50 = vor.u32 %v4250_v42, %v3438_v41  ;;  %v3422_v53 = vld [vmem:[#allocation7 + $0x3c0] sm:$0xf] }
  0x39   :  { %396 = vmatpush.bf16.msrb.mxu0 %v2855_v16  ;;  %410 = vmatpush.bf16.msrb.mxu1 %v2859_v20  ;;  %v4182_v49 = vld [vmem:[#allocation7 + $0x1cc] sm:$0xf0]  ;;  %v3039_v55 = vor.u32 %v4150_v46, %v3038_v45  ;;  %v3022_v57 = vld [vmem:[#allocation7 + $0xa0] sm:$0xf] }
  0x3a   :  { %v4214_v52 = vld [vmem:[#allocation7 + $0x2cc] sm:$0xf0]  ;;  %v3167_v56 = vor.u32 %v4182_v49, %v3166_v47  ;;  %v3150_v60 = vld [vmem:[#allocation7 + $0x1a0] sm:$0xf] }
  0x3b   :  { %424 = vmatpush.bf16.msrb.mxu2 %v2863_v27  ;;  %438 = vmatpush.bf16.msrb.mxu3 %v2867_v30  ;;  %v4246_v54 = vld [vmem:[#allocation7 + $0x3cc] sm:$0xf0]  ;;  %v3295_v61 = vor.u32 %v4214_v52, %v3294_v51  ;;  %v3278_v0 = vld [vmem:[#allocation7 + $0x2a0] sm:$0xf] }
  0x3c   :  { %v4146_v59 = vld [vmem:[#allocation7 + $0xac] sm:$0xf0]  ;;  %v3423_v63 = vor.u32 %v4246_v54, %v3422_v53  ;;  %v3406_v2 = vld [vmem:[#allocation7 + $0x3a0] sm:$0xf] }
  0x3d   :  { %397 = vmatpush.bf16.msrb.mxu0 %v2823_v31  ;;  %411 = vmatpush.bf16.msrb.mxu1 %v2827_v35  ;;  %v4178_v62 = vld [vmem:[#allocation7 + $0x1ac] sm:$0xf0]  ;;  %v3023_v4 = vor.u32 %v4146_v59, %v3022_v57  ;;  %v3006_v6 = vld [vmem:[#allocation7 + $0x80] sm:$0xf] }
  0x3e   :  { %v4210_v1 = vld [vmem:[#allocation7 + $0x2ac] sm:$0xf0]  ;;  %v3151_v5 = vor.u32 %v4178_v62, %v3150_v60  ;;  %v3134_v8 = vld [vmem:[#allocation7 + $0x180] sm:$0xf] }
  0x3f   :  { %425 = vmatpush.bf16.msrb.mxu2 %v2831_v43  ;;  %439 = vmatpush.bf16.msrb.mxu3 %v2835_v44  ;;  %v4242_v3 = vld [vmem:[#allocation7 + $0x3ac] sm:$0xf0]  ;;  %v3279_v9 = vor.u32 %v4210_v1, %v3278_v0  ;;  %v3262_v12 = vld [vmem:[#allocation7 + $0x280] sm:$0xf] }
  0x40   :  { %2936 = vmatmul.msk.bf16.vlgmr.msrb.gmra.mxu0 %vm330_vm0, %v4656_v58  ;;  %2937 = vmatmul.msk.bf16.vlgmr.msrb.gmra.mxu1 %vm330_vm0, %v4656_v58  ;;  %v4142_v7 = vld [vmem:[#allocation7 + $0x8c] sm:$0xf0]  ;;  %v3407_v11 = vor.u32 %v4242_v3, %v3406_v2  ;;  %v3390_v14 = vld [vmem:[#allocation7 + $0x380] sm:$0xf] }
  0x41   :  { %2016 = vmatpush.bf16.msra.mxu0 %v3055_v37  ;;  %2030 = vmatpush.bf16.msra.mxu1 %v3183_v40  ;;  %v4174_v10 = vld [vmem:[#allocation7 + $0x18c] sm:$0xf0]  ;;  %v3007_v16 = vor.u32 %v4142_v7, %v3006_v6  ;;  %v2990_v17 = vld [vmem:[#allocation7 + $0x60] sm:$0xf] }
  0x42   :  { %2938 = vmatmul.msk.bf16.vlgmr.msrb.gmra.mxu2 %vm330_vm0, %v4656_v58  ;;  %2939 = vmatmul.msk.bf16.vlgmr.msrb.gmra.mxu3 %vm330_vm0, %v4656_v58  ;;  %v4206_v13 = vld [vmem:[#allocation7 + $0x28c] sm:$0xf0]  ;;  %v3135_v58 = vor.u32 %v4174_v10, %v3134_v8  ;;  %v3118_v19 = vld [vmem:[#allocation7 + $0x160] sm:$0xf] }
  0x43   :  { %2044 = vmatpush.bf16.msra.mxu2 %v3311_v48  ;;  %2058 = vmatpush.bf16.msra.mxu3 %v3439_v50  ;;  %v4238_v15 = vld [vmem:[#allocation7 + $0x38c] sm:$0xf0]  ;;  %v3263_v20 = vor.u32 %v4206_v13, %v3262_v12  ;;  %v3246_v23 = vld [vmem:[#allocation7 + $0x260] sm:$0xf] }
  0x44   :  { %v4138_v18 = vld [vmem:[#allocation7 + $0x6c] sm:$0xf0]  ;;  %v3391_v22 = vor.u32 %v4238_v15, %v3390_v14  ;;  %v3374_v25 = vld [vmem:[#allocation7 + $0x360] sm:$0xf] }
  0x45   :  { %2017 = vmatpush.bf16.msra.mxu0 %v3039_v55  ;;  %2031 = vmatpush.bf16.msra.mxu1 %v3167_v56  ;;  %v4170_v21 = vld [vmem:[#allocation7 + $0x16c] sm:$0xf0]  ;;  %v2991_v27 = vor.u32 %v4138_v18, %v2990_v17  ;;  %v2974_v29 = vld [vmem:[#allocation7 + $0x40] sm:$0xf] }
  0x46   :  { %v4202_v24 = vld [vmem:[#allocation7 + $0x26c] sm:$0xf0]  ;;  %v3119_v28 = vor.u32 %v4170_v21, %v3118_v19  ;;  %v3102_v31 = vld [vmem:[#allocation7 + $0x140] sm:$0xf] }
  0x47   :  { %2045 = vmatpush.bf16.msra.mxu2 %v3295_v61  ;;  %2059 = vmatpush.bf16.msra.mxu3 %v3423_v63  ;;  %v4234_v26 = vld [vmem:[#allocation7 + $0x36c] sm:$0xf0]  ;;  %v3247_v32 = vor.u32 %v4202_v24, %v3246_v23  ;;  %v3230_v35 = vld [vmem:[#allocation7 + $0x240] sm:$0xf] }
  0x48   :  { %v4134_v30 = vld [vmem:[#allocation7 + $0x4c] sm:$0xf0]  ;;  %v3375_v34 = vor.u32 %v4234_v26, %v3374_v25  ;;  %v3358_v37 = vld [vmem:[#allocation7 + $0x340] sm:$0xf] }
  0x49   :  { %2018 = vmatpush.bf16.msra.mxu0 %v3023_v4  ;;  %2032 = vmatpush.bf16.msra.mxu1 %v3151_v5  ;;  %v4166_v33 = vld [vmem:[#allocation7 + $0x14c] sm:$0xf0]  ;;  %v2975_v39 = vor.u32 %v4134_v30, %v2974_v29  ;;  %v2958_v41 = vld [vmem:[#allocation7 + $0x20] sm:$0xf] }
  0x4a   :  { %v4198_v36 = vld [vmem:[#allocation7 + $0x24c] sm:$0xf0]  ;;  %v3103_v40 = vor.u32 %v4166_v33, %v3102_v31  ;;  %v3086_v43 = vld [vmem:[#allocation7 + $0x120] sm:$0xf] }
  0x4b   :  { %2046 = vmatpush.bf16.msra.mxu2 %v3279_v9  ;;  %2060 = vmatpush.bf16.msra.mxu3 %v3407_v11  ;;  %v4230_v38 = vld [vmem:[#allocation7 + $0x34c] sm:$0xf0]  ;;  %v3231_v44 = vor.u32 %v4198_v36, %v3230_v35  ;;  %v3214_v47 = vld [vmem:[#allocation7 + $0x220] sm:$0xf] }
  0x4c   :  { %v4130_v42 = vld [vmem:[#allocation7 + $0x2c] sm:$0xf0]  ;;  %v3359_v46 = vor.u32 %v4230_v38, %v3358_v37  ;;  %v3342_v49 = vld [vmem:[#allocation7 + $0x320] sm:$0xf] }
  0x4d   :  { %2019 = vmatpush.bf16.msra.mxu0 %v3007_v16  ;;  %2033 = vmatpush.bf16.msra.mxu1 %v3135_v58  ;;  %v4162_v45 = vld [vmem:[#allocation7 + $0x12c] sm:$0xf0]  ;;  %v2959_v51 = vor.u32 %v4130_v42, %v2958_v41  ;;  %v2942_v52 = vld [vmem:[#allocation7] sm:$0xf] }
  0x4e   :  { %v4194_v48 = vld [vmem:[#allocation7 + $0x22c] sm:$0xf0]  ;;  %v3087_v54 = vor.u32 %v4162_v45, %v3086_v43  ;;  %v3070_v55 = vld [vmem:[#allocation7 + $0x100] sm:$0xf] }
  0x4f   :  { %2047 = vmatpush.bf16.msra.mxu2 %v3263_v20  ;;  %2061 = vmatpush.bf16.msra.mxu3 %v3391_v22  ;;  %v4226_v50 = vld [vmem:[#allocation7 + $0x32c] sm:$0xf0]  ;;  %v3566_v57 = vld [vmem:[#allocation7 + $0x4e0] sm:$0xf]  ;;  %v3215_v59 = vor.u32 %v4194_v48, %v3214_v47 }
  0x50   :  { %v4126_v53 = vld [vmem:[#allocation7 + $0xc] sm:$0xf0]  ;;  %v3694_v61 = vld [vmem:[#allocation7 + $0x5e0] sm:$0xf]  ;;  %v3343_v63 = vor.u32 %v4226_v50, %v3342_v49 }
  0x51   :  { %2020 = vmatpush.bf16.msra.mxu0 %v2991_v27  ;;  %2034 = vmatpush.bf16.msra.mxu1 %v3119_v28  ;;  %v4158_v56 = vld [vmem:[#allocation7 + $0x10c] sm:$0xf0]  ;;  %v3198_v0 = vld [vmem:[#allocation7 + $0x200] sm:$0xf]  ;;  %v2943_v3 = vor.u32 %v4126_v53, %v2942_v52 }
  0x52   :  { %v4282_v60 = vld [vmem:[#allocation7 + $0x4ec] sm:$0xf0]  ;;  %v3326_v2 = vld [vmem:[#allocation7 + $0x300] sm:$0xf]  ;;  %v3071_v7 = vor.u32 %v4158_v56, %v3070_v55 }
  0x53   :  { %2048 = vmatpush.bf16.msra.mxu2 %v3247_v32  ;;  %2062 = vmatpush.bf16.msra.mxu3 %v3375_v34  ;;  %v4314_v62 = vld [vmem:[#allocation7 + $0x5ec] sm:$0xf0]  ;;  %v3822_v5 = vld [vmem:[#allocation7 + $0x6e0] sm:$0xf]  ;;  %v3567_v8 = vor.u32 %v4282_v60, %v3566_v57 }
  0x54   :  { %v4190_v1 = vld [vmem:[#allocation7 + $0x20c] sm:$0xf0]  ;;  %v3950_v9 = vld [vmem:[#allocation7 + $0x7e0] sm:$0xf]  ;;  %v3695_v11 = vor.u32 %v4314_v62, %v3694_v61 }
  0x55   :  { %2021 = vmatpush.bf16.msra.mxu0 %v2975_v39  ;;  %2035 = vmatpush.bf16.msra.mxu1 %v3103_v40  ;;  %v4222_v4 = vld [vmem:[#allocation7 + $0x30c] sm:$0xf0]  ;;  %v3550_v12 = vld [vmem:[#allocation7 + $0x4c0] sm:$0xf]  ;;  %v3199_v14 = vor.u32 %v4190_v1, %v3198_v0 }
  0x56   :  { %v4346_v6 = vld [vmem:[#allocation7 + $0x6ec] sm:$0xf0]  ;;  %v3678_v15 = vld [vmem:[#allocation7 + $0x5c0] sm:$0xf]  ;;  %v3327_v58 = vor.u32 %v4222_v4, %v3326_v2 }
  0x57   :  { %2049 = vmatpush.bf16.msra.mxu2 %v3231_v44  ;;  %2063 = vmatpush.bf16.msra.mxu3 %v3359_v46  ;;  %v4378_v10 = vld [vmem:[#allocation7 + $0x7ec] sm:$0xf0]  ;;  %v3823_v17 = vor.u32 %v4346_v6, %v3822_v5  ;;  %v3806_v19 = vld [vmem:[#allocation7 + $0x6c0] sm:$0xf] }
  0x58   :  { %v4278_v13 = vld [vmem:[#allocation7 + $0x4cc] sm:$0xf0]  ;;  %v3951_v18 = vor.u32 %v4378_v10, %v3950_v9  ;;  %v3934_v22 = vld [vmem:[#allocation7 + $0x7c0] sm:$0xf] }
  0x59   :  { %2022 = vmatpush.bf16.msra.mxu0 %v2959_v51  ;;  %2036 = vmatpush.bf16.msra.mxu1 %v3087_v54  ;;  %v4310_v16 = vld [vmem:[#allocation7 + $0x5cc] sm:$0xf0]  ;;  %v3551_v21 = vor.u32 %v4278_v13, %v3550_v12  ;;  %v3534_v25 = vld [vmem:[#allocation7 + $0x4a0] sm:$0xf] }
  0x5a   :  { %v4342_v20 = vld [vmem:[#allocation7 + $0x6cc] sm:$0xf0]  ;;  %v3679_v24 = vor.u32 %v4310_v16, %v3678_v15  ;;  %v3662_v27 = vld [vmem:[#allocation7 + $0x5a0] sm:$0xf] }
  0x5b   :  { %2050 = vmatpush.bf16.msra.mxu2 %v3215_v59  ;;  %2064 = vmatpush.bf16.msra.mxu3 %v3343_v63  ;;  %v4374_v23 = vld [vmem:[#allocation7 + $0x7cc] sm:$0xf0]  ;;  %v3807_v29 = vor.u32 %v4342_v20, %v3806_v19  ;;  %v3518_v33 = vld [vmem:[#allocation7 + $0x480] sm:$0xf] }
  0x5c   :  { %v4274_v26 = vld [vmem:[#allocation7 + $0x4ac] sm:$0xf0]  ;;  %v3935_v30 = vor.u32 %v4374_v23, %v3934_v22  ;;  %v3646_v35 = vld [vmem:[#allocation7 + $0x580] sm:$0xf] }
  0x5d   :  { %2023 = vmatpush.bf16.msra.mxu0 %v2943_v3  ;;  %2037 = vmatpush.bf16.msra.mxu1 %v3071_v7  ;;  %v4306_v28 = vld [vmem:[#allocation7 + $0x5ac] sm:$0xf0]  ;;  %v3535_v31 = vor.u32 %v4274_v26, %v3534_v25  ;;  %v3790_v39 = vld [vmem:[#allocation7 + $0x6a0] sm:$0xf] }
  0x5e   :  { %v3663_v32 = vor.u32 %v4306_v28, %v3662_v27  ;;  %v4270_v34 = vld [vmem:[#allocation7 + $0x48c] sm:$0xf0]  ;;  %v3918_v41 = vld [vmem:[#allocation7 + $0x7a0] sm:$0xf] }
  0x5f   :  { %2051 = vmatpush.bf16.msra.mxu2 %v3199_v14  ;;  %2065 = vmatpush.bf16.msra.mxu3 %v3327_v58  ;;  %v4302_v36 = vld [vmem:[#allocation7 + $0x58c] sm:$0xf0]  ;;  %v3519_v37 = vor.u32 %v4270_v34, %v3518_v33  ;;  %v3502_v45 = vld [vmem:[#allocation7 + $0x460] sm:$0xf] }
  0x60   :  { %v3647_v38 = vor.u32 %v4302_v36, %v3646_v35  ;;  %v4338_v40 = vld [vmem:[#allocation7 + $0x6ac] sm:$0xf0]  ;;  %v3630_v47 = vld [vmem:[#allocation7 + $0x560] sm:$0xf]  ;;  %v4674_v35 = vld [vmem:[#allocation6] sm:$0xff] }
  0x61   :  { %2072 = vmatpush.bf16.msrb.mxu0 %v3567_v8  ;;  %2086 = vmatpush.bf16.msrb.mxu1 %v3695_v11  ;;  %v3791_v42 = vor.u32 %v4338_v40, %v3790_v39  ;;  %v4370_v43 = vld [vmem:[#allocation7 + $0x7ac] sm:$0xf0]  ;;  %v3774_v51 = vld [vmem:[#allocation7 + $0x680] sm:$0xf]  ;;  %v155_v39 = vperm.slane %v4674_v35, 1 }
  0x62   :  { %v3919_v44 = vor.u32 %v4370_v43, %v3918_v41  ;;  %v4266_v46 = vld [vmem:[#allocation7 + $0x46c] sm:$0xf0]  ;;  %v3902_v54 = vld [vmem:[#allocation7 + $0x780] sm:$0xf] }
  0x63   :  { %2100 = vmatpush.bf16.msrb.mxu2 %v3823_v17  ;;  %2114 = vmatpush.bf16.msrb.mxu3 %v3951_v18  ;;  %v3503_v48 = vor.u32 %v4266_v46, %v3502_v45  ;;  %v4298_v49 = vld [vmem:[#allocation7 + $0x56c] sm:$0xf0]  ;;  %v3486_v57 = vld [vmem:[#allocation7 + $0x440] sm:$0xf] }
  0x64   :  { %v3631_v50 = vor.u32 %v4298_v49, %v3630_v47  ;;  %v4334_v52 = vld [vmem:[#allocation7 + $0x68c] sm:$0xf0]  ;;  %v3614_v60 = vld [vmem:[#allocation7 + $0x540] sm:$0xf]  ;;  %v3056_v49 = vld [vmem:[#allocation7 + $0xf0] sm:$0xf0] }
  0x65   :  { %2073 = vmatpush.bf16.msrb.mxu0 %v3551_v21  ;;  %2087 = vmatpush.bf16.msrb.mxu1 %v3679_v24  ;;  %v3775_v53 = vor.u32 %v4334_v52, %v3774_v51  ;;  %v4366_v55 = vld [vmem:[#allocation7 + $0x78c] sm:$0xf0]  ;;  %v3758_v0 = vld [vmem:[#allocation7 + $0x660] sm:$0xf]  ;;  %v156_v51 = vperm.slane %v4674_v35, 2 }
  0x66   :  { %v3903_v56 = vor.u32 %v4366_v55, %v3902_v54  ;;  %v4262_v59 = vld [vmem:[#allocation7 + $0x44c] sm:$0xf0]  ;;  %v3886_v2 = vld [vmem:[#allocation7 + $0x760] sm:$0xf]  ;;  %v3184_v54 = vld [vmem:[#allocation7 + $0x1f0] sm:$0xf0] }
  0x67   :  { %2101 = vmatpush.bf16.msrb.mxu2 %v3807_v29  ;;  %2115 = vmatpush.bf16.msrb.mxu3 %v3935_v30  ;;  %v3487_v61 = vor.u32 %v4262_v59, %v3486_v57  ;;  %v4294_v62 = vld [vmem:[#allocation7 + $0x54c] sm:$0xf0]  ;;  %v3470_v6 = vld [vmem:[#allocation7 + $0x420] sm:$0xf]  ;;  %v157_v55 = vperm.slane %v4674_v35, 3 }
  0x68   :  { %v3615_v63 = vor.u32 %v4294_v62, %v3614_v60  ;;  %v4330_v1 = vld [vmem:[#allocation7 + $0x66c] sm:$0xf0]  ;;  %v3598_v9 = vld [vmem:[#allocation7 + $0x520] sm:$0xf]  ;;  %v4148_v62 = vld [vmem:[#allocation7 + $0xc4] sm:$0xf] }
  0x69   :  { %2074 = vmatpush.bf16.msrb.mxu0 %v3535_v31  ;;  %2088 = vmatpush.bf16.msrb.mxu1 %v3663_v32  ;;  %v3759_v3 = vor.u32 %v4330_v1, %v3758_v0  ;;  %v4362_v4 = vld [vmem:[#allocation7 + $0x76c] sm:$0xf0]  ;;  %v3742_v12 = vld [vmem:[#allocation7 + $0x640] sm:$0xf] }
  0x6a   :  { %v3887_v5 = vor.u32 %v4362_v4, %v3886_v2  ;;  %v4258_v7 = vld [vmem:[#allocation7 + $0x42c] sm:$0xf0]  ;;  %v3870_v14 = vld [vmem:[#allocation7 + $0x740] sm:$0xf]  ;;  %v4180_v2 = vld [vmem:[#allocation7 + $0x1c4] sm:$0xf] }
  0x6b   :  { %2102 = vmatpush.bf16.msrb.mxu2 %v3791_v42  ;;  %2116 = vmatpush.bf16.msrb.mxu3 %v3919_v44  ;;  %v3471_v8 = vor.u32 %v4258_v7, %v3470_v6  ;;  %v4290_v10 = vld [vmem:[#allocation7 + $0x52c] sm:$0xf0]  ;;  %v3454_v17 = vld [vmem:[#allocation7 + $0x400] sm:$0xf]  ;;  %v4216_v6 = vld [vmem:[#allocation7 + $0x2e4] sm:$0xf] }
  0x6c   :  { %v3599_v11 = vor.u32 %v4290_v10, %v3598_v9  ;;  %v4326_v13 = vld [vmem:[#allocation7 + $0x64c] sm:$0xf0]  ;;  %v3582_v19 = vld [vmem:[#allocation7 + $0x500] sm:$0xf]  ;;  %v158_v9 = vperm.slane %v4674_v35, 4 }
  0x6d   :  { %2075 = vmatpush.bf16.msrb.mxu0 %v3519_v37  ;;  %2089 = vmatpush.bf16.msrb.mxu1 %v3647_v38  ;;  %v3743_v15 = vor.u32 %v4326_v13, %v3742_v12  ;;  %v4358_v16 = vld [vmem:[#allocation7 + $0x74c] sm:$0xf0]  ;;  %v3726_v23 = vld [vmem:[#allocation7 + $0x620] sm:$0xf]  ;;  %v154_v37 = vperm.slane %v4674_v35, 0 }
  0x6e   :  { %v3871_v58 = vor.u32 %v4358_v16, %v3870_v14  ;;  %v4254_v18 = vld [vmem:[#allocation7 + $0x40c] sm:$0xf0]  ;;  %v3854_v25 = vld [vmem:[#allocation7 + $0x720] sm:$0xf]  ;;  %v3312_v13 = vld [vmem:[#allocation7 + $0x2f0] sm:$0xf0] }
  0x6f   :  { %2103 = vmatpush.bf16.msrb.mxu2 %v3775_v53  ;;  %2117 = vmatpush.bf16.msrb.mxu3 %v3903_v56  ;;  %v3455_v20 = vor.u32 %v4254_v18, %v3454_v17  ;;  %v4286_v21 = vld [vmem:[#allocation7 + $0x50c] sm:$0xf0]  ;;  %v3710_v29 = vld [vmem:[#allocation7 + $0x600] sm:$0xf]  ;;  %v4184_v53 = vld [vmem:[#allocation7 + $0x1e4] sm:$0xf] }
  0x70   :  { %v3583_v22 = vor.u32 %v4286_v21, %v3582_v19  ;;  %v4322_v24 = vld [vmem:[#allocation7 + $0x62c] sm:$0xf0]  ;;  %v3838_v32 = vld [vmem:[#allocation7 + $0x700] sm:$0xf]  ;;  %v4248_v14 = vld [vmem:[#allocation7 + $0x3e4] sm:$0xf] }
  0x71   :  { %2076 = vmatpush.bf16.msrb.mxu0 %v3503_v48  ;;  %2090 = vmatpush.bf16.msrb.mxu1 %v3631_v50  ;;  %v4354_v26 = vld [vmem:[#allocation7 + $0x72c] sm:$0xf0]  ;;  %v3727_v27 = vor.u32 %v4322_v24, %v3726_v23  ;;  %v4152_v48 = vld [vmem:[#allocation7 + $0xe4] sm:$0xf]  ;;  %v3440_v17 = vld [vmem:[#allocation7 + $0x3f0] sm:$0xf0] }
  0x72   :  { %v3855_v28 = vor.u32 %v4354_v26, %v3854_v25  ;;  %v4318_v30 = vld [vmem:[#allocation7 + $0x60c] sm:$0xf0]  ;;  %v3059_v59 = vor.u32 %v4152_v48, %v3056_v49  ;;  %v4144_v18 = vld [vmem:[#allocation7 + $0xa4] sm:$0xf]  ;;  %v3024_v19 = vld [vmem:[#allocation7 + $0xb0] sm:$0xf0]  ;;  %v3315_v26 = vor.u32 %v4216_v6, %v3312_v13 }
  0x73   :  { %2104 = vmatpush.bf16.msrb.mxu2 %v3759_v3  ;;  %2118 = vmatpush.bf16.msrb.mxu3 %v3887_v5  ;;  %v3711_v31 = vor.u32 %v4318_v30, %v3710_v29  ;;  %v4350_v33 = vld [vmem:[#allocation7 + $0x70c] sm:$0xf0]  ;;  %v3168_v3 = vld [vmem:[#allocation7 + $0x1d0] sm:$0xf0]  ;;  %v3027_v29 = vor.u32 %v4144_v18, %v3024_v19  ;;  %v4212_v30 = vld [vmem:[#allocation7 + $0x2c4] sm:$0xf] }
  0x74   :  { %v3839_v34 = vor.u32 %v4350_v33, %v3838_v32  ;;  %v3152_v23 = vld [vmem:[#allocation7 + $0x1b0] sm:$0xf0]  ;;  %v4244_v32 = vld [vmem:[#allocation7 + $0x3c4] sm:$0xf] }
  0x75   :  { %2077 = vmatpush.bf16.msrb.mxu0 %v3487_v61  ;;  %2091 = vmatpush.bf16.msrb.mxu1 %v3615_v63  ;;  %v3187_v61 = vor.u32 %v4184_v53, %v3184_v54  ;;  %v3040_v63 = vld [vmem:[#allocation7 + $0xd0] sm:$0xf0]  ;;  %v4164_v18 = vld [vmem:[#allocation7 + $0x144] sm:$0xf] }
  0x76   :  { %v3043_v12 = vor.u32 %v4148_v62, %v3040_v63  ;;  %v3408_v53 = vld [vmem:[#allocation7 + $0x3b0] sm:$0xf0] }
  0x77   :  { %2105 = vmatpush.bf16.msrb.mxu2 %v3743_v15  ;;  %2119 = vmatpush.bf16.msrb.mxu3 %v3871_v58  ;;  %v3171_v58 = vor.u32 %v4180_v2, %v3168_v3  ;;  %v2992_v62 = vld [vmem:[#allocation7 + $0x70] sm:$0xf0]  ;;  %v4168_v2 = vld [vmem:[#allocation7 + $0x164] sm:$0xf] }
  0x78   :  { %v3120_v3 = vld [vmem:[#allocation7 + $0x170] sm:$0xf0] }
  0x79   :  { %2078 = vmatpush.bf16.msrb.mxu0 %v3471_v8  ;;  %2092 = vmatpush.bf16.msrb.mxu1 %v3599_v11  ;;  %v159_v11 = vperm.slane %v4674_v35, 5  ;;  %v3104_v19 = vld [vmem:[#allocation7 + $0x150] sm:$0xf0] }
  0x7b   :  { %2106 = vmatpush.bf16.msrb.mxu2 %v3727_v27  ;;  %2120 = vmatpush.bf16.msrb.mxu3 %v3855_v28  ;;  %v3443_v28 = vor.u32 %v4248_v14, %v3440_v17  ;;  %v3123_v14 = vor.u32 %v4168_v2, %v3120_v3  ;;  %v2976_v17 = vld [vmem:[#allocation7 + $0x50] sm:$0xf0]  ;;  %v4192_v2 = vld [vmem:[#allocation7 + $0x224] sm:$0xf] }
  0x7c   :  { %v3216_v3 = vld [vmem:[#allocation7 + $0x230] sm:$0xf0] }
  0x7d   :  { %2079 = vmatpush.bf16.msrb.mxu0 %v3455_v20  ;;  %2093 = vmatpush.bf16.msrb.mxu1 %v3583_v22  ;;  %v4176_v22 = vld [vmem:[#allocation7 + $0x1a4] sm:$0xf] }
  0x7f   :  { %2107 = vmatpush.bf16.msrb.mxu2 %v3711_v31  ;;  %2121 = vmatpush.bf16.msrb.mxu3 %v3839_v34  ;;  %v3296_v31 = vld [vmem:[#allocation7 + $0x2d0] sm:$0xf0] }
  0xad   :  { %v343_v36 = vpop.f32.mrf.mxu0  ;;  %v357_v38 = vpop.f32.mrf.mxu1 }
  0xae   :  { %v344_v40 = vadd.f32 %v343_v36, %v154_v37  ;;  %v358_v41 = vadd.f32 %v357_v38, %v155_v39  ;;  %v3155_v36 = vor.u32 %v4176_v22, %v3152_v23  ;;  %v4140_v38 = vld [vmem:[#allocation7 + $0x84] sm:$0xf]  ;;  %v3248_v23 = vld [vmem:[#allocation7 + $0x270] sm:$0xf0] }
  0xaf   :  { %v4200_v22 = vld [vmem:[#allocation7 + $0x264] sm:$0xf] }
  0xb0   :  { %v446_v45 = vmax.f32 %v344_v40, 0.0  ;;  %v447_v50 = vmax.f32 %v358_v41, 0.0  ;;  %v4172_v41 = vld [vmem:[#allocation7 + $0x184] sm:$0xf] }
  0xb5   :  { %v371_v42 = vpop.f32.mrf.mxu2  ;;  %v385_v43 = vpop.f32.mrf.mxu3 }
  0xb6   :  { %v345_v44 = vpop.f32.mrf.mxu0  ;;  %v359_v47 = vpop.f32.mrf.mxu1  ;;  %v372_v0 = vadd.f32 %v371_v42, %v156_v51  ;;  %v386_v4 = vadd.f32 %v385_v43, %v157_v55  ;;  %v3136_v42 = vld [vmem:[#allocation7 + $0x190] sm:$0xf0]  ;;  %v160_v43 = vperm.slane %v4674_v35, 6 }
  0xb7   :  { %v346_v46 = vadd.f32 %v345_v44, %v154_v37  ;;  %v360_v52 = vadd.f32 %v359_v47, %v155_v39  ;;  %v3424_v37 = vld [vmem:[#allocation7 + $0x3d0] sm:$0xf0] }
  0xb8   :  { %v448_v20 = vmax.f32 %v372_v0, 0.0  ;;  %v449_v24 = vmax.f32 %v386_v4, 0.0  ;;  %v3008_v39 = vld [vmem:[#allocation7 + $0x90] sm:$0xf0]  ;;  %v3427_v49 = vor.u32 %v4244_v32, %v3424_v37  ;;  %v4128_v37 = vld [vmem:[#allocation7 + $0x24] sm:$0xf] }
  0xb9   :  { %v454_v56 = vmax.f32 %v346_v46, 0.0  ;;  %v455_v57 = vmax.f32 %v360_v52, 0.0  ;;  %v4208_v46 = vld [vmem:[#allocation7 + $0x2a4] sm:$0xf] }
  0xba   :  { %v4240_v52 = vld [vmem:[#allocation7 + $0x3a4] sm:$0xf] }
  0xbb   :  { %v4680_v60 = vpack.c.bf16 %v454_v56, %v446_v45  ;;  %v4682_v1 = vpack.c.bf16 %v455_v57, %v447_v50  ;;  %v3299_v45 = vor.u32 %v4212_v30, %v3296_v31  ;;  %v3011_v50 = vor.u32 %v4140_v38, %v3008_v39  ;;  %v3376_v30 = vld [vmem:[#allocation7 + $0x370] sm:$0xf0] }
  0xbc   :  { %v2960_v38 = vld [vmem:[#allocation7 + $0x30] sm:$0xf0] }
  0xbd   :  { %v373_v5 = vpop.f32.mrf.mxu2  ;;  %2024 = vmatmul.bf16.vlgmr.msra.gmra.mxu0 %v4680_v60  ;;  %v387_v8 = vpop.f32.mrf.mxu3  ;;  %2038 = vmatmul.bf16.vlgmr.msra.gmra.mxu1 %v4682_v1 }
  0xbe   :  { %v374_v7 = vadd.f32 %v373_v5, %v156_v51  ;;  %2128 = vmatpush.bf16.msra.mxu0 %v3059_v59  ;;  %v399_v10 = vpop.f32.mrf.mxu0  ;;  %v388_v15 = vadd.f32 %v387_v8, %v157_v55  ;;  %2142 = vmatpush.bf16.msra.mxu1 %v3187_v61  ;;  %v413_v16 = vpop.f32.mrf.mxu1  ;;  %v3280_v51 = vld [vmem:[#allocation7 + $0x2b0] sm:$0xf0]  ;;  %v161_v55 = vperm.slane %v4674_v35, 7  ;;  %v3139_v59 = vor.u32 %v4172_v41, %v3136_v42  ;;  %v4136_v61 = vld [vmem:[#allocation7 + $0x64] sm:$0xf] }
  0xbf   :  { %v400_v34 = vadd.f32 %v399_v10, %v158_v9  ;;  %v414_v40 = vadd.f32 %v413_v16, %v159_v11  ;;  %v3283_v5 = vor.u32 %v4208_v46, %v3280_v51  ;;  %v3411_v8 = vor.u32 %v4240_v52, %v3408_v53  ;;  %v4204_v10 = vld [vmem:[#allocation7 + $0x284] sm:$0xf]  ;;  %v3264_v35 = vld [vmem:[#allocation7 + $0x290] sm:$0xf0] }
  0xc0   :  { %v456_v21 = vmax.f32 %v374_v7, 0.0  ;;  %v457_v25 = vmax.f32 %v388_v15, 0.0  ;;  %v2995_v13 = vor.u32 %v4136_v61, %v2992_v62  ;;  %v4236_v15 = vld [vmem:[#allocation7 + $0x384] sm:$0xf]  ;;  %v3088_v41 = vld [vmem:[#allocation7 + $0x130] sm:$0xf0] }
  0xc1   :  { %v450_v54 = vmax.f32 %v400_v34, 0.0  ;;  %v451_v63 = vmax.f32 %v414_v40, 0.0  ;;  %v4132_v16 = vld [vmem:[#allocation7 + $0x44] sm:$0xf]  ;;  %v3360_v52 = vld [vmem:[#allocation7 + $0x350] sm:$0xf0] }
  0xc2   :  { %v4688_v27 = vpack.c.bf16 %v456_v21, %v448_v20  ;;  %2129 = vmatpush.bf16.msra.mxu0 %v3043_v12  ;;  %v4690_v33 = vpack.c.bf16 %v457_v25, %v449_v24  ;;  %2143 = vmatpush.bf16.msra.mxu1 %v3171_v58  ;;  %v3267_v21 = vor.u32 %v4204_v10, %v3264_v35  ;;  %v4160_v40 = vld [vmem:[#allocation7 + $0x124] sm:$0xf]  ;;  %v3568_v61 = vld [vmem:[#allocation7 + $0x4f0] sm:$0xf0] }
  0xc3   :  { %v2979_v34 = vor.u32 %v4132_v16, %v2976_v17  ;;  %v4196_v46 = vld [vmem:[#allocation7 + $0x244] sm:$0xf]  ;;  %v3091_v51 = vor.u32 %v4160_v40, %v3088_v41  ;;  %v3200_v17 = vld [vmem:[#allocation7 + $0x210] sm:$0xf0] }
  0xc4   :  { %2052 = vmatmul.bf16.vlgmr.msra.gmra.mxu2 %v4688_v27  ;;  %2066 = vmatmul.bf16.vlgmr.msra.gmra.mxu3 %v4690_v33  ;;  %v4124_v53 = vld [vmem:[#allocation7 + $0x4] sm:$0xf] }
  0xc5   :  { %2156 = vmatpush.bf16.msra.mxu2 %v3315_v26  ;;  %v427_v44 = vpop.f32.mrf.mxu2  ;;  %2170 = vmatpush.bf16.msra.mxu3 %v3443_v28  ;;  %v441_v47 = vpop.f32.mrf.mxu3  ;;  %v4312_v62 = vld [vmem:[#allocation7 + $0x5e4] sm:$0xf] }
  0xc6   :  { %2130 = vmatpush.bf16.msra.mxu0 %v3027_v29  ;;  %v401_v48 = vpop.f32.mrf.mxu0  ;;  %2144 = vmatpush.bf16.msra.mxu1 %v3155_v36  ;;  %v415_v57 = vpop.f32.mrf.mxu1  ;;  %v428_v6 = vadd.f32 %v427_v44, %v160_v43  ;;  %v442_v12 = vadd.f32 %v441_v47, %v161_v55  ;;  %v4232_v29 = vld [vmem:[#allocation7 + $0x364] sm:$0xf]  ;;  %v3107_v36 = vor.u32 %v4164_v18, %v3104_v19  ;;  %v3232_v47 = vld [vmem:[#allocation7 + $0x250] sm:$0xf0] }
  0xc7   :  { %v402_v56 = vadd.f32 %v401_v48, %v158_v9  ;;  %v416_v0 = vadd.f32 %v415_v57, %v159_v11  ;;  %v3392_v11 = vld [vmem:[#allocation7 + $0x390] sm:$0xf0]  ;;  %v4228_v48 = vld [vmem:[#allocation7 + $0x344] sm:$0xf] }
  0xc8   :  { %v452_v24 = vmax.f32 %v428_v6, 0.0  ;;  %v3395_v28 = vor.u32 %v4236_v15, %v3392_v11  ;;  %v453_v31 = vmax.f32 %v442_v12, 0.0  ;;  %v4280_v57 = vld [vmem:[#allocation7 + $0x4e4] sm:$0xf]  ;;  %v3219_v12 = vor.u32 %v4192_v2, %v3216_v3  ;;  %v3680_v15 = vld [vmem:[#allocation7 + $0x5d0] sm:$0xf0] }
  0xc9   :  { %v458_v4 = vmax.f32 %v402_v56, 0.0  ;;  %2157 = vmatpush.bf16.msra.mxu2 %v3299_v45  ;;  %v459_v7 = vmax.f32 %v416_v0, 0.0  ;;  %2171 = vmatpush.bf16.msra.mxu3 %v3427_v49  ;;  %v3379_v45 = vor.u32 %v4232_v29, %v3376_v30  ;;  %v3072_v56 = vld [vmem:[#allocation7 + $0x110] sm:$0xf0]  ;;  %v3363_v0 = vor.u32 %v4228_v48, %v3360_v52  ;;  %v4224_v6 = vld [vmem:[#allocation7 + $0x324] sm:$0xf] }
  0xca   :  { %2131 = vmatpush.bf16.msra.mxu0 %v3011_v50  ;;  %2145 = vmatpush.bf16.msra.mxu1 %v3139_v59  ;;  %v2963_v50 = vor.u32 %v4128_v37, %v2960_v38  ;;  %v3235_v59 = vor.u32 %v4196_v46, %v3232_v47  ;;  %v4276_v35 = vld [vmem:[#allocation7 + $0x4c4] sm:$0xf]  ;;  %v3328_v19 = vld [vmem:[#allocation7 + $0x310] sm:$0xf0] }
  0xcb   :  { %v4696_v9 = vpack.c.bf16 %v458_v4, %v450_v54  ;;  %v4698_v58 = vpack.c.bf16 %v459_v7, %v451_v63  ;;  %v2944_v54 = vld [vmem:[#allocation7 + $0x10] sm:$0xf0]  ;;  %v4188_v16 = vld [vmem:[#allocation7 + $0x204] sm:$0xf] }
  0xcc   :  { %v3696_v63 = vld [vmem:[#allocation7 + $0x5f0] sm:$0xf0]  ;;  %v2947_v4 = vor.u32 %v4124_v53, %v2944_v54  ;;  %v4220_v18 = vld [vmem:[#allocation7 + $0x304] sm:$0xf] }
  0xcd   :  { %2158 = vmatpush.bf16.msra.mxu2 %v3283_v5  ;;  %v429_v20 = vpop.f32.mrf.mxu2  ;;  %2080 = vmatmul.bf16.vlgmr.msrb.gmra.mxu0 %v4696_v9  ;;  %v443_v26 = vpop.f32.mrf.mxu3  ;;  %v3344_v7 = vld [vmem:[#allocation7 + $0x330] sm:$0xf0]  ;;  %v3699_v10 = vor.u32 %v4312_v62, %v3696_v63  ;;  %v4304_v30 = vld [vmem:[#allocation7 + $0x5a4] sm:$0xf] }
  0xce   :  { %2172 = vmatpush.bf16.msra.mxu3 %v3411_v8  ;;  %v430_v25 = vadd.f32 %v429_v20, %v160_v43  ;;  %2094 = vmatmul.bf16.vlgmr.msrb.gmra.mxu1 %v4698_v58  ;;  %v444_v32 = vadd.f32 %v443_v26, %v161_v55  ;;  %v3251_v43 = vor.u32 %v4200_v22, %v3248_v23  ;;  %v4156_v55 = vld [vmem:[#allocation7 + $0x104] sm:$0xf]  ;;  %v3536_v29 = vld [vmem:[#allocation7 + $0x4b0] sm:$0xf0] }
  0xcf   :  { %2132 = vmatpush.bf16.msra.mxu0 %v2995_v13  ;;  %2146 = vmatpush.bf16.msra.mxu1 %v3123_v14  ;;  %v3075_v5 = vor.u32 %v4156_v55, %v3072_v56  ;;  %v3571_v8 = vor.u32 %v4280_v57, %v3568_v61  ;;  %v3552_v13 = vld [vmem:[#allocation7 + $0x4d0] sm:$0xf0]  ;;  %v4308_v14 = vld [vmem:[#allocation7 + $0x5c4] sm:$0xf]  ;;  %v3347_v11 = vor.u32 %v4224_v6, %v3344_v7 }
  0xd0   :  { %v460_v39 = vmax.f32 %v430_v25, 0.0  ;;  %v461_v42 = vmax.f32 %v444_v32, 0.0  ;;  %v4344_v20 = vld [vmem:[#allocation7 + $0x6e4] sm:$0xf]  ;;  %v3555_v22 = vor.u32 %v4276_v35, %v3552_v13  ;;  %v3683_v23 = vor.u32 %v4308_v14, %v3680_v15  ;;  %v3952_v25 = vld [vmem:[#allocation7 + $0x7f0] sm:$0xf0] }
  0xd1   :  { %2159 = vmatpush.bf16.msra.mxu2 %v3267_v21  ;;  %v3824_v21 = vld [vmem:[#allocation7 + $0x6f0] sm:$0xf0]  ;;  %v4272_v26 = vld [vmem:[#allocation7 + $0x4a4] sm:$0xf]  ;;  %v3331_v32 = vor.u32 %v4220_v18, %v3328_v19 }
  0xd2   :  { %v4702_v44 = vpack.c.bf16 %v460_v39, %v452_v24  ;;  %2173 = vmatpush.bf16.msra.mxu3 %v3395_v28  ;;  %v4704_v49 = vpack.c.bf16 %v461_v42, %v453_v31  ;;  %v4376_v24 = vld [vmem:[#allocation7 + $0x7e4] sm:$0xf]  ;;  %v3203_v28 = vor.u32 %v4188_v16, %v3200_v17  ;;  %v3664_v31 = vld [vmem:[#allocation7 + $0x5b0] sm:$0xf0]  ;;  %v3539_v39 = vor.u32 %v4272_v26, %v3536_v29 }
  0xd3   :  { %2133 = vmatpush.bf16.msra.mxu0 %v2979_v34  ;;  %2147 = vmatpush.bf16.msra.mxu1 %v3107_v36  ;;  %v3827_v34 = vor.u32 %v4344_v20, %v3824_v21  ;;  %v3955_v36 = vor.u32 %v4376_v24, %v3952_v25  ;;  %v4340_v37 = vld [vmem:[#allocation7 + $0x6c4] sm:$0xf]  ;;  %v3808_v38 = vld [vmem:[#allocation7 + $0x6d0] sm:$0xf0]  ;;  %v3667_v40 = vor.u32 %v4304_v30, %v3664_v31 }
  0xd4   :  { %2108 = vmatmul.bf16.vlgmr.msrb.gmra.mxu2 %v4702_v44  ;;  %2122 = vmatmul.bf16.vlgmr.msrb.gmra.mxu3 %v4704_v49  ;;  %v4372_v41 = vld [vmem:[#allocation7 + $0x7c4] sm:$0xf]  ;;  %v3936_v42 = vld [vmem:[#allocation7 + $0x7d0] sm:$0xf0]  ;;  %v3811_v48 = vor.u32 %v4340_v37, %v3808_v38 }
  0xd5   :  { %2160 = vmatpush.bf16.msra.mxu2 %v3251_v43  ;;  %v4268_v43 = vld [vmem:[#allocation7 + $0x484] sm:$0xf]  ;;  %v3648_v47 = vld [vmem:[#allocation7 + $0x590] sm:$0xf0] }
  0xd6   :  { %2174 = vmatpush.bf16.msra.mxu3 %v3379_v45  ;;  %v3520_v45 = vld [vmem:[#allocation7 + $0x490] sm:$0xf0]  ;;  %v4300_v46 = vld [vmem:[#allocation7 + $0x584] sm:$0xf] }
  0xd7   :  { %2134 = vmatpush.bf16.msra.mxu0 %v2963_v50  ;;  %2148 = vmatpush.bf16.msra.mxu1 %v3091_v51  ;;  %v3939_v50 = vor.u32 %v4372_v41, %v3936_v42  ;;  %v4336_v51 = vld [vmem:[#allocation7 + $0x6a4] sm:$0xf]  ;;  %v3792_v52 = vld [vmem:[#allocation7 + $0x6b0] sm:$0xf0]  ;;  %v3523_v53 = vor.u32 %v4268_v43, %v3520_v45  ;;  %v3651_v54 = vor.u32 %v4300_v46, %v3648_v47  ;;  %v4155_v41 = vld [vmem:[#allocation7 + $0xf4] sm:$0xf0] }
  0xd8   :  { %v4368_v55 = vld [vmem:[#allocation7 + $0x7a4] sm:$0xf]  ;;  %v3920_v56 = vld [vmem:[#allocation7 + $0x7b0] sm:$0xf0]  ;;  %v3795_v63 = vor.u32 %v4336_v51, %v3792_v52  ;;  %v3190_v42 = vld [vmem:[#allocation7 + $0x1e8] sm:$0xf] }
  0xd9   :  { %2161 = vmatpush.bf16.msra.mxu2 %v3235_v59  ;;  %v4264_v57 = vld [vmem:[#allocation7 + $0x464] sm:$0xf]  ;;  %v3504_v59 = vld [vmem:[#allocation7 + $0x470] sm:$0xf0]  ;;  %v4187_v43 = vld [vmem:[#allocation7 + $0x1f4] sm:$0xf0] }
  0xda   :  { %2175 = vmatpush.bf16.msra.mxu3 %v3363_v0  ;;  %v4296_v61 = vld [vmem:[#allocation7 + $0x564] sm:$0xf]  ;;  %v3632_v62 = vld [vmem:[#allocation7 + $0x570] sm:$0xf0]  ;;  %v3923_v0 = vor.u32 %v4368_v55, %v3920_v56  ;;  %v3046_v55 = vld [vmem:[#allocation7 + $0xc8] sm:$0xf] }
  0xdb   :  { %2135 = vmatpush.bf16.msra.mxu0 %v2947_v4  ;;  %2149 = vmatpush.bf16.msra.mxu1 %v3075_v5  ;;  %v4332_v2 = vld [vmem:[#allocation7 + $0x684] sm:$0xf]  ;;  %v3776_v3 = vld [vmem:[#allocation7 + $0x690] sm:$0xf0]  ;;  %v3507_v4 = vor.u32 %v4264_v57, %v3504_v59  ;;  %v3635_v5 = vor.u32 %v4296_v61, %v3632_v62  ;;  %v4151_v57 = vld [vmem:[#allocation7 + $0xd4] sm:$0xf0] }
  0xdc   :  { %v4364_v6 = vld [vmem:[#allocation7 + $0x784] sm:$0xf]  ;;  %v3904_v7 = vld [vmem:[#allocation7 + $0x790] sm:$0xf0]  ;;  %v3779_v13 = vor.u32 %v4332_v2, %v3776_v3  ;;  %v3174_v59 = vld [vmem:[#allocation7 + $0x1c8] sm:$0xf] }
  0xdd   :  { %2162 = vmatpush.bf16.msra.mxu2 %v3219_v12  ;;  %v4292_v35 = vld [vmem:[#allocation7 + $0x544] sm:$0xf]  ;;  %v3616_v12 = vld [vmem:[#allocation7 + $0x550] sm:$0xf0]  ;;  %v3907_v14 = vor.u32 %v4364_v6, %v3904_v7  ;;  %v4183_v61 = vld [vmem:[#allocation7 + $0x1d4] sm:$0xf0]  ;;  %v3047_v6 = vor.u32 %v4151_v57, %v3046_v55 }
  0xde   :  { %2176 = vmatpush.bf16.msra.mxu3 %v3347_v11  ;;  %2136 = vmatmul.bf16.vlgmr.msra.gmra.mxu0 %v4680_v60  ;;  %v4328_v15 = vld [vmem:[#allocation7 + $0x664] sm:$0xf]  ;;  %v3760_v11 = vld [vmem:[#allocation7 + $0x670] sm:$0xf0]  ;;  %v3619_v17 = vor.u32 %v4292_v35, %v3616_v12  ;;  %v3175_v7 = vor.u32 %v4183_v61, %v3174_v59  ;;  %v3030_v12 = vld [vmem:[#allocation7 + $0xa8] sm:$0xf] }
  0xdf   :  { %2184 = vmatpush.bf16.msrb.mxu0 %v3571_v8  ;;  %2198 = vmatpush.bf16.msrb.mxu1 %v3699_v10  ;;  %v4260_v8 = vld [vmem:[#allocation7 + $0x444] sm:$0xf]  ;;  %v3488_v10 = vld [vmem:[#allocation7 + $0x450] sm:$0xf0]  ;;  %v3763_v24 = vor.u32 %v4328_v15, %v3760_v11  ;;  %v3158_v11 = vld [vmem:[#allocation7 + $0x1a8] sm:$0xf] }
  0xe0   :  { %2150 = vmatmul.bf16.vlgmr.msra.gmra.mxu1 %v4682_v1  ;;  %v3491_v16 = vor.u32 %v4260_v8, %v3488_v10  ;;  %v4360_v18 = vld [vmem:[#allocation7 + $0x764] sm:$0xf]  ;;  %v3888_v19 = vld [vmem:[#allocation7 + $0x770] sm:$0xf0]  ;;  %v3446_v8 = vld [vmem:[#allocation7 + $0x3e8] sm:$0xf] }
  0xe1   :  { %2163 = vmatpush.bf16.msra.mxu2 %v3203_v28  ;;  %v4256_v20 = vld [vmem:[#allocation7 + $0x424] sm:$0xf]  ;;  %v3472_v21 = vld [vmem:[#allocation7 + $0x430] sm:$0xf0]  ;;  %v3891_v25 = vor.u32 %v4360_v18, %v3888_v19  ;;  %v4251_v10 = vld [vmem:[#allocation7 + $0x3f4] sm:$0xf0] }
  0xe2   :  { %2177 = vmatpush.bf16.msra.mxu3 %v3331_v32  ;;  %v4324_v26 = vld [vmem:[#allocation7 + $0x644] sm:$0xf]  ;;  %v3744_v28 = vld [vmem:[#allocation7 + $0x650] sm:$0xf0]  ;;  %v3475_v30 = vor.u32 %v4256_v20, %v3472_v21  ;;  %v3302_v18 = vld [vmem:[#allocation7 + $0x2c8] sm:$0xf] }
  0xe3   :  { %2185 = vmatpush.bf16.msrb.mxu0 %v3555_v22  ;;  %2199 = vmatpush.bf16.msrb.mxu1 %v3683_v23  ;;  %v4288_v22 = vld [vmem:[#allocation7 + $0x524] sm:$0xf]  ;;  %v3600_v23 = vld [vmem:[#allocation7 + $0x530] sm:$0xf0]  ;;  %v4215_v19 = vld [vmem:[#allocation7 + $0x2d4] sm:$0xf0] }
  0xe4   :  { %2164 = vmatmul.bf16.vlgmr.msra.gmra.mxu2 %v4688_v27  ;;  %v4356_v29 = vld [vmem:[#allocation7 + $0x744] sm:$0xf]  ;;  %v3603_v31 = vor.u32 %v4288_v22, %v3600_v23  ;;  %v3872_v32 = vld [vmem:[#allocation7 + $0x750] sm:$0xf0]  ;;  %v3430_v21 = vld [vmem:[#allocation7 + $0x3c8] sm:$0xf] }
  0xe5   :  { %2212 = vmatpush.bf16.msrb.mxu2 %v3827_v34  ;;  %2178 = vmatmul.bf16.vlgmr.msra.gmra.mxu3 %v4690_v33  ;;  %v4252_v34 = vld [vmem:[#allocation7 + $0x404] sm:$0xf]  ;;  %v3584_v38 = vld [vmem:[#allocation7 + $0x510] sm:$0xf0]  ;;  %v3875_v45 = vor.u32 %v4356_v29, %v3872_v32  ;;  %v4247_v22 = vld [vmem:[#allocation7 + $0x3d4] sm:$0xf0] }
  0xe6   :  { %2226 = vmatpush.bf16.msrb.mxu3 %v3955_v36  ;;  %v3456_v36 = vld [vmem:[#allocation7 + $0x410] sm:$0xf0]  ;;  %v4284_v37 = vld [vmem:[#allocation7 + $0x504] sm:$0xf]  ;;  %v4175_v29 = vld [vmem:[#allocation7 + $0x194] sm:$0xf0] }
  0xe7   :  { %2186 = vmatpush.bf16.msrb.mxu0 %v3539_v39  ;;  %2200 = vmatpush.bf16.msrb.mxu1 %v3667_v40  ;;  %v3062_v39 = vld [vmem:[#allocation7 + $0xe8] sm:$0xf]  ;;  %v3747_v40 = vor.u32 %v4324_v26, %v3744_v28  ;;  %v4320_v46 = vld [vmem:[#allocation7 + $0x624] sm:$0xf]  ;;  %v3728_v47 = vld [vmem:[#allocation7 + $0x630] sm:$0xf0]  ;;  %v3303_v26 = vor.u32 %v4215_v19, %v3302_v18 }
  0xe8   :  { %v4352_v51 = vld [vmem:[#allocation7 + $0x724] sm:$0xf]  ;;  %v3856_v52 = vld [vmem:[#allocation7 + $0x730] sm:$0xf0]  ;;  %v3731_v56 = vor.u32 %v4320_v46, %v3728_v47  ;;  %v3142_v28 = vld [vmem:[#allocation7 + $0x188] sm:$0xf] }
  0xe9   :  { %2213 = vmatpush.bf16.msrb.mxu2 %v3811_v48  ;;  %v3459_v48 = vor.u32 %v4252_v34, %v3456_v36  ;;  %v3859_v62 = vor.u32 %v4352_v51, %v3856_v52  ;;  %v4348_v2 = vld [vmem:[#allocation7 + $0x704] sm:$0xf]  ;;  %v3840_v3 = vld [vmem:[#allocation7 + $0x710] sm:$0xf0]  ;;  %v4211_v32 = vld [vmem:[#allocation7 + $0x2b4] sm:$0xf0] }
  0xea   :  { %2227 = vmatpush.bf16.msrb.mxu3 %v3939_v50  ;;  %v3587_v50 = vor.u32 %v4284_v37, %v3584_v38  ;;  %v3414_v36 = vld [vmem:[#allocation7 + $0x3a8] sm:$0xf]  ;;  %v4243_v37 = vld [vmem:[#allocation7 + $0x3b4] sm:$0xf0]  ;;  %v3143_v38 = vor.u32 %v4175_v29, %v3142_v28 }
  0xeb   :  { %2187 = vmatpush.bf16.msrb.mxu0 %v3523_v53  ;;  %2201 = vmatpush.bf16.msrb.mxu1 %v3651_v54  ;;  %v3063_v53 = vor.u32 %v4155_v41, %v3062_v39  ;;  %v3191_v54 = vor.u32 %v4187_v43, %v3190_v42  ;;  %v2998_v39 = vld [vmem:[#allocation7 + $0x68] sm:$0xf]  ;;  %v4171_v43 = vld [vmem:[#allocation7 + $0x174] sm:$0xf0] }
  0xec   :  { %v3126_v42 = vld [vmem:[#allocation7 + $0x168] sm:$0xf]  ;;  %v4207_v47 = vld [vmem:[#allocation7 + $0x294] sm:$0xf0] }
  0xed   :  { %2214 = vmatpush.bf16.msrb.mxu2 %v3795_v63  ;;  %v4316_v63 = vld [vmem:[#allocation7 + $0x604] sm:$0xf]  ;;  %v3270_v46 = vld [vmem:[#allocation7 + $0x288] sm:$0xf]  ;;  %v4239_v51 = vld [vmem:[#allocation7 + $0x394] sm:$0xf0]  ;;  %v3127_v52 = vor.u32 %v4171_v43, %v3126_v42 }
  0xee   :  { %2228 = vmatpush.bf16.msrb.mxu3 %v3923_v0  ;;  %v3712_v0 = vld [vmem:[#allocation7 + $0x610] sm:$0xf0]  ;;  %v3271_v55 = vor.u32 %v4207_v47, %v3270_v46  ;;  %v4167_v57 = vld [vmem:[#allocation7 + $0x154] sm:$0xf0]  ;;  %v3254_v61 = vld [vmem:[#allocation7 + $0x268] sm:$0xf] }
  0xef   :  { %2188 = vmatpush.bf16.msrb.mxu0 %v3507_v4  ;;  %2202 = vmatpush.bf16.msrb.mxu1 %v3635_v5  ;;  %v3318_v4 = vld [vmem:[#allocation7 + $0x2e8] sm:$0xf]  ;;  %v4219_v5 = vld [vmem:[#allocation7 + $0x2f4] sm:$0xf0]  ;;  %v3715_v35 = vor.u32 %v4316_v63, %v3712_v0 }
  0xf0   :  { %v3319_v15 = vor.u32 %v4219_v5, %v3318_v4  ;;  %v3382_v0 = vld [vmem:[#allocation7 + $0x368] sm:$0xf]  ;;  %v4131_v5 = vld [vmem:[#allocation7 + $0x34] sm:$0xf0] }
  0xf1   :  { %2215 = vmatpush.bf16.msrb.mxu2 %v3779_v13  ;;  %v4147_v13 = vld [vmem:[#allocation7 + $0xb4] sm:$0xf0]  ;;  %v2966_v4 = vld [vmem:[#allocation7 + $0x28] sm:$0xf] }
  0xf2   :  { %2229 = vmatpush.bf16.msrb.mxu3 %v3907_v14  ;;  %v3843_v14 = vor.u32 %v4348_v2, %v3840_v3  ;;  %v3031_v20 = vor.u32 %v4147_v13, %v3030_v12  ;;  %v4235_v2 = vld [vmem:[#allocation7 + $0x374] sm:$0xf0]  ;;  %v2967_v13 = vor.u32 %v4131_v5, %v2966_v4  ;;  %v3078_v18 = vld [vmem:[#allocation7 + $0x108] sm:$0xf] }
  0xf3   :  { %2189 = vmatpush.bf16.msrb.mxu0 %v3491_v16  ;;  %2203 = vmatpush.bf16.msrb.mxu1 %v3619_v17  ;;  %v4179_v16 = vld [vmem:[#allocation7 + $0x1b4] sm:$0xf0]  ;;  %v3447_v17 = vor.u32 %v4251_v10, %v3446_v8  ;;  %v3383_v10 = vor.u32 %v4235_v2, %v3382_v0  ;;  %v3206_v43 = vld [vmem:[#allocation7 + $0x208] sm:$0xf] }
  0xf4   :  { %v3159_v23 = vor.u32 %v4179_v16, %v3158_v11  ;;  %v4163_v8 = vld [vmem:[#allocation7 + $0x134] sm:$0xf0]  ;;  %v2950_v11 = vld [vmem:[#allocation7 + $0x8] sm:$0xf] }
  0xf5   :  { %2216 = vmatpush.bf16.msrb.mxu2 %v3763_v24  ;;  %v3014_v24 = vld [vmem:[#allocation7 + $0x88] sm:$0xf]  ;;  %v4199_v12 = vld [vmem:[#allocation7 + $0x254] sm:$0xf0] }
  0xf6   :  { %2230 = vmatpush.bf16.msrb.mxu3 %v3891_v25  ;;  %v4143_v25 = vld [vmem:[#allocation7 + $0x94] sm:$0xf0]  ;;  %v3334_v46 = vld [vmem:[#allocation7 + $0x308] sm:$0xf] }
  0xf7   :  { %2190 = vmatpush.bf16.msrb.mxu0 %v3475_v30  ;;  %2204 = vmatpush.bf16.msrb.mxu1 %v3603_v31  ;;  %v3431_v30 = vor.u32 %v4247_v22, %v3430_v21  ;;  %v3286_v31 = vld [vmem:[#allocation7 + $0x2a8] sm:$0xf]  ;;  %v3015_v34 = vor.u32 %v4143_v25, %v3014_v24  ;;  %v4159_v19 = vld [vmem:[#allocation7 + $0x114] sm:$0xf0] }
  0xf8   :  { %v3287_v41 = vor.u32 %v4211_v32, %v3286_v31  ;;  %v3574_v21 = vld [vmem:[#allocation7 + $0x4e8] sm:$0xf]  ;;  %v4283_v22 = vld [vmem:[#allocation7 + $0x4f4] sm:$0xf0]  ;;  %v3079_v32 = vor.u32 %v4159_v19, %v3078_v18 }
  0xf9   :  { %2217 = vmatpush.bf16.msrb.mxu2 %v3747_v40  ;;  %v4139_v40 = vld [vmem:[#allocation7 + $0x74] sm:$0xf0]  ;;  %v3814_v2 = vld [vmem:[#allocation7 + $0x6c8] sm:$0xf] }
  0xfa   :  { %2231 = vmatpush.bf16.msrb.mxu3 %v3875_v45  ;;  %v3415_v45 = vor.u32 %v4243_v37, %v3414_v36  ;;  %v4315_v25 = vld [vmem:[#allocation7 + $0x5f4] sm:$0xf0]  ;;  %v3558_v36 = vld [vmem:[#allocation7 + $0x4c8] sm:$0xf] }
  0xfb   :  { %2191 = vmatpush.bf16.msrb.mxu0 %v3459_v48  ;;  %2205 = vmatpush.bf16.msrb.mxu1 %v3587_v50  ;;  %v2999_v48 = vor.u32 %v4139_v40, %v2998_v39  ;;  %v3398_v50 = vld [vmem:[#allocation7 + $0x388] sm:$0xf]  ;;  %v4195_v28 = vld [vmem:[#allocation7 + $0x234] sm:$0xf0] }
  0xfc   :  { %v3399_v59 = vor.u32 %v4239_v51, %v3398_v50  ;;  %v4227_v31 = vld [vmem:[#allocation7 + $0x334] sm:$0xf0]  ;;  %v3686_v40 = vld [vmem:[#allocation7 + $0x5c8] sm:$0xf] }
  0xfd   :  { %2218 = vmatpush.bf16.msrb.mxu2 %v3731_v56  ;;  %v3110_v56 = vld [vmem:[#allocation7 + $0x148] sm:$0xf]  ;;  %v4279_v39 = vld [vmem:[#allocation7 + $0x4d4] sm:$0xf0] }
  0xfe   :  { %2232 = vmatpush.bf16.msrb.mxu3 %v3859_v62  ;;  %2192 = vmatmul.bf16.vlgmr.msrb.gmra.mxu0 %v4696_v9  ;;  %v4203_v62 = vld [vmem:[#allocation7 + $0x274] sm:$0xf0]  ;;  %v3111_v3 = vor.u32 %v4167_v57, %v3110_v56  ;;  %v3559_v51 = vor.u32 %v4279_v39, %v3558_v36  ;;  %v3542_v56 = vld [vmem:[#allocation7 + $0x4a8] sm:$0xf] }
  0xff   :  { %2240 = vmatpush.bf16.msra.mxu0 %v3063_v53  ;;  %2254 = vmatpush.bf16.msra.mxu1 %v3191_v54  ;;  %v2982_v53 = vld [vmem:[#allocation7 + $0x48] sm:$0xf]  ;;  %v4135_v54 = vld [vmem:[#allocation7 + $0x54] sm:$0xf0] }
 0x100   :  { %2206 = vmatmul.bf16.vlgmr.msrb.gmra.mxu1 %v4698_v58  ;;  %v2983_v63 = vor.u32 %v4135_v54, %v2982_v53  ;;  %v4223_v47 = vld [vmem:[#allocation7 + $0x314] sm:$0xf0]  ;;  %v3942_v5 = vld [vmem:[#allocation7 + $0x7c8] sm:$0xf] }
 0x101   :  { %2219 = vmatpush.bf16.msrb.mxu2 %v3715_v35  ;;  %v3238_v35 = vld [vmem:[#allocation7 + $0x248] sm:$0xf]  ;;  %v4347_v50 = vld [vmem:[#allocation7 + $0x6f4] sm:$0xf0] }
 0x102   :  { %2233 = vmatpush.bf16.msrb.mxu3 %v3843_v14  ;;  %v3366_v14 = vld [vmem:[#allocation7 + $0x348] sm:$0xf]  ;;  %v4379_v53 = vld [vmem:[#allocation7 + $0x7f4] sm:$0xf0] }
 0x103   :  { %2241 = vmatpush.bf16.msra.mxu0 %v3047_v6  ;;  %2255 = vmatpush.bf16.msra.mxu1 %v3175_v7  ;;  %v3255_v6 = vor.u32 %v4203_v62, %v3254_v61  ;;  %v3094_v7 = vld [vmem:[#allocation7 + $0x128] sm:$0xf]  ;;  %v4275_v57 = vld [vmem:[#allocation7 + $0x4b4] sm:$0xf0] }
 0x104   :  { %2220 = vmatmul.bf16.vlgmr.msrb.gmra.mxu2 %v4702_v44  ;;  %v3095_v16 = vor.u32 %v4163_v8, %v3094_v7  ;;  %v3670_v62 = vld [vmem:[#allocation7 + $0x5a8] sm:$0xf]  ;;  %v3543_v4 = vor.u32 %v4275_v57, %v3542_v56  ;;  %v4371_v18 = vld [vmem:[#allocation7 + $0x7b4] sm:$0xf0] }
 0x105   :  { %2268 = vmatpush.bf16.msra.mxu2 %v3319_v15  ;;  %2234 = vmatmul.bf16.vlgmr.msrb.gmra.mxu3 %v4704_v49  ;;  %v4231_v15 = vld [vmem:[#allocation7 + $0x354] sm:$0xf0]  ;;  %v3526_v8 = vld [vmem:[#allocation7 + $0x488] sm:$0xf] }
 0x106   :  { %2282 = vmatpush.bf16.msra.mxu3 %v3447_v17  ;;  %v4127_v17 = vld [vmem:[#allocation7 + $0x14] sm:$0xf0]  ;;  %v3367_v24 = vor.u32 %v4231_v15, %v3366_v14  ;;  %v3798_v15 = vld [vmem:[#allocation7 + $0x6a8] sm:$0xf] }
 0x107   :  { %2242 = vmatpush.bf16.msra.mxu0 %v3031_v20  ;;  %2256 = vmatpush.bf16.msra.mxu1 %v3159_v23  ;;  %v3239_v20 = vor.u32 %v4199_v12, %v3238_v35  ;;  %v3702_v23 = vld [vmem:[#allocation7 + $0x5e8] sm:$0xf]  ;;  %v2951_v29 = vor.u32 %v4127_v17, %v2950_v11  ;;  %v4339_v11 = vld [vmem:[#allocation7 + $0x6b4] sm:$0xf0] }
 0x108   :  { %v3703_v37 = vor.u32 %v4315_v25, %v3702_v23  ;;  %v3654_v12 = vld [vmem:[#allocation7 + $0x588] sm:$0xf]  ;;  %v4263_v36 = vld [vmem:[#allocation7 + $0x454] sm:$0xf0] }
 0x109   :  { %2269 = vmatpush.bf16.msra.mxu2 %v3303_v26  ;;  %v3222_v26 = vld [vmem:[#allocation7 + $0x228] sm:$0xf]  ;;  %v4295_v39 = vld [vmem:[#allocation7 + $0x554] sm:$0xf0] }
 0x10a   :  { %2283 = vmatpush.bf16.msra.mxu3 %v3431_v30  ;;  %v3350_v30 = vld [vmem:[#allocation7 + $0x328] sm:$0xf]  ;;  %v4327_v56 = vld [vmem:[#allocation7 + $0x654] sm:$0xf0] }
 0x10b   :  { %2243 = vmatpush.bf16.msra.mxu0 %v3015_v34  ;;  %2257 = vmatpush.bf16.msra.mxu1 %v3143_v38  ;;  %v3575_v34 = vor.u32 %v4283_v22, %v3574_v21  ;;  %v3223_v38 = vor.u32 %v4195_v28, %v3222_v26  ;;  %v3351_v42 = vor.u32 %v4227_v31, %v3350_v30  ;;  %v3926_v17 = vld [vmem:[#allocation7 + $0x7a8] sm:$0xf]  ;;  %v4267_v21 = vld [vmem:[#allocation7 + $0x474] sm:$0xf0] }
 0x10c   :  { %v3799_v22 = vor.u32 %v4339_v11, %v3798_v15  ;;  %v3638_v23 = vld [vmem:[#allocation7 + $0x568] sm:$0xf]  ;;  %v3927_v25 = vor.u32 %v4371_v18, %v3926_v17  ;;  %v4335_v28 = vld [vmem:[#allocation7 + $0x694] sm:$0xf0]  ;;  %v4149_v17 = vld [vmem:[#allocation7 + $0xcc] sm:$0xf] }
 0x10d   :  { %2270 = vmatpush.bf16.msra.mxu2 %v3287_v41  ;;  %v4311_v41 = vld [vmem:[#allocation7 + $0x5d4] sm:$0xf0]  ;;  %v3782_v26 = vld [vmem:[#allocation7 + $0x688] sm:$0xf] }
 0x10e   :  { %2284 = vmatpush.bf16.msra.mxu3 %v3415_v45  ;;  %v4191_v45 = vld [vmem:[#allocation7 + $0x214] sm:$0xf0]  ;;  %v3687_v54 = vor.u32 %v4311_v41, %v3686_v40  ;;  %v3910_v30 = vld [vmem:[#allocation7 + $0x788] sm:$0xf] }
 0x10f   :  { %2244 = vmatpush.bf16.msra.mxu0 %v2999_v48  ;;  %2258 = vmatpush.bf16.msra.mxu1 %v3127_v52  ;;  %v3830_v48 = vld [vmem:[#allocation7 + $0x6e8] sm:$0xf]  ;;  %v4367_v31 = vld [vmem:[#allocation7 + $0x794] sm:$0xf0] }
 0x110   :  { %v3958_v52 = vld [vmem:[#allocation7 + $0x7e8] sm:$0xf]  ;;  %v3831_v61 = vor.u32 %v4347_v50, %v3830_v48  ;;  %v3911_v40 = vor.u32 %v4367_v31, %v3910_v30  ;;  %v4259_v50 = vld [vmem:[#allocation7 + $0x434] sm:$0xf0]  ;;  %v3320_v30 = vld [vmem:[#allocation7 + $0x2f8] sm:$0xf0] }
 0x111   :  { %2271 = vmatpush.bf16.msra.mxu2 %v3271_v55  ;;  %v3207_v55 = vor.u32 %v4191_v45, %v3206_v43  ;;  %v3959_v0 = vor.u32 %v4379_v53, %v3958_v52  ;;  %v3766_v41 = vld [vmem:[#allocation7 + $0x668] sm:$0xf]  ;;  %v4291_v53 = vld [vmem:[#allocation7 + $0x534] sm:$0xf0] }
 0x112   :  { %2285 = vmatpush.bf16.msra.mxu3 %v3399_v59  ;;  %v3335_v59 = vor.u32 %v4223_v47, %v3334_v46  ;;  %v3894_v45 = vld [vmem:[#allocation7 + $0x768] sm:$0xf]  ;;  %v4363_v46 = vld [vmem:[#allocation7 + $0x774] sm:$0xf0] }
 0x113   :  { %2245 = vmatpush.bf16.msra.mxu0 %v2983_v63  ;;  %2259 = vmatpush.bf16.msra.mxu1 %v3111_v3  ;;  %v4307_v63 = vld [vmem:[#allocation7 + $0x5b4] sm:$0xf0]  ;;  %v3478_v48 = vld [vmem:[#allocation7 + $0x428] sm:$0xf] }
 0x114   :  { %v4343_v3 = vld [vmem:[#allocation7 + $0x6d4] sm:$0xf0]  ;;  %v3671_v7 = vor.u32 %v4307_v63, %v3670_v62  ;;  %v3606_v52 = vld [vmem:[#allocation7 + $0x528] sm:$0xf]  ;;  %v3479_v57 = vor.u32 %v4259_v50, %v3478_v48  ;;  %v4245_v50 = vld [vmem:[#allocation7 + $0x3cc] sm:$0xf] }
 0x115   :  { %2272 = vmatpush.bf16.msra.mxu2 %v3255_v6  ;;  %v4375_v6 = vld [vmem:[#allocation7 + $0x7d4] sm:$0xf0]  ;;  %v3815_v35 = vor.u32 %v4343_v3, %v3814_v2  ;;  %v3462_v62 = vld [vmem:[#allocation7 + $0x408] sm:$0xf]  ;;  %v3607_v63 = vor.u32 %v4291_v53, %v3606_v52  ;;  %v4141_v53 = vld [vmem:[#allocation7 + $0x8c] sm:$0xf] }
 0x116   :  { %2286 = vmatpush.bf16.msra.mxu3 %v3383_v10  ;;  %v4271_v10 = vld [vmem:[#allocation7 + $0x494] sm:$0xf0]  ;;  %v3943_v14 = vor.u32 %v4375_v6, %v3942_v5  ;;  %v3590_v2 = vld [vmem:[#allocation7 + $0x508] sm:$0xf]  ;;  %v4153_v5 = vld [vmem:[#allocation7 + $0xec] sm:$0xf] }
 0x117   :  { %2246 = vmatpush.bf16.msra.mxu0 %v2967_v13  ;;  %2260 = vmatpush.bf16.msra.mxu1 %v3095_v16  ;;  %v4303_v13 = vld [vmem:[#allocation7 + $0x594] sm:$0xf0]  ;;  %v3527_v16 = vor.u32 %v4271_v10, %v3526_v8  ;;  %v3064_v6 = vld [vmem:[#allocation7 + $0xf8] sm:$0xf0] }
 0x118   :  { %v3655_v19 = vor.u32 %v4303_v13, %v3654_v12  ;;  %v4287_v3 = vld [vmem:[#allocation7 + $0x514] sm:$0xf0]  ;;  %v3192_v10 = vld [vmem:[#allocation7 + $0x1f8] sm:$0xf0] }
 0x119   :  { %2273 = vmatpush.bf16.msra.mxu2 %v3239_v20  ;;  %v3510_v20 = vld [vmem:[#allocation7 + $0x468] sm:$0xf]  ;;  %v4323_v12 = vld [vmem:[#allocation7 + $0x634] sm:$0xf0]  ;;  %v3591_v11 = vor.u32 %v4287_v3, %v3590_v2  ;;  %v3416_v2 = vld [vmem:[#allocation7 + $0x3b8] sm:$0xf0] }
 0x11a   :  { %2287 = vmatpush.bf16.msra.mxu3 %v3367_v24  ;;  %v4299_v24 = vld [vmem:[#allocation7 + $0x574] sm:$0xf0] }
 0x11b   :  { %2247 = vmatpush.bf16.msra.mxu0 %v2951_v29  ;;  %2261 = vmatpush.bf16.msra.mxu1 %v3079_v32  ;;  %v3511_v29 = vor.u32 %v4267_v21, %v3510_v20  ;;  %v3639_v32 = vor.u32 %v4299_v24, %v3638_v23  ;;  %v4355_v15 = vld [vmem:[#allocation7 + $0x734] sm:$0xf0]  ;;  %v3048_v20 = vld [vmem:[#allocation7 + $0xd8] sm:$0xf0]  ;;  %v4181_v21 = vld [vmem:[#allocation7 + $0x1cc] sm:$0xf] }
 0x11c   :  { %v3718_v24 = vld [vmem:[#allocation7 + $0x608] sm:$0xf]  ;;  %v3051_v31 = vor.u32 %v4149_v17, %v3048_v20  ;;  %v4133_v17 = vld [vmem:[#allocation7 + $0x4c] sm:$0xf] }
 0x11d   :  { %2274 = vmatpush.bf16.msra.mxu2 %v3223_v38  ;;  %v3622_v38 = vld [vmem:[#allocation7 + $0x548] sm:$0xf]  ;;  %v4165_v20 = vld [vmem:[#allocation7 + $0x14c] sm:$0xf] }
 0x11e   :  { %2288 = vmatpush.bf16.msra.mxu3 %v3351_v42  ;;  %2248 = vmatmul.bf16.vlgmr.msra.gmra.mxu0 %v4680_v60  ;;  %v4331_v42 = vld [vmem:[#allocation7 + $0x674] sm:$0xf0]  ;;  %v3623_v47 = vor.u32 %v4295_v39, %v3622_v38  ;;  %v4145_v38 = vld [vmem:[#allocation7 + $0xac] sm:$0xf]  ;;  %v3032_v39 = vld [vmem:[#allocation7 + $0xb8] sm:$0xf0] }
 0x11f   :  { %2296 = vmatpush.bf16.msrb.mxu0 %v3575_v34  ;;  %2310 = vmatpush.bf16.msrb.mxu1 %v3703_v37  ;;  %v3494_v34 = vld [vmem:[#allocation7 + $0x448] sm:$0xf]  ;;  %v3783_v37 = vor.u32 %v4335_v28, %v3782_v26  ;;  %v4351_v28 = vld [vmem:[#allocation7 + $0x714] sm:$0xf0]  ;;  %v3035_v48 = vor.u32 %v4145_v38, %v3032_v39  ;;  %v4197_v39 = vld [vmem:[#allocation7 + $0x24c] sm:$0xf] }
 0x120   :  { %2262 = vmatmul.bf16.vlgmr.msra.gmra.mxu1 %v4682_v1  ;;  %v3495_v43 = vor.u32 %v4263_v36, %v3494_v34  ;;  %v3846_v26 = vld [vmem:[#allocation7 + $0x708] sm:$0xf]  ;;  %v3448_v34 = vld [vmem:[#allocation7 + $0x3f8] sm:$0xf0] }
 0x121   :  { %2275 = vmatpush.bf16.msra.mxu2 %v3207_v55  ;;  %v3750_v55 = vld [vmem:[#allocation7 + $0x648] sm:$0xf] }
 0x122   :  { %2289 = vmatpush.bf16.msra.mxu3 %v3335_v59  ;;  %v3878_v59 = vld [vmem:[#allocation7 + $0x748] sm:$0xf] }
 0x123   :  { %2297 = vmatpush.bf16.msrb.mxu0 %v3559_v51  ;;  %2311 = vmatpush.bf16.msrb.mxu1 %v3687_v54  ;;  %v3767_v51 = vor.u32 %v4331_v42, %v3766_v41  ;;  %v3895_v54 = vor.u32 %v4363_v46, %v3894_v45  ;;  %v4177_v42 = vld [vmem:[#allocation7 + $0x1ac] sm:$0xf] }
 0x124   :  { %2276 = vmatmul.bf16.vlgmr.msra.gmra.mxu2 %v4688_v27  ;;  %v4213_v46 = vld [vmem:[#allocation7 + $0x2cc] sm:$0xf] }
 0x125   :  { %2324 = vmatpush.bf16.msrb.mxu2 %v3831_v61  ;;  %2290 = vmatmul.bf16.vlgmr.msra.gmra.mxu3 %v4690_v33  ;;  %v4359_v61 = vld [vmem:[#allocation7 + $0x754] sm:$0xf0] }
 0x126   :  { %2338 = vmatpush.bf16.msrb.mxu3 %v3959_v0  ;;  %v4255_v0 = vld [vmem:[#allocation7 + $0x414] sm:$0xf0]  ;;  %v3879_v8 = vor.u32 %v4359_v61, %v3878_v59  ;;  %v4209_v61 = vld [vmem:[#allocation7 + $0x2ac] sm:$0xf] }
 0x127   :  { %2298 = vmatpush.bf16.msrb.mxu0 %v3543_v4  ;;  %2312 = vmatpush.bf16.msrb.mxu1 %v3671_v7  ;;  %v3751_v4 = vor.u32 %v4327_v56, %v3750_v55  ;;  %v4185_v7 = vld [vmem:[#allocation7 + $0x1ec] sm:$0xf]  ;;  %v3463_v13 = vor.u32 %v4255_v0, %v3462_v62  ;;  %v3288_v62 = vld [vmem:[#allocation7 + $0x2b8] sm:$0xf0] }
 0x128   :  { %v3195_v18 = vor.u32 %v4185_v7, %v3192_v10  ;;  %v4173_v56 = vld [vmem:[#allocation7 + $0x18c] sm:$0xf] }
 0x129   :  { %2325 = vmatpush.bf16.msrb.mxu2 %v3815_v35  ;;  %v3734_v35 = vld [vmem:[#allocation7 + $0x628] sm:$0xf]  ;;  %v4241_v0 = vld [vmem:[#allocation7 + $0x3ac] sm:$0xf] }
 0x12a   :  { %2339 = vmatpush.bf16.msrb.mxu3 %v3943_v14  ;;  %v3862_v14 = vld [vmem:[#allocation7 + $0x728] sm:$0xf]  ;;  %v4169_v7 = vld [vmem:[#allocation7 + $0x16c] sm:$0xf]  ;;  %v3419_v10 = vor.u32 %v4241_v0, %v3416_v2 }
 0x12b   :  { %2299 = vmatpush.bf16.msrb.mxu0 %v3527_v16  ;;  %2313 = vmatpush.bf16.msrb.mxu1 %v3655_v19  ;;  %v3067_v16 = vor.u32 %v4153_v5, %v3064_v6  ;;  %v3735_v19 = vor.u32 %v4323_v12, %v3734_v35  ;;  %v3863_v23 = vor.u32 %v4355_v15, %v3862_v14  ;;  %v3000_v5 = vld [vmem:[#allocation7 + $0x78] sm:$0xf0]  ;;  %v4205_v35 = vld [vmem:[#allocation7 + $0x28c] sm:$0xf] }
 0x12c   :  { %v3291_v6 = vor.u32 %v4209_v61, %v3288_v62  ;;  %v3272_v12 = vld [vmem:[#allocation7 + $0x298] sm:$0xf0]  ;;  %v4237_v14 = vld [vmem:[#allocation7 + $0x38c] sm:$0xf] }
 0x12d   :  { %2326 = vmatpush.bf16.msrb.mxu2 %v3799_v22  ;;  %v3176_v22 = vld [vmem:[#allocation7 + $0x1d8] sm:$0xf0]  ;;  %v4193_v61 = vld [vmem:[#allocation7 + $0x22c] sm:$0xf] }
 0x12e   :  { %2340 = vmatpush.bf16.msrb.mxu3 %v3927_v25  ;;  %v4319_v25 = vld [vmem:[#allocation7 + $0x614] sm:$0xf0]  ;;  %v3179_v36 = vor.u32 %v4181_v21, %v3176_v22  ;;  %v3400_v15 = vld [vmem:[#allocation7 + $0x398] sm:$0xf0]  ;;  %v4225_v2 = vld [vmem:[#allocation7 + $0x32c] sm:$0xf] }
 0x12f   :  { %2300 = vmatpush.bf16.msrb.mxu0 %v3511_v29  ;;  %2314 = vmatpush.bf16.msrb.mxu1 %v3639_v32  ;;  %v4217_v29 = vld [vmem:[#allocation7 + $0x2ec] sm:$0xf]  ;;  %v3112_v21 = vld [vmem:[#allocation7 + $0x158] sm:$0xf0]  ;;  %v3403_v22 = vor.u32 %v4237_v14, %v3400_v15 }
 0x130   :  { %v4249_v32 = vld [vmem:[#allocation7 + $0x3ec] sm:$0xf]  ;;  %v3323_v41 = vor.u32 %v4217_v29, %v3320_v30  ;;  %v3115_v29 = vor.u32 %v4165_v20, %v3112_v21  ;;  %v3224_v62 = vld [vmem:[#allocation7 + $0x238] sm:$0xf0] }
 0x131   :  { %2327 = vmatpush.bf16.msrb.mxu2 %v3783_v37  ;;  %v3719_v37 = vor.u32 %v4319_v25, %v3718_v24  ;;  %v3451_v45 = vor.u32 %v4249_v32, %v3448_v34  ;;  %v3256_v24 = vld [vmem:[#allocation7 + $0x278] sm:$0xf0]  ;;  %v4129_v30 = vld [vmem:[#allocation7 + $0x2c] sm:$0xf] }
 0x132   :  { %2341 = vmatpush.bf16.msrb.mxu3 %v3911_v40  ;;  %v3847_v40 = vor.u32 %v4351_v28, %v3846_v26  ;;  %v4233_v26 = vld [vmem:[#allocation7 + $0x36c] sm:$0xf]  ;;  %v3384_v28 = vld [vmem:[#allocation7 + $0x378] sm:$0xf0] }
 0x133   :  { %2301 = vmatpush.bf16.msrb.mxu0 %v3495_v43  ;;  %2315 = vmatpush.bf16.msrb.mxu1 %v3623_v47  ;;  %v3160_v43 = vld [vmem:[#allocation7 + $0x1b8] sm:$0xf0]  ;;  %v4161_v34 = vld [vmem:[#allocation7 + $0x12c] sm:$0xf]  ;;  %v3387_v38 = vor.u32 %v4233_v26, %v3384_v28 }
 0x134   :  { %v3304_v47 = vld [vmem:[#allocation7 + $0x2d8] sm:$0xf0]  ;;  %v3163_v52 = vor.u32 %v4177_v42, %v3160_v43  ;;  %v4229_v42 = vld [vmem:[#allocation7 + $0x34c] sm:$0xf] }
 0x135   :  { %2328 = vmatpush.bf16.msrb.mxu2 %v3767_v51  ;;  %v3432_v51 = vld [vmem:[#allocation7 + $0x3d8] sm:$0xf0]  ;;  %v3307_v55 = vor.u32 %v4213_v46, %v3304_v47  ;;  %v4189_v14 = vld [vmem:[#allocation7 + $0x20c] sm:$0xf] }
 0x136   :  { %2342 = vmatpush.bf16.msrb.mxu3 %v3895_v54  ;;  %v3016_v54 = vld [vmem:[#allocation7 + $0x98] sm:$0xf0]  ;;  %v3435_v59 = vor.u32 %v4245_v50, %v3432_v51  ;;  %v4273_v26 = vld [vmem:[#allocation7 + $0x4ac] sm:$0xf] }
 0x137   :  { %2302 = vmatpush.bf16.msrb.mxu0 %v3479_v57  ;;  %2316 = vmatpush.bf16.msrb.mxu1 %v3607_v63  ;;  %v3144_v57 = vld [vmem:[#allocation7 + $0x198] sm:$0xf0]  ;;  %v3019_v63 = vor.u32 %v4141_v53, %v3016_v54  ;;  %v4313_v54 = vld [vmem:[#allocation7 + $0x5ec] sm:$0xf] }
 0x138   :  { %v3147_v3 = vor.u32 %v4173_v56, %v3144_v57  ;;  %v3368_v43 = vld [vmem:[#allocation7 + $0x358] sm:$0xf0] }
 0x139   :  { %2329 = vmatpush.bf16.msrb.mxu2 %v3751_v4  ;;  %v4137_v4 = vld [vmem:[#allocation7 + $0x6c] sm:$0xf]  ;;  %v2952_v47 = vld [vmem:[#allocation7 + $0x18] sm:$0xf0]  ;;  %v3371_v57 = vor.u32 %v4229_v42, %v3368_v43 }
 0x13a   :  { %2343 = vmatpush.bf16.msrb.mxu3 %v3879_v8  ;;  %v3128_v8 = vld [vmem:[#allocation7 + $0x178] sm:$0xf0]  ;;  %v4373_v42 = vld [vmem:[#allocation7 + $0x7cc] sm:$0xf] }
 0x13b   :  { %2303 = vmatpush.bf16.msrb.mxu0 %v3463_v13  ;;  %2317 = vmatpush.bf16.msrb.mxu1 %v3591_v11  ;;  %v3003_v13 = vor.u32 %v4137_v4, %v3000_v5  ;;  %v4724_v11 = vpop.f32.mrf.mxu0  ;;  %v3080_v50 = vld [vmem:[#allocation7 + $0x118] sm:$0xf0] }
 0x13c   :  { %v3576_v53 = vld [vmem:[#allocation7 + $0x4f8] sm:$0xf0] }
 0x13d   :  { %2330 = vmatpush.bf16.msrb.mxu2 %v3735_v19  ;;  %v3275_v19 = vor.u32 %v4205_v35, %v3272_v12  ;;  %v4309_v35 = vld [vmem:[#allocation7 + $0x5cc] sm:$0xf]  ;;  %v3688_v12 = vld [vmem:[#allocation7 + $0x5d8] sm:$0xf0] }
 0x13e   :  { %2344 = vmatpush.bf16.msrb.mxu3 %v3863_v23  ;;  %2304 = vmatmul.bf16.vlgmr.msrb.gmra.mxu0 %v4696_v9  ;;  %v4201_v23 = vld [vmem:[#allocation7 + $0x26c] sm:$0xf]  ;;  %v3208_v15 = vld [vmem:[#allocation7 + $0x218] sm:$0xf0] }
 0x13f   :  { %2352 = vmatpush.bf16.msra.mxu0 %v3067_v16  ;;  %2366 = vmatpush.bf16.msra.mxu1 %v3195_v18  ;;  %v3131_v16 = vor.u32 %v4169_v7, %v3128_v8  ;;  %v2984_v18 = vld [vmem:[#allocation7 + $0x58] sm:$0xf0]  ;;  %v3259_v32 = vor.u32 %v4201_v23, %v3256_v24  ;;  %v3227_v8 = vor.u32 %v4193_v61, %v3224_v62  ;;  %v4265_v62 = vld [vmem:[#allocation7 + $0x46c] sm:$0xf] }
 0x140   :  { %2318 = vmatmul.bf16.vlgmr.msrb.gmra.mxu1 %v4698_v58  ;;  %v2987_v25 = vor.u32 %v4133_v17, %v2984_v18  ;;  %v3336_v17 = vld [vmem:[#allocation7 + $0x318] sm:$0xf0]  ;;  %v4345_v18 = vld [vmem:[#allocation7 + $0x6ec] sm:$0xf]  ;;  %v3691_v24 = vor.u32 %v4309_v35, %v3688_v12 }
 0x141   :  { %2331 = vmatpush.bf16.msrb.mxu2 %v3719_v37  ;;  %v4726_v37 = vpop.f32.mrf.mxu1  ;;  %v3960_v23 = vld [vmem:[#allocation7 + $0x7f8] sm:$0xf0]  ;;  %v4261_v12 = vld [vmem:[#allocation7 + $0x44c] sm:$0xf] }
 0x142   :  { %2345 = vmatpush.bf16.msrb.mxu3 %v3847_v40  ;;  %v3240_v40 = vld [vmem:[#allocation7 + $0x258] sm:$0xf0] }
 0x143   :  { %2353 = vmatpush.bf16.msra.mxu0 %v3051_v31  ;;  %2367 = vmatpush.bf16.msra.mxu1 %v3179_v36  ;;  %v2968_v31 = vld [vmem:[#allocation7 + $0x38] sm:$0xf0]  ;;  %v3243_v51 = vor.u32 %v4197_v39, %v3240_v40 }
 0x144   :  { %2332 = vmatmul.bf16.vlgmr.msrb.gmra.mxu2 %v4702_v44  ;;  %v3096_v36 = vld [vmem:[#allocation7 + $0x138] sm:$0xf0] }
 0x145   :  { %2380 = vmatpush.bf16.msra.mxu2 %v3323_v41  ;;  %2346 = vmatmul.bf16.vlgmr.msrb.gmra.mxu3 %v4704_v49  ;;  %v2971_v41 = vor.u32 %v4129_v30, %v2968_v31  ;;  %v3099_v46 = vor.u32 %v4161_v34, %v3096_v36  ;;  %v3544_v28 = vld [vmem:[#allocation7 + $0x4b8] sm:$0xf0]  ;;  %v4305_v31 = vld [vmem:[#allocation7 + $0x5ac] sm:$0xf] }
 0x146   :  { %2394 = vmatpush.bf16.msra.mxu3 %v3451_v45  ;;  %v4125_v45 = vld [vmem:[#allocation7 + $0xc] sm:$0xf]  ;;  %v3944_v43 = vld [vmem:[#allocation7 + $0x7d8] sm:$0xf0] }
 0x147   :  { %2354 = vmatpush.bf16.msra.mxu0 %v3035_v48  ;;  %2368 = vmatpush.bf16.msra.mxu1 %v3163_v52  ;;  %v4157_v48 = vld [vmem:[#allocation7 + $0x10c] sm:$0xf]  ;;  %v4730_v56 = vpop.f32.mrf.mxu2  ;;  %v2955_v0 = vor.u32 %v4125_v45, %v2952_v47  ;;  %v3528_v47 = vld [vmem:[#allocation7 + $0x498] sm:$0xf0] }
 0x148   :  { %v4281_v52 = vld [vmem:[#allocation7 + $0x4ec] sm:$0xf]  ;;  %v3083_v4 = vor.u32 %v4157_v48, %v3080_v50  ;;  %v3656_v50 = vld [vmem:[#allocation7 + $0x598] sm:$0xf0] }
 0x149   :  { %2381 = vmatpush.bf16.msra.mxu2 %v3307_v55  ;;  %v4728_v55 = vpop.f32.mrf.mxu0  ;;  %v3579_v5 = vor.u32 %v4281_v52, %v3576_v53  ;;  %v4734_v20 = vpop.f32.mrf.mxu1  ;;  %v4341_v36 = vld [vmem:[#allocation7 + $0x6cc] sm:$0xf]  ;;  %v3800_v53 = vld [vmem:[#allocation7 + $0x6b8] sm:$0xf0] }
 0x14a   :  { %2395 = vmatpush.bf16.msra.mxu3 %v3435_v59  ;;  %v3704_v59 = vld [vmem:[#allocation7 + $0x5f8] sm:$0xf0]  ;;  %v4301_v48 = vld [vmem:[#allocation7 + $0x58c] sm:$0xf] }
 0x14b   :  { %2355 = vmatpush.bf16.msra.mxu0 %v3019_v63  ;;  %2369 = vmatpush.bf16.msra.mxu1 %v3147_v3  ;;  %v4732_v63 = vpop.f32.mrf.mxu3  ;;  %v3352_v3 = vld [vmem:[#allocation7 + $0x338] sm:$0xf0]  ;;  %v3707_v7 = vor.u32 %v4313_v54, %v3704_v59  ;;  %v4337_v52 = vld [vmem:[#allocation7 + $0x6ac] sm:$0xf]  ;;  %v3659_v61 = vor.u32 %v4301_v48, %v3656_v50 }
 0x14c   :  { %v3928_v59 = vld [vmem:[#allocation7 + $0x7b8] sm:$0xf0]  ;;  %v4253_v48 = vld [vmem:[#allocation7 + $0x40c] sm:$0xf] }
 0x14d   :  { %2382 = vmatpush.bf16.msra.mxu2 %v3291_v6  ;;  %v4277_v6 = vld [vmem:[#allocation7 + $0x4cc] sm:$0xf]  ;;  %v3912_v35 = vld [vmem:[#allocation7 + $0x798] sm:$0xf0] }
 0x14e   :  { %2396 = vmatpush.bf16.msra.mxu3 %v3419_v10  ;;  %v3560_v10 = vld [vmem:[#allocation7 + $0x4d8] sm:$0xf0] }
 0x14f   :  { %2356 = vmatpush.bf16.msra.mxu0 %v3003_v13  ;;  %2370 = vmatpush.bf16.msra.mxu1 %v3131_v16  ;;  %v3355_v13 = vor.u32 %v4225_v2, %v3352_v3  ;;  %v4221_v16 = vld [vmem:[#allocation7 + $0x30c] sm:$0xf]  ;;  %v3563_v21 = vor.u32 %v4277_v6, %v3560_v10  ;;  %v4740_v40 = vpop.f32.mrf.mxu2  ;;  %v3803_v3 = vor.u32 %v4337_v52, %v3800_v53  ;;  %v3464_v50 = vld [vmem:[#allocation7 + $0x418] sm:$0xf0] }
 0x150   :  { %v4365_v10 = vld [vmem:[#allocation7 + $0x78c] sm:$0xf]  ;;  %v3592_v53 = vld [vmem:[#allocation7 + $0x518] sm:$0xf0] }
 0x151   :  { %2383 = vmatpush.bf16.msra.mxu2 %v3275_v19  ;;  %v3832_v19 = vld [vmem:[#allocation7 + $0x6f8] sm:$0xf0]  ;;  %v4738_v39 = vpop.f32.mrf.mxu0  ;;  %v4746_v2 = vpop.f32.mrf.mxu1  ;;  %v4285_v52 = vld [vmem:[#allocation7 + $0x50c] sm:$0xf] }
 0x152   :  { %2397 = vmatpush.bf16.msra.mxu3 %v3403_v22  ;;  %v4377_v22 = vld [vmem:[#allocation7 + $0x7ec] sm:$0xf]  ;;  %v3835_v30 = vor.u32 %v4345_v18, %v3832_v19  ;;  %v3624_v18 = vld [vmem:[#allocation7 + $0x558] sm:$0xf0] }
 0x153   :  { %2357 = vmatpush.bf16.msra.mxu0 %v2987_v25  ;;  %2371 = vmatpush.bf16.msra.mxu1 %v3115_v29  ;;  %v3211_v25 = vor.u32 %v4189_v14, %v3208_v15  ;;  %v3339_v29 = vor.u32 %v4221_v16, %v3336_v17  ;;  %v3963_v34 = vor.u32 %v4377_v22, %v3960_v23  ;;  %v4742_v45 = vpop.f32.mrf.mxu3  ;;  %v4293_v17 = vld [vmem:[#allocation7 + $0x54c] sm:$0xf]  ;;  %v3768_v23 = vld [vmem:[#allocation7 + $0x678] sm:$0xf0] }
 0x154   :  { %v4329_v22 = vld [vmem:[#allocation7 + $0x66c] sm:$0xf] }
 0x155   :  { %2384 = vmatpush.bf16.msra.mxu2 %v3259_v32  ;;  %v3672_v32 = vld [vmem:[#allocation7 + $0x5b8] sm:$0xf0] }
 0x156   :  { %2398 = vmatpush.bf16.msra.mxu3 %v3387_v38  ;;  %v3816_v38 = vld [vmem:[#allocation7 + $0x6d8] sm:$0xf0] }
 0x157   :  { %2358 = vmatpush.bf16.msra.mxu0 %v2971_v41  ;;  %2372 = vmatpush.bf16.msra.mxu1 %v3099_v46  ;;  %v3547_v41 = vor.u32 %v4273_v26, %v3544_v28  ;;  %v4269_v46 = vld [vmem:[#allocation7 + $0x48c] sm:$0xf]  ;;  %v4750_v15 = vpop.f32.mrf.mxu2  ;;  %v3896_v26 = vld [vmem:[#allocation7 + $0x778] sm:$0xf0]  ;;  %v3627_v28 = vor.u32 %v4293_v17, %v3624_v18 }
 0x158   :  { %v3531_v54 = vor.u32 %v4269_v46, %v3528_v47  ;;  %v3880_v46 = vld [vmem:[#allocation7 + $0x758] sm:$0xf0]  ;;  %v4756_v47 = vld [vmem:[#allocation9] sm:$0xf]  ;;  %v4349_v17 = vld [vmem:[#allocation7 + $0x70c] sm:$0xf] }
 0x159   :  { %2385 = vmatpush.bf16.msra.mxu2 %v3243_v51  ;;  %v3947_v51 = vor.u32 %v4373_v42, %v3944_v43  ;;  %v4748_v14 = vpop.f32.mrf.mxu0  ;;  %v4754_v42 = vpop.f32.mrf.mxu1  ;;  %v3848_v18 = vld [vmem:[#allocation7 + $0x718] sm:$0xf0] }
 0x15a   :  { %2399 = vmatpush.bf16.msra.mxu3 %v3371_v57  ;;  %v4369_v57 = vld [vmem:[#allocation7 + $0x7ac] sm:$0xf] }
 0x15b   :  { %2359 = vmatpush.bf16.msra.mxu0 %v2955_v0  ;;  %2373 = vmatpush.bf16.msra.mxu1 %v3083_v4  ;;  %v3512_v0 = vld [vmem:[#allocation7 + $0x478] sm:$0xf0]  ;;  %v4297_v4 = vld [vmem:[#allocation7 + $0x56c] sm:$0xf]  ;;  %v3931_v6 = vor.u32 %v4369_v57, %v3928_v59  ;;  %v4752_v19 = vpop.f32.mrf.mxu3 }
 0x15c   :  { %v4321_v57 = vld [vmem:[#allocation7 + $0x62c] sm:$0xf]  ;;  %v3736_v59 = vld [vmem:[#allocation7 + $0x638] sm:$0xf0] }
 0x15d   :  { %2386 = vmatpush.bf16.msra.mxu2 %v3227_v8  ;;  %v3515_v8 = vor.u32 %v4265_v62, %v3512_v0 }
 0x15e   :  { %2400 = vmatpush.bf16.msra.mxu3 %v3355_v13  ;;  %2360 = vmatmul.bf16.vlgmr.msra.gmra.mxu0 %v4680_v60  ;;  %v3675_v60 = vor.u32 %v4305_v31, %v3672_v32  ;;  %v3496_v13 = vld [vmem:[#allocation7 + $0x458] sm:$0xf0]  ;;  %v3771_v31 = vor.u32 %v4329_v22, %v3768_v23  ;;  %v4289_v32 = vld [vmem:[#allocation7 + $0x52c] sm:$0xf] }
 0x15f   :  { %2408 = vmatpush.bf16.msrb.mxu0 %v3579_v5  ;;  %2422 = vmatpush.bf16.msrb.mxu1 %v3707_v7  ;;  %v3640_v5 = vld [vmem:[#allocation7 + $0x578] sm:$0xf0]  ;;  %v4333_v7 = vld [vmem:[#allocation7 + $0x68c] sm:$0xf]  ;;  %v4759_v0 = vpop.f32.mrf.mxu2 }
 0x160   :  { %2374 = vmatmul.bf16.vlgmr.msra.gmra.mxu1 %v4682_v1  ;;  %v3819_v1 = vor.u32 %v4341_v36, %v3816_v38  ;;  %v4325_v38 = vld [vmem:[#allocation7 + $0x64c] sm:$0xf] }
 0x161   :  { %2387 = vmatpush.bf16.msra.mxu2 %v3211_v25  ;;  %v4361_v25 = vld [vmem:[#allocation7 + $0x76c] sm:$0xf]  ;;  %v2137_v62 = vpop.f32.mrf.mxu0  ;;  %v2151_v23 = vpop.f32.mrf.mxu1 }
 0x162   :  { %2401 = vmatpush.bf16.msra.mxu3 %v3339_v29  ;;  %v4257_v29 = vld [vmem:[#allocation7 + $0x42c] sm:$0xf]  ;;  %v3899_v36 = vor.u32 %v4361_v25, %v3896_v26  ;;  %v3851_v25 = vor.u32 %v4349_v17, %v3848_v18 }
 0x163   :  { %2409 = vmatpush.bf16.msrb.mxu0 %v3563_v21  ;;  %2423 = vmatpush.bf16.msrb.mxu1 %v3691_v24  ;;  %v3915_v21 = vor.u32 %v4365_v10, %v3912_v35  ;;  %v3499_v24 = vor.u32 %v4261_v12, %v3496_v13  ;;  %v3739_v10 = vor.u32 %v4321_v57, %v3736_v59  ;;  %v4395_v35 = vld [vmem:[#allocation10 + $0x78] sm:$0xff]  ;;  %v4317_v12 = vld [vmem:[#allocation7 + $0x60c] sm:$0xf] }
 0x164   :  { %2388 = vmatmul.bf16.vlgmr.msra.gmra.mxu2 %v4688_v27  ;;  %v3784_v27 = vld [vmem:[#allocation7 + $0x698] sm:$0xf0] }
 0x165   :  { %2436 = vmatpush.bf16.msrb.mxu2 %v3835_v30  ;;  %2402 = vmatmul.bf16.vlgmr.msra.gmra.mxu3 %v4690_v33  ;;  %v3643_v33 = vor.u32 %v4297_v4, %v3640_v5  ;;  %v3787_v16 = vor.u32 %v4333_v7, %v3784_v27  ;;  %v3480_v30 = vld [vmem:[#allocation7 + $0x438] sm:$0xf0]  ;;  %v4353_v4 = vld [vmem:[#allocation7 + $0x72c] sm:$0xf]  ;;  %v3595_v7 = vor.u32 %v4285_v52, %v3592_v53  ;;  %v4390_v52 = vld [vmem:[#allocation10 + $0x50] sm:$0xff] }
 0x166   :  { %2450 = vmatpush.bf16.msrb.mxu3 %v3963_v34  ;;  %v3608_v34 = vld [vmem:[#allocation7 + $0x538] sm:$0xf0]  ;;  %v3483_v43 = vor.u32 %v4257_v29, %v3480_v30 }
 0x167   :  { %2410 = vmatpush.bf16.msrb.mxu0 %v3547_v41  ;;  %2424 = vmatpush.bf16.msrb.mxu1 %v3675_v60  ;;  %v3752_v41 = vld [vmem:[#allocation7 + $0x658] sm:$0xf0]  ;;  %v4357_v60 = vld [vmem:[#allocation7 + $0x74c] sm:$0xf]  ;;  %v2165_v30 = vpop.f32.mrf.mxu2 }
 0x168   :  { %v3864_v5 = vld [vmem:[#allocation7 + $0x738] sm:$0xf0] }
 0x169   :  { %2437 = vmatpush.bf16.msrb.mxu2 %v3819_v1  ;;  %v3611_v1 = vor.u32 %v4289_v32, %v3608_v34  ;;  %v4387_v27 = vld [vmem:[#allocation10 + $0x38] sm:$0xff]  ;;  %v729_v32 = vperm.slane %v4756_v47, 1 }
 0x16a   :  { %2451 = vmatpush.bf16.msrb.mxu3 %v3947_v51  ;;  %v3755_v51 = vor.u32 %v4325_v38, %v3752_v41  ;;  %v3720_v13 = vld [vmem:[#allocation7 + $0x618] sm:$0xf0]  ;;  %v2153_v38 = vpop.f32.mrf.mxu1 }
 0x16b   :  { %2411 = vmatpush.bf16.msrb.mxu0 %v3531_v54  ;;  %2425 = vmatpush.bf16.msrb.mxu1 %v3659_v61  ;;  %v3883_v54 = vor.u32 %v4357_v60, %v3880_v46  ;;  %v728_v61 = vperm.slane %v4756_v47, 0  ;;  %v4383_v41 = vld [vmem:[#allocation10 + $0x18] sm:$0xff] }
 0x16d   :  { %2438 = vmatpush.bf16.msrb.mxu2 %v3803_v3  ;;  %v3467_v3 = vor.u32 %v4253_v48, %v3464_v50  ;;  %v4382_v50 = vld [vmem:[#allocation10 + $0x10] sm:$0xff] }
 0x16e   :  { %2452 = vmatpush.bf16.msrb.mxu3 %v3931_v6  ;;  %v4761_v6 = vpop.f32.mrf.mxu3 }
 0x16f   :  { %2412 = vmatpush.bf16.msrb.mxu0 %v3515_v8  ;;  %2426 = vmatpush.bf16.msrb.mxu1 %v3643_v33  ;;  %v2028_v8 = vadd.f32 %v4728_v55, %v728_v61  ;;  %v3867_v33 = vor.u32 %v4353_v4, %v3864_v5  ;;  %v3723_v55 = vor.u32 %v4317_v12, %v3720_v13 }
 0x171   :  { %2439 = vmatpush.bf16.msrb.mxu2 %v3787_v16  ;;  %v2026_v16 = vadd.f32 %v4724_v11, %v728_v61  ;;  %v2042_v22 = vadd.f32 %v4734_v20, %v2028_v8  ;;  %v2139_v20 = vpop.f32.mrf.mxu0  ;;  %v4381_v61 = vld [vmem:[#allocation10 + $0x8] sm:$0xff] }
 0x172   :  { %2453 = vmatpush.bf16.msrb.mxu3 %v3915_v21  ;;  %v4386_v21 = vld [vmem:[#allocation10 + $0x30] sm:$0xff]  ;;  %v2140_v46 = vadd.f32 %v2139_v20, %v729_v32 }
 0x173   :  { %2413 = vmatpush.bf16.msrb.mxu0 %v3499_v24  ;;  %2427 = vmatpush.bf16.msrb.mxu1 %v3627_v28  ;;  %v4394_v24 = vld [vmem:[#allocation10 + $0x70] sm:$0xff]  ;;  %v2040_v26 = vadd.f32 %v4726_v37, %v2026_v16  ;;  %v2056_v11 = vadd.f32 %v4740_v40, %v2042_v22  ;;  %v4385_v28 = vld [vmem:[#allocation10 + $0x28] sm:$0xff]  ;;  %v4384_v37 = vld [vmem:[#allocation10 + $0x20] sm:$0xff]  ;;  %v2138_v40 = vadd.f32 %v2137_v62, %v729_v32 }
 0x174   :  { %v2154_v53 = vadd.f32 %v2153_v38, %v2140_v46  ;;  %v4389_v62 = vld [vmem:[#allocation10 + $0x48] sm:$0xff] }
 0x175   :  { %2440 = vmatpush.bf16.msrb.mxu2 %v3771_v31  ;;  %v2054_v29 = vadd.f32 %v4730_v56, %v2040_v26  ;;  %v4393_v31 = vld [vmem:[#allocation10 + $0x68] sm:$0xff]  ;;  %v4392_v56 = vld [vmem:[#allocation10 + $0x60] sm:$0xff]  ;;  %v4402_v26 = vld [vmem:[#allocation10 + $0xb0] sm:$0xff] }
 0x176   :  { %2454 = vmatpush.bf16.msrb.mxu3 %v3899_v36  ;;  %v2179_v34 = vpop.f32.mrf.mxu3 }
 0x177   :  { %2414 = vmatpush.bf16.msrb.mxu0 %v3483_v43  ;;  %2428 = vmatpush.bf16.msrb.mxu1 %v3611_v1 }
 0x179   :  { %2441 = vmatpush.bf16.msrb.mxu2 %v3755_v51 }
 0x17a   :  { %2455 = vmatpush.bf16.msrb.mxu3 %v3883_v54 }
 0x17b   :  { %2415 = vmatpush.bf16.msrb.mxu0 %v3467_v3  ;;  %2429 = vmatpush.bf16.msrb.mxu1 %v3595_v7  ;;  %v2193_v60 = vpop.f32.mrf.mxu0 }
 0x17d   :  { %2442 = vmatpush.bf16.msrb.mxu2 %v3739_v10  ;;  %v2207_v54 = vpop.f32.mrf.mxu1 }
 0x17e   :  { %2456 = vmatpush.bf16.msrb.mxu3 %v3867_v33  ;;  %2416 = vmatmul.bf16.vlgmr.msrb.gmra.mxu0 %v4696_v9  ;;  %v2070_v9 = vadd.f32 %v4742_v45, %v2056_v11  ;;  %v4391_v45 = vld [vmem:[#allocation10 + $0x58] sm:$0xff]  ;;  %v4401_v11 = vld [vmem:[#allocation10 + $0xa8] sm:$0xff] }
 0x17f   :  { %2736 = vmatpush.bf16.msra.mxu0 %v4387_v27  ;;  %2750 = vmatpush.bf16.msra.mxu1 %v4395_v35  ;;  %v4380_v27 = vld [vmem:[#allocation10] sm:$0xff] }
 0x180   :  { %2430 = vmatmul.bf16.vlgmr.msrb.gmra.mxu1 %v4698_v58  ;;  %v2068_v58 = vadd.f32 %v4732_v63, %v2054_v29  ;;  %v2084_v36 = vadd.f32 %v4748_v14, %v2070_v9  ;;  %v2167_v63 = vpop.f32.mrf.mxu2  ;;  %v4399_v29 = vld [vmem:[#allocation10 + $0x98] sm:$0xff] }
 0x181   :  { %2443 = vmatpush.bf16.msrb.mxu2 %v3723_v55  ;;  %v2168_v59 = vadd.f32 %v2167_v63, %v2154_v53 }
 0x182   :  { %2457 = vmatpush.bf16.msrb.mxu3 %v3851_v25  ;;  %v2082_v43 = vadd.f32 %v4738_v39, %v2068_v58  ;;  %v2098_v1 = vadd.f32 %v4754_v42, %v2084_v36  ;;  %v730_v58 = vperm.slane %v4756_v47, 2 }
 0x183   :  { %2737 = vmatpush.bf16.msra.mxu0 %v4386_v21  ;;  %2751 = vmatpush.bf16.msra.mxu1 %v4394_v24 }
 0x184   :  { %2444 = vmatmul.bf16.vlgmr.msrb.gmra.mxu2 %v4702_v44  ;;  %v2152_v44 = vadd.f32 %v2151_v23, %v2138_v40  ;;  %v2096_v51 = vadd.f32 %v4746_v2, %v2082_v43  ;;  %v2112_v14 = vadd.f32 %v4759_v0, %v2098_v1  ;;  %v2195_v2 = vpop.f32.mrf.mxu0 }
 0x185   :  { %2458 = vmatmul.bf16.vlgmr.msrb.gmra.mxu3 %v4704_v49  ;;  %v2181_v49 = vpop.f32.mrf.mxu3  ;;  %v2209_v13 = vpop.f32.mrf.mxu1 }
 0x186   :  { %v2166_v48 = vadd.f32 %v2165_v30, %v2152_v44  ;;  %v2110_v39 = vadd.f32 %v4750_v15, %v2096_v51  ;;  %v2126_v42 = vadd.f32 %v4761_v6, %v2112_v14  ;;  %v2182_v0 = vadd.f32 %v2181_v49, %v2168_v59  ;;  %v4388_v15 = vld [vmem:[#allocation10 + $0x40] sm:$0xff]  ;;  %v4398_v30 = vld [vmem:[#allocation10 + $0x90] sm:$0xff] }
 0x187   :  { %2738 = vmatpush.bf16.msra.mxu0 %v4385_v28  ;;  %2752 = vmatpush.bf16.msra.mxu1 %v4393_v31  ;;  %v4400_v28 = vld [vmem:[#allocation10 + $0xa0] sm:$0xff]  ;;  %v4397_v31 = vld [vmem:[#allocation10 + $0x88] sm:$0xff] }
 0x188   :  { %v2180_v57 = vadd.f32 %v2179_v34, %v2166_v48  ;;  %v2124_v4 = vadd.f32 %v4752_v19, %v2110_v39  ;;  %v2221_v5 = vpop.f32.mrf.mxu2  ;;  %v2468_v8 = vmax.f32 %v2126_v42, 0.0  ;;  %v2196_v35 = vadd.f32 %v2195_v2, %v2182_v0  ;;  %v4403_v19 = vld [vmem:[#allocation10 + $0xb8] sm:$0xff]  ;;  %v4396_v34 = vld [vmem:[#allocation10 + $0x80] sm:$0xff] }
 0x189   :  { %2764 = vmatpush.bf16.msra.mxu2 %v4403_v19  ;;  %v4411_v42 = vld [vmem:[#allocation10 + $0xf8] sm:$0xff]  ;;  %v731_v19 = vperm.slane %v4756_v47, 3 }
 0x18a   :  { %v2194_v3 = vadd.f32 %v2193_v60, %v2180_v57  ;;  %v2464_v33 = vmax.f32 %v2124_v4, 0.0  ;;  %v2210_v16 = vadd.f32 %v2209_v13, %v2196_v35  ;;  %2778 = vmatpush.bf16.msra.mxu3 %v4411_v42  ;;  %v4404_v13 = vld [vmem:[#allocation10 + $0xc0] sm:$0xff] }
 0x18b   :  { %2739 = vmatpush.bf16.msra.mxu0 %v4384_v37  ;;  %2753 = vmatpush.bf16.msra.mxu1 %v4392_v56 }
 0x18c   :  { %v2208_v10 = vadd.f32 %v2207_v54, %v2194_v3  ;;  %v2472_v6 = vpack.c.bf16 %v2468_v8, %v2464_v33  ;;  %v4409_v8 = vld [vmem:[#allocation10 + $0xe8] sm:$0xff]  ;;  %v4406_v33 = vld [vmem:[#allocation10 + $0xd0] sm:$0xff] }
 0x18d   :  { %v2235_v7 = vpop.f32.mrf.mxu3  ;;  %2765 = vmatpush.bf16.msra.mxu2 %v4402_v26 }
 0x18e   :  { %v2222_v12 = vadd.f32 %v2221_v5, %v2208_v10  ;;  %v4407_v10 = vld [vmem:[#allocation10 + $0xd8] sm:$0xff] }
 0x18f   :  { %2740 = vmatpush.bf16.msra.mxu0 %v4383_v41  ;;  %2754 = vmatpush.bf16.msra.mxu1 %v4391_v45 }
 0x190   :  { %v2223_v17 = vpop.f32.mrf.mxu2  ;;  %v2236_v18 = vadd.f32 %v2235_v7, %v2222_v12  ;;  %v4405_v12 = vld [vmem:[#allocation10 + $0xc8] sm:$0xff] }
 0x191   :  { %v2224_v21 = vadd.f32 %v2223_v17, %v2210_v16  ;;  %2766 = vmatpush.bf16.msra.mxu2 %v4401_v11 }
 0x192   :  { %v2465_v55 = vmax.f32 %v2236_v18, 0.0 }
 0x193   :  { %2741 = vmatpush.bf16.msra.mxu0 %v4382_v50  ;;  %2755 = vmatpush.bf16.msra.mxu1 %v4390_v52 }
 0x195   :  { %v2237_v22 = vpop.f32.mrf.mxu3  ;;  %2767 = vmatpush.bf16.msra.mxu2 %v4400_v28 }
 0x196   :  { %v2238_v23 = vadd.f32 %v2237_v22, %v2224_v21 }
 0x197   :  { %2742 = vmatpush.bf16.msra.mxu0 %v4381_v61  ;;  %2756 = vmatpush.bf16.msra.mxu1 %v4389_v62 }
 0x198   :  { %v2469_v24 = vmax.f32 %v2238_v23, 0.0 }
 0x199   :  { %2768 = vmatpush.bf16.msra.mxu2 %v4399_v29 }
 0x19a   :  { %v2473_v25 = vpack.c.bf16 %v2469_v24, %v2465_v55 }
 0x19b   :  { %2743 = vmatpush.bf16.msra.mxu0 %v4380_v27  ;;  %2757 = vmatpush.bf16.msra.mxu1 %v4388_v15  ;;  %v2249_v20 = vpop.f32.mrf.mxu0  ;;  %v4410_v27 = vld [vmem:[#allocation10 + $0xf0] sm:$0xff]  ;;  %v4408_v15 = vld [vmem:[#allocation10 + $0xe0] sm:$0xff] }
 0x19c   :  { %v2250_v40 = vadd.f32 %v2249_v20, %v730_v58  ;;  %2779 = vmatpush.bf16.msra.mxu3 %v4410_v27 }
 0x19d   :  { %2769 = vmatpush.bf16.msra.mxu2 %v4398_v30  ;;  %v2263_v32 = vpop.f32.mrf.mxu1 }
 0x19e   :  { %2744 = vmatmul.bf16.vlgmr.msra.gmra.mxu0 %v2472_v6  ;;  %2758 = vmatmul.bf16.vlgmr.msra.gmra.mxu1 %v2473_v25  ;;  %v2264_v41 = vadd.f32 %v2263_v32, %v2250_v40 }
 0x1a0   :  { %2780 = vmatpush.bf16.msra.mxu3 %v4409_v8 }
 0x1a1   :  { %2770 = vmatpush.bf16.msra.mxu2 %v4397_v31 }
 0x1a3   :  { %v2251_v9 = vpop.f32.mrf.mxu0 }
 0x1a4   :  { %v2252_v43 = vadd.f32 %v2251_v9, %v730_v58  ;;  %2781 = vmatpush.bf16.msra.mxu3 %v4408_v15 }
 0x1a5   :  { %2771 = vmatpush.bf16.msra.mxu2 %v4396_v34  ;;  %v2265_v36 = vpop.f32.mrf.mxu1 }
 0x1a6   :  { %v2266_v46 = vadd.f32 %v2265_v36, %v2252_v43 }
 0x1a7   :  { %v2277_v37 = vpop.f32.mrf.mxu2 }
 0x1a8   :  { %v2291_v56 = vpop.f32.mrf.mxu3  ;;  %v2278_v45 = vadd.f32 %v2277_v37, %v2264_v41  ;;  %2782 = vmatpush.bf16.msra.mxu3 %v4407_v10 }
 0x1aa   :  { %v2292_v63 = vadd.f32 %v2291_v56, %v2278_v45 }
 0x1ac   :  { %2783 = vmatpush.bf16.msra.mxu3 %v4406_v33 }
 0x1af   :  { %v2279_v60 = vpop.f32.mrf.mxu2 }
 0x1b0   :  { %v2293_v44 = vpop.f32.mrf.mxu3  ;;  %v2280_v48 = vadd.f32 %v2279_v60, %v2266_v46  ;;  %2784 = vmatpush.bf16.msra.mxu3 %v4405_v12 }
 0x1b2   :  { %v2294_v14 = vadd.f32 %v2293_v44, %v2280_v48 }
 0x1b4   :  { %2785 = vmatpush.bf16.msra.mxu3 %v4404_v13 }
 0x1bb   :  { %v2305_v38 = vpop.f32.mrf.mxu0 }
 0x1bc   :  { %v2306_v49 = vadd.f32 %v2305_v38, %v2292_v63 }
 0x1bd   :  { %v2319_v1 = vpop.f32.mrf.mxu1 }
 0x1be   :  { %v2320_v53 = vadd.f32 %v2319_v1, %v2306_v49 }
 0x1c3   :  { %v2307_v50 = vpop.f32.mrf.mxu0 }
 0x1c4   :  { %v2308_v39 = vadd.f32 %v2307_v50, %v2294_v14  ;;  %v4431_v50 = vld [vmem:[%s4798_s6] ss:$0 sm:$0xff] }
 0x1c5   :  { %v2321_v57 = vpop.f32.mrf.mxu1 }
 0x1c6   :  { %v2322_v59 = vadd.f32 %v2321_v57, %v2308_v39 }
 0x1c7   :  { %v2333_v51 = vpop.f32.mrf.mxu2 }
 0x1c8   :  { %v2347_v52 = vpop.f32.mrf.mxu3  ;;  %v2334_v54 = vadd.f32 %v2333_v51, %v2320_v53 }
 0x1ca   :  { %v2348_v62 = vadd.f32 %v2347_v52, %v2334_v54 }
 0x1cc   :  { %v2466_v5 = vmax.f32 %v2348_v62, 0.0 }
 0x1cf   :  { %v2335_v61 = vpop.f32.mrf.mxu2 }
 0x1d0   :  { %v2336_v3 = vadd.f32 %v2335_v61, %v2322_v59  ;;  %v2349_v4 = vpop.f32.mrf.mxu3 }
 0x1d2   :  { %v2350_v2 = vadd.f32 %v2349_v4, %v2336_v3 }
 0x1d4   :  { %v2470_v0 = vmax.f32 %v2350_v2, 0.0 }
 0x1d6   :  { %v2474_v7 = vpack.c.bf16 %v2470_v0, %v2466_v5 }
 0x1d8   :  { %2772 = vmatmul.bf16.vlgmr.msra.gmra.mxu2 %v2474_v7 }
 0x1db   :  { %v2361_v35 = vpop.f32.mrf.mxu0 }
 0x1dc   :  { %v2362_v21 = vadd.f32 %v2361_v35, %v731_v19 }
 0x1dd   :  { %v2375_v6 = vpop.f32.mrf.mxu1 }
 0x1de   :  { %v2376_v55 = vadd.f32 %v2375_v6, %v2362_v21 }
 0x1e3   :  { %v2363_v16 = vpop.f32.mrf.mxu0 }
 0x1e4   :  { %v2364_v24 = vadd.f32 %v2363_v16, %v731_v19 }
 0x1e5   :  { %v2377_v22 = vpop.f32.mrf.mxu1 }
 0x1e6   :  { %v2378_v28 = vadd.f32 %v2377_v22, %v2364_v24 }
 0x1e7   :  { %v2389_v17 = vpop.f32.mrf.mxu2 }
 0x1e8   :  { %v2403_v18 = vpop.f32.mrf.mxu3  ;;  %v2390_v26 = vadd.f32 %v2389_v17, %v2376_v55 }
 0x1ea   :  { %v2404_v20 = vadd.f32 %v2403_v18, %v2390_v26 }
 0x1ef   :  { %v2391_v25 = vpop.f32.mrf.mxu2 }
 0x1f0   :  { %v2405_v11 = vpop.f32.mrf.mxu3  ;;  %v2392_v30 = vadd.f32 %v2391_v25, %v2378_v28 }
 0x1f2   :  { %v2406_v9 = vadd.f32 %v2405_v11, %v2392_v30 }
 0x1fb   :  { %v2417_v23 = vpop.f32.mrf.mxu0 }
 0x1fc   :  { %v2418_v31 = vadd.f32 %v2417_v23, %v2404_v20 }
 0x1fd   :  { %v2431_v29 = vpop.f32.mrf.mxu1 }
 0x1fe   :  { %v2432_v47 = vadd.f32 %v2431_v29, %v2418_v31 }
 0x203   :  { %v2419_v32 = vpop.f32.mrf.mxu0 }
 0x204   :  { %v2420_v58 = vadd.f32 %v2419_v32, %v2406_v9 }
 0x205   :  { %v2433_v40 = vpop.f32.mrf.mxu1 }
 0x206   :  { %v2434_v36 = vadd.f32 %v2433_v40, %v2420_v58 }
 0x207   :  { %v2445_v34 = vpop.f32.mrf.mxu2 }
 0x208   :  { %v2459_v37 = vpop.f32.mrf.mxu3  ;;  %v2446_v56 = vadd.f32 %v2445_v34, %v2432_v47 }
 0x20a   :  { %v2460_v41 = vadd.f32 %v2459_v37, %v2446_v56 }
 0x20c   :  { %v2467_v44 = vmax.f32 %v2460_v41, 0.0 }
 0x20f   :  { %v2447_v38 = vpop.f32.mrf.mxu2 }
 0x210   :  { %v2448_v43 = vadd.f32 %v2447_v38, %v2434_v36  ;;  %v2461_v60 = vpop.f32.mrf.mxu3 }
 0x212   :  { %v2462_v45 = vadd.f32 %v2461_v60, %v2448_v43 }
 0x214   :  { %v2471_v46 = vmax.f32 %v2462_v45, 0.0 }
 0x216   :  { %v2475_v1 = vpack.c.bf16 %v2471_v46, %v2467_v44 }
 0x218   :  { %2786 = vmatmul.bf16.vlgmr.msra.gmra.mxu3 %v2475_v1 }
 0x21b   :  { %v2745_v63 = vpop.f32.mrf.mxu0  ;;  %v2759_v48 = vpop.f32.mrf.mxu1 }
 0x21c   :  { %v2746_v53 = vadd.f32 %v4431_v50, %v2745_v63 }
 0x21e   :  { %v2760_v57 = vadd.f32 %v2759_v48, %v2746_v53 }
 0x223   :  { %v2747_v51 = vpop.f32.mrf.mxu0  ;;  %v2761_v52 = vpop.f32.mrf.mxu1 }
 0x224   :  { %v2748_v39 = vadd.f32 %v4431_v50, %v2747_v51 }
 0x226   :  { %v2762_v59 = vadd.f32 %v2761_v52, %v2748_v39 }
 0x25b   :  { %v2773_v49 = vpop.f32.mrf.mxu2 }
 0x25c   :  { %v2774_v61 = vadd.f32 %v2773_v49, %v2760_v57 }
 0x263   :  { %v2775_v54 = vpop.f32.mrf.mxu2 }
 0x264   :  { %v2776_v42 = vadd.f32 %v2775_v54, %v2762_v59 }
 0x29b   :  { %v2787_v14 = vpop.f32.mrf.mxu3 }
 0x29c   :  { %v2788_v3 = vadd.f32 %v2787_v14, %v2774_v61 }
 0x2a3   :  { %v2789_v62 = vpop.f32.mrf.mxu3 }
 0x2a4   :  { %v2790_v4 = vadd.f32 %v2789_v62, %v2776_v42 }
 0x2a6   :  { %v4415_v2 = vpack.c.bf16 %v2790_v4, %v2788_v3 }
 0x2a8   :  { %4416 = vst [vmem:[%s4799_s7] sm:$0xff] %v4415_v2  }
 0x2a9   :  { %2800 = vsyncpa [#allocation3], 1 }
 0x2aa   :  { %2801 = vsyncpa [#allocation5], 1 }
 0x2ab   :  { %2802 = vsyncpa [#allocation8], 1 }
 0x2ac   :  { %2803 = vsyncpa [#allocation11], 1 }

</bundles_post_ra>
